<compile_context>
chip_gen: v6e
topology: v6e:2x2x1
jax: 0.10.0
libtpu: 0.0.40
codegen_flags: <defaults>
</compile_context>

<pallas_src>
import math
import functools

import jax
import jax.numpy as jnp
from jax.experimental import pallas as pl
from jax.experimental.pallas import tpu as pltpu


def _make_kernel(*, seq, d_model, num_heads, num_layers, eps=1e-5):
    E = d_model
    head_dim = E // num_heads
    scale = 1.0 / math.sqrt(head_dim)
    hp = jax.lax.Precision.HIGHEST

    def mm(a, b):
        return jnp.dot(a, b, preferred_element_type=jnp.float32, precision=hp)

    def layer_norm(v, gamma, beta):
        mean = jnp.mean(v, axis=-1, keepdims=True)
        var = jnp.mean((v - mean) ** 2, axis=-1, keepdims=True)
        return (v - mean) * jax.lax.rsqrt(var + eps) * gamma + beta

    def kernel(x_ref, wmap_ref, bmap_ref,
               wqkv_ref, bqkv_ref, wo_ref, bo_ref,
               ln1g_ref, ln1b_ref, ln2g_ref, ln2b_ref,
               w1_ref, b1_ref, w2_ref, b2_ref,
               wfc_ref, bfc_ref,
               out_ref):
        # x_ref: (S, In) — one batch's tokens (grid axis 0 = batch, "parallel").
        src = mm(x_ref[...], wmap_ref[...]) + bmap_ref[...]                  # (S, E)

        for l in range(num_layers):
            # ---- multi-head self-attention (post-norm encoder layer), fused QKV ----
            qkv = mm(src, wqkv_ref[l]) + bqkv_ref[l]                         # (S, 3E): 1 MXU call
            q = qkv[:, 0:E] * scale
            k = qkv[:, E:2 * E]
            v = qkv[:, 2 * E:3 * E]

            ctx = []
            for h in range(num_heads):
                sl = slice(h * head_dim, (h + 1) * head_dim)
                # scores without an explicit K transpose: contract the last dims.
                sc = jax.lax.dot_general(
                    q[:, sl], k[:, sl], (((1,), (1,)), ((), ())),
                    preferred_element_type=jnp.float32, precision=hp)       # (S, S)
                sc = sc - jnp.max(sc, axis=-1, keepdims=True)
                p = jnp.exp(sc)
                # EUP reciprocal instead of a VALU divide.
                p = p * pl.reciprocal(jnp.sum(p, axis=-1, keepdims=True), approx=True)
                ctx.append(mm(p, v[:, sl]))                                  # (S, Dh)
            ctx = jnp.concatenate(ctx, axis=-1)                              # (S, E)
            attn = mm(ctx, wo_ref[l]) + bo_ref[l]                            # fused out-proj: 1 MXU call
            src = layer_norm(src + attn, ln1g_ref[l], ln1b_ref[l])

            # ---- feed-forward ----
            ff = jnp.maximum(mm(src, w1_ref[l]) + b1_ref[l], 0.0)            # relu
            ff = mm(ff, w2_ref[l]) + b2_ref[l]
            src = layer_norm(src + ff, ln2g_ref[l], ln2b_ref[l])

        cls = src[0:1, :]                                                    # seq position 0 -> (1, E)
        logit = mm(cls, wfc_ref[...]) + bfc_ref[...]                         # (1, O)
        # exact sigmoid (one tiny op; keeps the directly-compared output exact)
        sig = 1.0 / (1.0 + jnp.exp(-logit))
        out_ref[...] = sig[None, :, :]                                       # (1, 1, O)

    return kernel


@functools.partial(jax.jit, static_argnames=("num_heads", "num_layers"))
def transformer_classifier(x, params, *, num_heads, num_layers):
    B, S, In = x.shape
    E = params["wmapT"].shape[1]
    O = params["wfcT"].shape[1]
    L, H = num_layers, num_heads
    Dh = E // H

    x2d = x.reshape(B * S, In).astype(jnp.float32)

    # ---- host-side weight fusion: per-head weights -> one matmul per projection ----
    def fuse_w(w):   # (L, H, E, Dh) -> (L, E, H*Dh)
        return jnp.transpose(w, (0, 2, 1, 3)).reshape(L, E, H * Dh)

    def fuse_b(b):   # (L, H, 1, Dh) -> (L, 1, H*Dh)
        return jnp.transpose(b, (0, 2, 1, 3)).reshape(L, 1, H * Dh)

    wqkvT = jnp.concatenate(
        [fuse_w(params["wqT"]), fuse_w(params["wkT"]), fuse_w(params["wvT"])], axis=-1)  # (L, E, 3E)
    bqkv = jnp.concatenate(
        [fuse_b(params["bq"]), fuse_b(params["bk"]), fuse_b(params["bv"])], axis=-1)     # (L, 1, 3E)
    woT_f = params["woT"].reshape(L, H * Dh, E)                                          # (L, E, E)

    kernel = _make_kernel(seq=S, d_model=E, num_heads=H, num_layers=L)

    args = (x2d, params["wmapT"], params["bmap"],
            wqkvT, bqkv, woT_f, params["bo"],
            params["ln1g"], params["ln1b"], params["ln2g"], params["ln2b"],
            params["w1T"], params["b1"], params["w2T"], params["b2"],
            params["wfcT"], params["bfc"])

    def full_spec(a):
        nd = a.ndim
        return pl.BlockSpec(a.shape, lambda b, _z=(0,) * nd: _z)

    in_specs = [pl.BlockSpec((S, In), lambda b: (b, 0))] + [full_spec(a) for a in args[1:]]

    out = pl.pallas_call(
        kernel,
        grid=(B,),
        out_shape=jax.ShapeDtypeStruct((B, 1, O), jnp.float32),
        in_specs=in_specs,
        out_specs=pl.BlockSpec((1, 1, O), lambda b: (b, 0, 0)),
        compiler_params=pltpu.CompilerParams(dimension_semantics=("parallel",)),
    )(*args)
    return out.reshape(B, O)


def init_params(key, *, input_dim, d_model, num_heads, num_layers, hidden_dim, output_dim):
    L, H, E, F, O = num_layers, num_heads, d_model, hidden_dim, output_dim
    Dh = E // H
    ks = jax.random.split(key, 16)

    def rnd(k, shape, scl=0.1):
        return jax.random.normal(k, shape, jnp.float32) * scl

    return dict(
        wmapT=rnd(ks[0], (input_dim, E)), bmap=rnd(ks[1], (1, E)),
        wqT=rnd(ks[2], (L, H, E, Dh)), bq=rnd(ks[3], (L, H, 1, Dh)),
        wkT=rnd(ks[4], (L, H, E, Dh)), bk=rnd(ks[5], (L, H, 1, Dh)),
        wvT=rnd(ks[6], (L, H, E, Dh)), bv=rnd(ks[7], (L, H, 1, Dh)),
        woT=rnd(ks[8], (L, H, Dh, E)), bo=rnd(ks[9], (L, 1, E)),
        ln1g=jnp.ones((L, 1, E), jnp.float32), ln1b=jnp.zeros((L, 1, E), jnp.float32),
        ln2g=jnp.ones((L, 1, E), jnp.float32), ln2b=jnp.zeros((L, 1, E), jnp.float32),
        w1T=rnd(ks[10], (L, E, F)), b1=rnd(ks[11], (L, 1, F)),
        w2T=rnd(ks[12], (L, F, E)), b2=rnd(ks[13], (L, 1, E)),
        wfcT=rnd(ks[14], (E, O)), bfc=rnd(ks[15], (1, O)),
    )


def reference_forward(x, params, *, num_heads, num_layers, eps=1e-5):
    """Pure-JAX reference with identical math (batch-first == PyTorch seq-first here)."""
    E = params["wmapT"].shape[1]
    Dh = E // num_heads
    scale = 1.0 / math.sqrt(Dh)
    hp = jax.lax.Precision.HIGHEST

    def ln(v, g, b):
        m = v.mean(-1, keepdims=True)
        var = ((v - m) ** 2).mean(-1, keepdims=True)
        return (v - m) / jnp.sqrt(var + eps) * g + b

    src = jnp.einsum("bsi,ie->bse", x, params["wmapT"], precision=hp) + params["bmap"]
    for l in range(num_layers):
        attn = jnp.zeros_like(src)
        for h in range(num_heads):
            q = (jnp.einsum("bse,ed->bsd", src, params["wqT"][l, h], precision=hp) + params["bq"][l, h]) * scale
            k = jnp.einsum("bse,ed->bsd", src, params["wkT"][l, h], precision=hp) + params["bk"][l, h]
            v = jnp.einsum("bse,ed->bsd", src, params["wvT"][l, h], precision=hp) + params["bv"][l, h]
            sc = jnp.einsum("bsd,btd->bst", q, k, precision=hp)
            p = jax.nn.softmax(sc, axis=-1)
            ctx = jnp.einsum("bst,btd->bsd", p, v, precision=hp)
            attn = attn + jnp.einsum("bsd,de->bse", ctx, params["woT"][l, h], precision=hp)
        attn = attn + params["bo"][l]
        src = ln(src + attn, params["ln1g"][l], params["ln1b"][l])
        ff = jnp.maximum(jnp.einsum("bse,ef->bsf", src, params["w1T"][l], precision=hp) + params["b1"][l], 0.0)
        ff = jnp.einsum("bsf,fe->bse", ff, params["w2T"][l], precision=hp) + params["b2"][l]
        src = ln(src + ff, params["ln2g"][l], params["ln2b"][l])
    cls = src[:, 0, :]
    logit = jnp.einsum("be,eo->bo", cls, params["wfcT"], precision=hp) + params["bfc"]
    return jax.nn.sigmoid(logit)


if __name__ == "__main__":
    # Module config (d_model fixed at 20 by the PyTorch module).
    input_dim, num_heads, num_layers, hidden_dim, output_dim = 16, 4, 2, 32, 1
    B, S = 2, 8

    key = jax.random.PRNGKey(0)
    kx, kp = jax.random.split(key)
    x = jax.random.normal(kx, (B, S, input_dim), jnp.float32)
    params = init_params(kp, input_dim=input_dim, d_model=20, num_heads=num_heads,
                         num_layers=num_layers, hidden_dim=hidden_dim, output_dim=output_dim)

    out = transformer_classifier(x, params, num_heads=num_heads, num_layers=num_layers)
    out = jax.block_until_ready(out)

    ref = reference_forward(x, params, num_heads=num_heads, num_layers=num_layers)
    assert out.shape == (B, output_dim), out.shape
    assert bool(jnp.all(jnp.isfinite(out)))
    assert bool(jnp.allclose(out, ref, atol=1e-3, rtol=1e-3)), (out, ref)

    print("KERNEL_OK")
</pallas_src>

<mosaic_0001>
module attributes {stable_mosaic.version = 11 : i64} {
  func.func @kernel(%arg0: i32, %arg1: memref<8x16xf32, #tpu.memory_space<vmem>>, %arg2: memref<16x20xf32, #tpu.memory_space<vmem>>, %arg3: memref<1x20xf32, #tpu.memory_space<vmem>>, %arg4: memref<2x20x60xf32, #tpu.memory_space<vmem>>, %arg5: memref<2x1x60xf32, #tpu.memory_space<vmem>>, %arg6: memref<2x20x20xf32, #tpu.memory_space<vmem>>, %arg7: memref<2x1x20xf32, #tpu.memory_space<vmem>>, %arg8: memref<2x1x20xf32, #tpu.memory_space<vmem>>, %arg9: memref<2x1x20xf32, #tpu.memory_space<vmem>>, %arg10: memref<2x1x20xf32, #tpu.memory_space<vmem>>, %arg11: memref<2x1x20xf32, #tpu.memory_space<vmem>>, %arg12: memref<2x20x32xf32, #tpu.memory_space<vmem>>, %arg13: memref<2x1x32xf32, #tpu.memory_space<vmem>>, %arg14: memref<2x32x20xf32, #tpu.memory_space<vmem>>, %arg15: memref<2x1x20xf32, #tpu.memory_space<vmem>>, %arg16: memref<20x1xf32, #tpu.memory_space<vmem>>, %arg17: memref<1x1xf32, #tpu.memory_space<vmem>>, %arg18: memref<1x1x1xf32, #tpu.memory_space<vmem>>) attributes {dimension_semantics = [#tpu.dimension_semantics<parallel>], iteration_bounds = array<i64: 2>, scalar_prefetch = 0 : i64, scratch_operands = 0 : i64, tpu.core_type = #tpu.core_type<tc>, window_params = [{transform_indices = @transform_0, window_bounds = array<i64: 8, 16>}, {pipeline_mode = #tpu.pipeline_mode<synchronous>, transform_indices = @transform_1, window_bounds = array<i64: 16, 20>}, {pipeline_mode = #tpu.pipeline_mode<synchronous>, transform_indices = @transform_2, window_bounds = array<i64: 1, 20>}, {pipeline_mode = #tpu.pipeline_mode<synchronous>, transform_indices = @transform_3, window_bounds = array<i64: 2, 20, 60>}, {pipeline_mode = #tpu.pipeline_mode<synchronous>, transform_indices = @transform_4, window_bounds = array<i64: 2, 1, 60>}, {pipeline_mode = #tpu.pipeline_mode<synchronous>, transform_indices = @transform_5, window_bounds = array<i64: 2, 20, 20>}, {pipeline_mode = #tpu.pipeline_mode<synchronous>, transform_indices = @transform_6, window_bounds = array<i64: 2, 1, 20>}, {pipeline_mode = #tpu.pipeline_mode<synchronous>, transform_indices = @transform_7, window_bounds = array<i64: 2, 1, 20>}, {pipeline_mode = #tpu.pipeline_mode<synchronous>, transform_indices = @transform_8, window_bounds = array<i64: 2, 1, 20>}, {pipeline_mode = #tpu.pipeline_mode<synchronous>, transform_indices = @transform_9, window_bounds = array<i64: 2, 1, 20>}, {pipeline_mode = #tpu.pipeline_mode<synchronous>, transform_indices = @transform_10, window_bounds = array<i64: 2, 1, 20>}, {pipeline_mode = #tpu.pipeline_mode<synchronous>, transform_indices = @transform_11, window_bounds = array<i64: 2, 20, 32>}, {pipeline_mode = #tpu.pipeline_mode<synchronous>, transform_indices = @transform_12, window_bounds = array<i64: 2, 1, 32>}, {pipeline_mode = #tpu.pipeline_mode<synchronous>, transform_indices = @transform_13, window_bounds = array<i64: 2, 32, 20>}, {pipeline_mode = #tpu.pipeline_mode<synchronous>, transform_indices = @transform_14, window_bounds = array<i64: 2, 1, 20>}, {pipeline_mode = #tpu.pipeline_mode<synchronous>, transform_indices = @transform_15, window_bounds = array<i64: 20, 1>}, {pipeline_mode = #tpu.pipeline_mode<synchronous>, transform_indices = @transform_16, window_bounds = array<i64: 1, 1>}, {transform_indices = @transform_17, window_bounds = array<i64: 1, 1, 1>}]} {
    %c0 = arith.constant 0 : index
    %c0_0 = arith.constant 0 : index
    %0 = vector.load %arg1[%c0, %c0_0] : memref<8x16xf32, #tpu.memory_space<vmem>>, vector<8x16xf32>
    %c0_1 = arith.constant 0 : index
    %c0_2 = arith.constant 0 : index
    %1 = vector.load %arg2[%c0_1, %c0_2] : memref<16x20xf32, #tpu.memory_space<vmem>>, vector<16x20xf32>
    %cst = arith.constant dense<0.000000e+00> : vector<8x20xf32>
    %2 = tpu.matmul %0, %1, %cst {dimension_numbers = #tpu.dot_dimension_numbers<[1], [0], [0], [1], [0, 0, 1, 1], [], []>, precision = #tpu.contract_precision<fp32>} : vector<8x16xf32>, vector<16x20xf32>, vector<8x20xf32> -> vector<8x20xf32>
    %c0_3 = arith.constant 0 : index
    %c0_4 = arith.constant 0 : index
    %3 = vector.load %arg3[%c0_3, %c0_4] : memref<1x20xf32, #tpu.memory_space<vmem>>, vector<1x20xf32>
    %4 = vector.broadcast %3 : vector<1x20xf32> to vector<8x20xf32>
    %5 = arith.addf %2, %4 : vector<8x20xf32>
    %c0_5 = arith.constant 0 : index
    %c0_6 = arith.constant 0 : index
    %c0_7 = arith.constant 0 : index
    %6 = vector.load %arg4[%c0_5, %c0_6, %c0_7] : memref<2x20x60xf32, #tpu.memory_space<vmem>>, vector<1x20x60xf32>
    %7 = vector.shape_cast %6 : vector<1x20x60xf32> to vector<20x60xf32>
    %cst_8 = arith.constant dense<0.000000e+00> : vector<8x60xf32>
    %8 = tpu.matmul %5, %7, %cst_8 {dimension_numbers = #tpu.dot_dimension_numbers<[1], [0], [0], [1], [0, 0, 1, 1], [], []>, precision = #tpu.contract_precision<fp32>} : vector<8x20xf32>, vector<20x60xf32>, vector<8x60xf32> -> vector<8x60xf32>
    %c0_9 = arith.constant 0 : index
    %c0_10 = arith.constant 0 : index
    %c0_11 = arith.constant 0 : index
    %9 = vector.load %arg5[%c0_9, %c0_10, %c0_11] : memref<2x1x60xf32, #tpu.memory_space<vmem>>, vector<1x1x60xf32>
    %10 = vector.shape_cast %9 : vector<1x1x60xf32> to vector<1x60xf32>
    %11 = vector.broadcast %10 : vector<1x60xf32> to vector<8x60xf32>
    %12 = arith.addf %8, %11 : vector<8x60xf32>
    %13 = vector.extract_strided_slice %12 {offsets = [0, 0], sizes = [8, 20], strides = [1, 1]} : vector<8x60xf32> to vector<8x20xf32>
    %cst_12 = arith.constant 0.44721359 : f32
    %14 = vector.broadcast %cst_12 : f32 to vector<8x20xf32>
    %15 = arith.mulf %13, %14 : vector<8x20xf32>
    %16 = vector.extract_strided_slice %12 {offsets = [0, 20], sizes = [8, 20], strides = [1, 1]} : vector<8x60xf32> to vector<8x20xf32>
    %17 = vector.extract_strided_slice %12 {offsets = [0, 40], sizes = [8, 20], strides = [1, 1]} : vector<8x60xf32> to vector<8x20xf32>
    %18 = vector.extract_strided_slice %15 {offsets = [0, 0], sizes = [8, 5], strides = [1, 1]} : vector<8x20xf32> to vector<8x5xf32>
    %19 = vector.extract_strided_slice %16 {offsets = [0, 0], sizes = [8, 5], strides = [1, 1]} : vector<8x20xf32> to vector<8x5xf32>
    %cst_13 = arith.constant dense<0.000000e+00> : vector<8x8xf32>
    %20 = tpu.matmul %18, %19, %cst_13 {dimension_numbers = #tpu.dot_dimension_numbers<[1], [1], [0], [0], [0, 0, 1, 0], [], []>, precision = #tpu.contract_precision<fp32>} : vector<8x5xf32>, vector<8x5xf32>, vector<8x8xf32> -> vector<8x8xf32>
    %cst_14 = arith.constant dense<0xFF800000> : vector<8xf32>
    %21 = vector.multi_reduction <maximumf>, %20, %cst_14 [1] : vector<8x8xf32> to vector<8xf32>
    %22 = vector.shape_cast %21 : vector<8xf32> to vector<8x1xf32>
    %23 = vector.broadcast %22 : vector<8x1xf32> to vector<8x8xf32>
    %24 = arith.subf %20, %23 : vector<8x8xf32>
    %25 = math.exp %24 : vector<8x8xf32>
    %cst_15 = arith.constant dense<0.000000e+00> : vector<8xf32>
    %26 = vector.multi_reduction <add>, %25, %cst_15 [1] : vector<8x8xf32> to vector<8xf32>
    %27 = vector.shape_cast %26 : vector<8xf32> to vector<8x1xf32>
    %28 = tpu.reciprocal %27 {approx = true} : vector<8x1xf32> -> vector<8x1xf32>
    %29 = vector.broadcast %28 : vector<8x1xf32> to vector<8x8xf32>
    %30 = arith.mulf %25, %29 : vector<8x8xf32>
    %31 = vector.extract_strided_slice %17 {offsets = [0, 0], sizes = [8, 5], strides = [1, 1]} : vector<8x20xf32> to vector<8x5xf32>
    %cst_16 = arith.constant dense<0.000000e+00> : vector<8x5xf32>
    %32 = tpu.matmul %30, %31, %cst_16 {dimension_numbers = #tpu.dot_dimension_numbers<[1], [0], [0], [1], [0, 0, 1, 1], [], []>, precision = #tpu.contract_precision<fp32>} : vector<8x8xf32>, vector<8x5xf32>, vector<8x5xf32> -> vector<8x5xf32>
    %33 = vector.extract_strided_slice %15 {offsets = [0, 5], sizes = [8, 5], strides = [1, 1]} : vector<8x20xf32> to vector<8x5xf32>
    %34 = vector.extract_strided_slice %16 {offsets = [0, 5], sizes = [8, 5], strides = [1, 1]} : vector<8x20xf32> to vector<8x5xf32>
    %cst_17 = arith.constant dense<0.000000e+00> : vector<8x8xf32>
    %35 = tpu.matmul %33, %34, %cst_17 {dimension_numbers = #tpu.dot_dimension_numbers<[1], [1], [0], [0], [0, 0, 1, 0], [], []>, precision = #tpu.contract_precision<fp32>} : vector<8x5xf32>, vector<8x5xf32>, vector<8x8xf32> -> vector<8x8xf32>
    %cst_18 = arith.constant dense<0xFF800000> : vector<8xf32>
    %36 = vector.multi_reduction <maximumf>, %35, %cst_18 [1] : vector<8x8xf32> to vector<8xf32>
    %37 = vector.shape_cast %36 : vector<8xf32> to vector<8x1xf32>
    %38 = vector.broadcast %37 : vector<8x1xf32> to vector<8x8xf32>
    %39 = arith.subf %35, %38 : vector<8x8xf32>
    %40 = math.exp %39 : vector<8x8xf32>
    %cst_19 = arith.constant dense<0.000000e+00> : vector<8xf32>
    %41 = vector.multi_reduction <add>, %40, %cst_19 [1] : vector<8x8xf32> to vector<8xf32>
    %42 = vector.shape_cast %41 : vector<8xf32> to vector<8x1xf32>
    %43 = tpu.reciprocal %42 {approx = true} : vector<8x1xf32> -> vector<8x1xf32>
    %44 = vector.broadcast %43 : vector<8x1xf32> to vector<8x8xf32>
    %45 = arith.mulf %40, %44 : vector<8x8xf32>
    %46 = vector.extract_strided_slice %17 {offsets = [0, 5], sizes = [8, 5], strides = [1, 1]} : vector<8x20xf32> to vector<8x5xf32>
    %cst_20 = arith.constant dense<0.000000e+00> : vector<8x5xf32>
    %47 = tpu.matmul %45, %46, %cst_20 {dimension_numbers = #tpu.dot_dimension_numbers<[1], [0], [0], [1], [0, 0, 1, 1], [], []>, precision = #tpu.contract_precision<fp32>} : vector<8x8xf32>, vector<8x5xf32>, vector<8x5xf32> -> vector<8x5xf32>
    %48 = vector.extract_strided_slice %15 {offsets = [0, 10], sizes = [8, 5], strides = [1, 1]} : vector<8x20xf32> to vector<8x5xf32>
    %49 = vector.extract_strided_slice %16 {offsets = [0, 10], sizes = [8, 5], strides = [1, 1]} : vector<8x20xf32> to vector<8x5xf32>
    %cst_21 = arith.constant dense<0.000000e+00> : vector<8x8xf32>
    %50 = tpu.matmul %48, %49, %cst_21 {dimension_numbers = #tpu.dot_dimension_numbers<[1], [1], [0], [0], [0, 0, 1, 0], [], []>, precision = #tpu.contract_precision<fp32>} : vector<8x5xf32>, vector<8x5xf32>, vector<8x8xf32> -> vector<8x8xf32>
    %cst_22 = arith.constant dense<0xFF800000> : vector<8xf32>
    %51 = vector.multi_reduction <maximumf>, %50, %cst_22 [1] : vector<8x8xf32> to vector<8xf32>
    %52 = vector.shape_cast %51 : vector<8xf32> to vector<8x1xf32>
    %53 = vector.broadcast %52 : vector<8x1xf32> to vector<8x8xf32>
    %54 = arith.subf %50, %53 : vector<8x8xf32>
    %55 = math.exp %54 : vector<8x8xf32>
    %cst_23 = arith.constant dense<0.000000e+00> : vector<8xf32>
    %56 = vector.multi_reduction <add>, %55, %cst_23 [1] : vector<8x8xf32> to vector<8xf32>
    %57 = vector.shape_cast %56 : vector<8xf32> to vector<8x1xf32>
    %58 = tpu.reciprocal %57 {approx = true} : vector<8x1xf32> -> vector<8x1xf32>
    %59 = vector.broadcast %58 : vector<8x1xf32> to vector<8x8xf32>
    %60 = arith.mulf %55, %59 : vector<8x8xf32>
    %61 = vector.extract_strided_slice %17 {offsets = [0, 10], sizes = [8, 5], strides = [1, 1]} : vector<8x20xf32> to vector<8x5xf32>
    %cst_24 = arith.constant dense<0.000000e+00> : vector<8x5xf32>
    %62 = tpu.matmul %60, %61, %cst_24 {dimension_numbers = #tpu.dot_dimension_numbers<[1], [0], [0], [1], [0, 0, 1, 1], [], []>, precision = #tpu.contract_precision<fp32>} : vector<8x8xf32>, vector<8x5xf32>, vector<8x5xf32> -> vector<8x5xf32>
    %63 = vector.extract_strided_slice %15 {offsets = [0, 15], sizes = [8, 5], strides = [1, 1]} : vector<8x20xf32> to vector<8x5xf32>
    %64 = vector.extract_strided_slice %16 {offsets = [0, 15], sizes = [8, 5], strides = [1, 1]} : vector<8x20xf32> to vector<8x5xf32>
    %cst_25 = arith.constant dense<0.000000e+00> : vector<8x8xf32>
    %65 = tpu.matmul %63, %64, %cst_25 {dimension_numbers = #tpu.dot_dimension_numbers<[1], [1], [0], [0], [0, 0, 1, 0], [], []>, precision = #tpu.contract_precision<fp32>} : vector<8x5xf32>, vector<8x5xf32>, vector<8x8xf32> -> vector<8x8xf32>
    %cst_26 = arith.constant dense<0xFF800000> : vector<8xf32>
    %66 = vector.multi_reduction <maximumf>, %65, %cst_26 [1] : vector<8x8xf32> to vector<8xf32>
    %67 = vector.shape_cast %66 : vector<8xf32> to vector<8x1xf32>
    %68 = vector.broadcast %67 : vector<8x1xf32> to vector<8x8xf32>
    %69 = arith.subf %65, %68 : vector<8x8xf32>
    %70 = math.exp %69 : vector<8x8xf32>
    %cst_27 = arith.constant dense<0.000000e+00> : vector<8xf32>
    %71 = vector.multi_reduction <add>, %70, %cst_27 [1] : vector<8x8xf32> to vector<8xf32>
    %72 = vector.shape_cast %71 : vector<8xf32> to vector<8x1xf32>
    %73 = tpu.reciprocal %72 {approx = true} : vector<8x1xf32> -> vector<8x1xf32>
    %74 = vector.broadcast %73 : vector<8x1xf32> to vector<8x8xf32>
    %75 = arith.mulf %70, %74 : vector<8x8xf32>
    %76 = vector.extract_strided_slice %17 {offsets = [0, 15], sizes = [8, 5], strides = [1, 1]} : vector<8x20xf32> to vector<8x5xf32>
    %cst_28 = arith.constant dense<0.000000e+00> : vector<8x5xf32>
    %77 = tpu.matmul %75, %76, %cst_28 {dimension_numbers = #tpu.dot_dimension_numbers<[1], [0], [0], [1], [0, 0, 1, 1], [], []>, precision = #tpu.contract_precision<fp32>} : vector<8x8xf32>, vector<8x5xf32>, vector<8x5xf32> -> vector<8x5xf32>
    %78 = tpu.concatenate %32, %47, %62, %77 in 1 : vector<8x5xf32>, vector<8x5xf32>, vector<8x5xf32>, vector<8x5xf32> -> vector<8x20xf32>
    %c0_29 = arith.constant 0 : index
    %c0_30 = arith.constant 0 : index
    %c0_31 = arith.constant 0 : index
    %79 = vector.load %arg6[%c0_29, %c0_30, %c0_31] : memref<2x20x20xf32, #tpu.memory_space<vmem>>, vector<1x20x20xf32>
    %80 = vector.shape_cast %79 : vector<1x20x20xf32> to vector<20x20xf32>
    %cst_32 = arith.constant dense<0.000000e+00> : vector<8x20xf32>
    %81 = tpu.matmul %78, %80, %cst_32 {dimension_numbers = #tpu.dot_dimension_numbers<[1], [0], [0], [1], [0, 0, 1, 1], [], []>, precision = #tpu.contract_precision<fp32>} : vector<8x20xf32>, vector<20x20xf32>, vector<8x20xf32> -> vector<8x20xf32>
    %c0_33 = arith.constant 0 : index
    %c0_34 = arith.constant 0 : index
    %c0_35 = arith.constant 0 : index
    %82 = vector.load %arg7[%c0_33, %c0_34, %c0_35] : memref<2x1x20xf32, #tpu.memory_space<vmem>>, vector<1x1x20xf32>
    %83 = vector.shape_cast %82 : vector<1x1x20xf32> to vector<1x20xf32>
    %84 = vector.broadcast %83 : vector<1x20xf32> to vector<8x20xf32>
    %85 = arith.addf %81, %84 : vector<8x20xf32>
    %86 = arith.addf %5, %85 : vector<8x20xf32>
    %c0_36 = arith.constant 0 : index
    %c0_37 = arith.constant 0 : index
    %c0_38 = arith.constant 0 : index
    %87 = vector.load %arg8[%c0_36, %c0_37, %c0_38] : memref<2x1x20xf32, #tpu.memory_space<vmem>>, vector<1x1x20xf32>
    %88 = vector.shape_cast %87 : vector<1x1x20xf32> to vector<1x20xf32>
    %c0_39 = arith.constant 0 : index
    %c0_40 = arith.constant 0 : index
    %c0_41 = arith.constant 0 : index
    %89 = vector.load %arg9[%c0_39, %c0_40, %c0_41] : memref<2x1x20xf32, #tpu.memory_space<vmem>>, vector<1x1x20xf32>
    %90 = vector.shape_cast %89 : vector<1x1x20xf32> to vector<1x20xf32>
    %cst_42 = arith.constant dense<0.000000e+00> : vector<8xf32>
    %91 = vector.multi_reduction <add>, %86, %cst_42 [1] : vector<8x20xf32> to vector<8xf32>
    %92 = vector.shape_cast %91 : vector<8xf32> to vector<8x1xf32>
    %cst_43 = arith.constant 2.000000e+01 : f32
    %93 = vector.broadcast %cst_43 : f32 to vector<8x1xf32>
    %94 = arith.divf %92, %93 : vector<8x1xf32>
    %95 = vector.broadcast %94 : vector<8x1xf32> to vector<8x20xf32>
    %96 = arith.subf %86, %95 : vector<8x20xf32>
    %97 = arith.mulf %96, %96 : vector<8x20xf32>
    %cst_44 = arith.constant dense<0.000000e+00> : vector<8xf32>
    %98 = vector.multi_reduction <add>, %97, %cst_44 [1] : vector<8x20xf32> to vector<8xf32>
    %99 = vector.shape_cast %98 : vector<8xf32> to vector<8x1xf32>
    %cst_45 = arith.constant 2.000000e+01 : f32
    %100 = vector.broadcast %cst_45 : f32 to vector<8x1xf32>
    %101 = arith.divf %99, %100 : vector<8x1xf32>
    %102 = vector.broadcast %94 : vector<8x1xf32> to vector<8x20xf32>
    %103 = arith.subf %86, %102 : vector<8x20xf32>
    %cst_46 = arith.constant 9.99999974E-6 : f32
    %104 = vector.broadcast %cst_46 : f32 to vector<8x1xf32>
    %105 = arith.addf %101, %104 : vector<8x1xf32>
    %106 = math.rsqrt %105 : vector<8x1xf32>
    %107 = vector.broadcast %106 : vector<8x1xf32> to vector<8x20xf32>
    %108 = arith.mulf %103, %107 : vector<8x20xf32>
    %109 = vector.broadcast %88 : vector<1x20xf32> to vector<8x20xf32>
    %110 = arith.mulf %108, %109 : vector<8x20xf32>
    %111 = vector.broadcast %90 : vector<1x20xf32> to vector<8x20xf32>
    %112 = arith.addf %110, %111 : vector<8x20xf32>
    %c0_47 = arith.constant 0 : index
    %c0_48 = arith.constant 0 : index
    %c0_49 = arith.constant 0 : index
    %113 = vector.load %arg12[%c0_47, %c0_48, %c0_49] : memref<2x20x32xf32, #tpu.memory_space<vmem>>, vector<1x20x32xf32>
    %114 = vector.shape_cast %113 : vector<1x20x32xf32> to vector<20x32xf32>
    %cst_50 = arith.constant dense<0.000000e+00> : vector<8x32xf32>
    %115 = tpu.matmul %112, %114, %cst_50 {dimension_numbers = #tpu.dot_dimension_numbers<[1], [0], [0], [1], [0, 0, 1, 1], [], []>, precision = #tpu.contract_precision<fp32>} : vector<8x20xf32>, vector<20x32xf32>, vector<8x32xf32> -> vector<8x32xf32>
    %c0_51 = arith.constant 0 : index
    %c0_52 = arith.constant 0 : index
    %c0_53 = arith.constant 0 : index
    %116 = vector.load %arg13[%c0_51, %c0_52, %c0_53] : memref<2x1x32xf32, #tpu.memory_space<vmem>>, vector<1x1x32xf32>
    %117 = vector.shape_cast %116 : vector<1x1x32xf32> to vector<1x32xf32>
    %118 = vector.broadcast %117 : vector<1x32xf32> to vector<8x32xf32>
    %119 = arith.addf %115, %118 : vector<8x32xf32>
    %cst_54 = arith.constant 0.000000e+00 : f32
    %120 = vector.broadcast %cst_54 : f32 to vector<8x32xf32>
    %121 = arith.maximumf %119, %120 : vector<8x32xf32>
    %c0_55 = arith.constant 0 : index
    %c0_56 = arith.constant 0 : index
    %c0_57 = arith.constant 0 : index
    %122 = vector.load %arg14[%c0_55, %c0_56, %c0_57] : memref<2x32x20xf32, #tpu.memory_space<vmem>>, vector<1x32x20xf32>
    %123 = vector.shape_cast %122 : vector<1x32x20xf32> to vector<32x20xf32>
    %cst_58 = arith.constant dense<0.000000e+00> : vector<8x20xf32>
    %124 = tpu.matmul %121, %123, %cst_58 {dimension_numbers = #tpu.dot_dimension_numbers<[1], [0], [0], [1], [0, 0, 1, 1], [], []>, precision = #tpu.contract_precision<fp32>} : vector<8x32xf32>, vector<32x20xf32>, vector<8x20xf32> -> vector<8x20xf32>
    %c0_59 = arith.constant 0 : index
    %c0_60 = arith.constant 0 : index
    %c0_61 = arith.constant 0 : index
    %125 = vector.load %arg15[%c0_59, %c0_60, %c0_61] : memref<2x1x20xf32, #tpu.memory_space<vmem>>, vector<1x1x20xf32>
    %126 = vector.shape_cast %125 : vector<1x1x20xf32> to vector<1x20xf32>
    %127 = vector.broadcast %126 : vector<1x20xf32> to vector<8x20xf32>
    %128 = arith.addf %124, %127 : vector<8x20xf32>
    %129 = arith.addf %112, %128 : vector<8x20xf32>
    %c0_62 = arith.constant 0 : index
    %c0_63 = arith.constant 0 : index
    %c0_64 = arith.constant 0 : index
    %130 = vector.load %arg10[%c0_62, %c0_63, %c0_64] : memref<2x1x20xf32, #tpu.memory_space<vmem>>, vector<1x1x20xf32>
    %131 = vector.shape_cast %130 : vector<1x1x20xf32> to vector<1x20xf32>
    %c0_65 = arith.constant 0 : index
    %c0_66 = arith.constant 0 : index
    %c0_67 = arith.constant 0 : index
    %132 = vector.load %arg11[%c0_65, %c0_66, %c0_67] : memref<2x1x20xf32, #tpu.memory_space<vmem>>, vector<1x1x20xf32>
    %133 = vector.shape_cast %132 : vector<1x1x20xf32> to vector<1x20xf32>
    %cst_68 = arith.constant dense<0.000000e+00> : vector<8xf32>
    %134 = vector.multi_reduction <add>, %129, %cst_68 [1] : vector<8x20xf32> to vector<8xf32>
    %135 = vector.shape_cast %134 : vector<8xf32> to vector<8x1xf32>
    %cst_69 = arith.constant 2.000000e+01 : f32
    %136 = vector.broadcast %cst_69 : f32 to vector<8x1xf32>
    %137 = arith.divf %135, %136 : vector<8x1xf32>
    %138 = vector.broadcast %137 : vector<8x1xf32> to vector<8x20xf32>
    %139 = arith.subf %129, %138 : vector<8x20xf32>
    %140 = arith.mulf %139, %139 : vector<8x20xf32>
    %cst_70 = arith.constant dense<0.000000e+00> : vector<8xf32>
    %141 = vector.multi_reduction <add>, %140, %cst_70 [1] : vector<8x20xf32> to vector<8xf32>
    %142 = vector.shape_cast %141 : vector<8xf32> to vector<8x1xf32>
    %cst_71 = arith.constant 2.000000e+01 : f32
    %143 = vector.broadcast %cst_71 : f32 to vector<8x1xf32>
    %144 = arith.divf %142, %143 : vector<8x1xf32>
    %145 = vector.broadcast %137 : vector<8x1xf32> to vector<8x20xf32>
    %146 = arith.subf %129, %145 : vector<8x20xf32>
    %cst_72 = arith.constant 9.99999974E-6 : f32
    %147 = vector.broadcast %cst_72 : f32 to vector<8x1xf32>
    %148 = arith.addf %144, %147 : vector<8x1xf32>
    %149 = math.rsqrt %148 : vector<8x1xf32>
    %150 = vector.broadcast %149 : vector<8x1xf32> to vector<8x20xf32>
    %151 = arith.mulf %146, %150 : vector<8x20xf32>
    %152 = vector.broadcast %131 : vector<1x20xf32> to vector<8x20xf32>
    %153 = arith.mulf %151, %152 : vector<8x20xf32>
    %154 = vector.broadcast %133 : vector<1x20xf32> to vector<8x20xf32>
    %155 = arith.addf %153, %154 : vector<8x20xf32>
    %c1 = arith.constant 1 : index
    %c0_73 = arith.constant 0 : index
    %c0_74 = arith.constant 0 : index
    %156 = vector.load %arg4[%c1, %c0_73, %c0_74] : memref<2x20x60xf32, #tpu.memory_space<vmem>>, vector<1x20x60xf32>
    %157 = vector.shape_cast %156 : vector<1x20x60xf32> to vector<20x60xf32>
    %cst_75 = arith.constant dense<0.000000e+00> : vector<8x60xf32>
    %158 = tpu.matmul %155, %157, %cst_75 {dimension_numbers = #tpu.dot_dimension_numbers<[1], [0], [0], [1], [0, 0, 1, 1], [], []>, precision = #tpu.contract_precision<fp32>} : vector<8x20xf32>, vector<20x60xf32>, vector<8x60xf32> -> vector<8x60xf32>
    %c1_76 = arith.constant 1 : index
    %c0_77 = arith.constant 0 : index
    %c0_78 = arith.constant 0 : index
    %159 = vector.load %arg5[%c1_76, %c0_77, %c0_78] : memref<2x1x60xf32, #tpu.memory_space<vmem>>, vector<1x1x60xf32>
    %160 = vector.shape_cast %159 : vector<1x1x60xf32> to vector<1x60xf32>
    %161 = vector.broadcast %160 : vector<1x60xf32> to vector<8x60xf32>
    %162 = arith.addf %158, %161 : vector<8x60xf32>
    %163 = vector.extract_strided_slice %162 {offsets = [0, 0], sizes = [8, 20], strides = [1, 1]} : vector<8x60xf32> to vector<8x20xf32>
    %cst_79 = arith.constant 0.44721359 : f32
    %164 = vector.broadcast %cst_79 : f32 to vector<8x20xf32>
    %165 = arith.mulf %163, %164 : vector<8x20xf32>
    %166 = vector.extract_strided_slice %162 {offsets = [0, 20], sizes = [8, 20], strides = [1, 1]} : vector<8x60xf32> to vector<8x20xf32>
    %167 = vector.extract_strided_slice %162 {offsets = [0, 40], sizes = [8, 20], strides = [1, 1]} : vector<8x60xf32> to vector<8x20xf32>
    %168 = vector.extract_strided_slice %165 {offsets = [0, 0], sizes = [8, 5], strides = [1, 1]} : vector<8x20xf32> to vector<8x5xf32>
    %169 = vector.extract_strided_slice %166 {offsets = [0, 0], sizes = [8, 5], strides = [1, 1]} : vector<8x20xf32> to vector<8x5xf32>
    %cst_80 = arith.constant dense<0.000000e+00> : vector<8x8xf32>
    %170 = tpu.matmul %168, %169, %cst_80 {dimension_numbers = #tpu.dot_dimension_numbers<[1], [1], [0], [0], [0, 0, 1, 0], [], []>, precision = #tpu.contract_precision<fp32>} : vector<8x5xf32>, vector<8x5xf32>, vector<8x8xf32> -> vector<8x8xf32>
    %cst_81 = arith.constant dense<0xFF800000> : vector<8xf32>
    %171 = vector.multi_reduction <maximumf>, %170, %cst_81 [1] : vector<8x8xf32> to vector<8xf32>
    %172 = vector.shape_cast %171 : vector<8xf32> to vector<8x1xf32>
    %173 = vector.broadcast %172 : vector<8x1xf32> to vector<8x8xf32>
    %174 = arith.subf %170, %173 : vector<8x8xf32>
    %175 = math.exp %174 : vector<8x8xf32>
    %cst_82 = arith.constant dense<0.000000e+00> : vector<8xf32>
    %176 = vector.multi_reduction <add>, %175, %cst_82 [1] : vector<8x8xf32> to vector<8xf32>
    %177 = vector.shape_cast %176 : vector<8xf32> to vector<8x1xf32>
    %178 = tpu.reciprocal %177 {approx = true} : vector<8x1xf32> -> vector<8x1xf32>
    %179 = vector.broadcast %178 : vector<8x1xf32> to vector<8x8xf32>
    %180 = arith.mulf %175, %179 : vector<8x8xf32>
    %181 = vector.extract_strided_slice %167 {offsets = [0, 0], sizes = [8, 5], strides = [1, 1]} : vector<8x20xf32> to vector<8x5xf32>
    %cst_83 = arith.constant dense<0.000000e+00> : vector<8x5xf32>
    %182 = tpu.matmul %180, %181, %cst_83 {dimension_numbers = #tpu.dot_dimension_numbers<[1], [0], [0], [1], [0, 0, 1, 1], [], []>, precision = #tpu.contract_precision<fp32>} : vector<8x8xf32>, vector<8x5xf32>, vector<8x5xf32> -> vector<8x5xf32>
    %183 = vector.extract_strided_slice %165 {offsets = [0, 5], sizes = [8, 5], strides = [1, 1]} : vector<8x20xf32> to vector<8x5xf32>
    %184 = vector.extract_strided_slice %166 {offsets = [0, 5], sizes = [8, 5], strides = [1, 1]} : vector<8x20xf32> to vector<8x5xf32>
    %cst_84 = arith.constant dense<0.000000e+00> : vector<8x8xf32>
    %185 = tpu.matmul %183, %184, %cst_84 {dimension_numbers = #tpu.dot_dimension_numbers<[1], [1], [0], [0], [0, 0, 1, 0], [], []>, precision = #tpu.contract_precision<fp32>} : vector<8x5xf32>, vector<8x5xf32>, vector<8x8xf32> -> vector<8x8xf32>
    %cst_85 = arith.constant dense<0xFF800000> : vector<8xf32>
    %186 = vector.multi_reduction <maximumf>, %185, %cst_85 [1] : vector<8x8xf32> to vector<8xf32>
    %187 = vector.shape_cast %186 : vector<8xf32> to vector<8x1xf32>
    %188 = vector.broadcast %187 : vector<8x1xf32> to vector<8x8xf32>
    %189 = arith.subf %185, %188 : vector<8x8xf32>
    %190 = math.exp %189 : vector<8x8xf32>
    %cst_86 = arith.constant dense<0.000000e+00> : vector<8xf32>
    %191 = vector.multi_reduction <add>, %190, %cst_86 [1] : vector<8x8xf32> to vector<8xf32>
    %192 = vector.shape_cast %191 : vector<8xf32> to vector<8x1xf32>
    %193 = tpu.reciprocal %192 {approx = true} : vector<8x1xf32> -> vector<8x1xf32>
    %194 = vector.broadcast %193 : vector<8x1xf32> to vector<8x8xf32>
    %195 = arith.mulf %190, %194 : vector<8x8xf32>
    %196 = vector.extract_strided_slice %167 {offsets = [0, 5], sizes = [8, 5], strides = [1, 1]} : vector<8x20xf32> to vector<8x5xf32>
    %cst_87 = arith.constant dense<0.000000e+00> : vector<8x5xf32>
    %197 = tpu.matmul %195, %196, %cst_87 {dimension_numbers = #tpu.dot_dimension_numbers<[1], [0], [0], [1], [0, 0, 1, 1], [], []>, precision = #tpu.contract_precision<fp32>} : vector<8x8xf32>, vector<8x5xf32>, vector<8x5xf32> -> vector<8x5xf32>
    %198 = vector.extract_strided_slice %165 {offsets = [0, 10], sizes = [8, 5], strides = [1, 1]} : vector<8x20xf32> to vector<8x5xf32>
    %199 = vector.extract_strided_slice %166 {offsets = [0, 10], sizes = [8, 5], strides = [1, 1]} : vector<8x20xf32> to vector<8x5xf32>
    %cst_88 = arith.constant dense<0.000000e+00> : vector<8x8xf32>
    %200 = tpu.matmul %198, %199, %cst_88 {dimension_numbers = #tpu.dot_dimension_numbers<[1], [1], [0], [0], [0, 0, 1, 0], [], []>, precision = #tpu.contract_precision<fp32>} : vector<8x5xf32>, vector<8x5xf32>, vector<8x8xf32> -> vector<8x8xf32>
    %cst_89 = arith.constant dense<0xFF800000> : vector<8xf32>
    %201 = vector.multi_reduction <maximumf>, %200, %cst_89 [1] : vector<8x8xf32> to vector<8xf32>
    %202 = vector.shape_cast %201 : vector<8xf32> to vector<8x1xf32>
    %203 = vector.broadcast %202 : vector<8x1xf32> to vector<8x8xf32>
    %204 = arith.subf %200, %203 : vector<8x8xf32>
    %205 = math.exp %204 : vector<8x8xf32>
    %cst_90 = arith.constant dense<0.000000e+00> : vector<8xf32>
    %206 = vector.multi_reduction <add>, %205, %cst_90 [1] : vector<8x8xf32> to vector<8xf32>
    %207 = vector.shape_cast %206 : vector<8xf32> to vector<8x1xf32>
    %208 = tpu.reciprocal %207 {approx = true} : vector<8x1xf32> -> vector<8x1xf32>
    %209 = vector.broadcast %208 : vector<8x1xf32> to vector<8x8xf32>
    %210 = arith.mulf %205, %209 : vector<8x8xf32>
    %211 = vector.extract_strided_slice %167 {offsets = [0, 10], sizes = [8, 5], strides = [1, 1]} : vector<8x20xf32> to vector<8x5xf32>
    %cst_91 = arith.constant dense<0.000000e+00> : vector<8x5xf32>
    %212 = tpu.matmul %210, %211, %cst_91 {dimension_numbers = #tpu.dot_dimension_numbers<[1], [0], [0], [1], [0, 0, 1, 1], [], []>, precision = #tpu.contract_precision<fp32>} : vector<8x8xf32>, vector<8x5xf32>, vector<8x5xf32> -> vector<8x5xf32>
    %213 = vector.extract_strided_slice %165 {offsets = [0, 15], sizes = [8, 5], strides = [1, 1]} : vector<8x20xf32> to vector<8x5xf32>
    %214 = vector.extract_strided_slice %166 {offsets = [0, 15], sizes = [8, 5], strides = [1, 1]} : vector<8x20xf32> to vector<8x5xf32>
    %cst_92 = arith.constant dense<0.000000e+00> : vector<8x8xf32>
    %215 = tpu.matmul %213, %214, %cst_92 {dimension_numbers = #tpu.dot_dimension_numbers<[1], [1], [0], [0], [0, 0, 1, 0], [], []>, precision = #tpu.contract_precision<fp32>} : vector<8x5xf32>, vector<8x5xf32>, vector<8x8xf32> -> vector<8x8xf32>
    %cst_93 = arith.constant dense<0xFF800000> : vector<8xf32>
    %216 = vector.multi_reduction <maximumf>, %215, %cst_93 [1] : vector<8x8xf32> to vector<8xf32>
    %217 = vector.shape_cast %216 : vector<8xf32> to vector<8x1xf32>
    %218 = vector.broadcast %217 : vector<8x1xf32> to vector<8x8xf32>
    %219 = arith.subf %215, %218 : vector<8x8xf32>
    %220 = math.exp %219 : vector<8x8xf32>
    %cst_94 = arith.constant dense<0.000000e+00> : vector<8xf32>
    %221 = vector.multi_reduction <add>, %220, %cst_94 [1] : vector<8x8xf32> to vector<8xf32>
    %222 = vector.shape_cast %221 : vector<8xf32> to vector<8x1xf32>
    %223 = tpu.reciprocal %222 {approx = true} : vector<8x1xf32> -> vector<8x1xf32>
    %224 = vector.broadcast %223 : vector<8x1xf32> to vector<8x8xf32>
    %225 = arith.mulf %220, %224 : vector<8x8xf32>
    %226 = vector.extract_strided_slice %167 {offsets = [0, 15], sizes = [8, 5], strides = [1, 1]} : vector<8x20xf32> to vector<8x5xf32>
    %cst_95 = arith.constant dense<0.000000e+00> : vector<8x5xf32>
    %227 = tpu.matmul %225, %226, %cst_95 {dimension_numbers = #tpu.dot_dimension_numbers<[1], [0], [0], [1], [0, 0, 1, 1], [], []>, precision = #tpu.contract_precision<fp32>} : vector<8x8xf32>, vector<8x5xf32>, vector<8x5xf32> -> vector<8x5xf32>
    %228 = tpu.concatenate %182, %197, %212, %227 in 1 : vector<8x5xf32>, vector<8x5xf32>, vector<8x5xf32>, vector<8x5xf32> -> vector<8x20xf32>
    %c1_96 = arith.constant 1 : index
    %c0_97 = arith.constant 0 : index
    %c0_98 = arith.constant 0 : index
    %229 = vector.load %arg6[%c1_96, %c0_97, %c0_98] : memref<2x20x20xf32, #tpu.memory_space<vmem>>, vector<1x20x20xf32>
    %230 = vector.shape_cast %229 : vector<1x20x20xf32> to vector<20x20xf32>
    %cst_99 = arith.constant dense<0.000000e+00> : vector<8x20xf32>
    %231 = tpu.matmul %228, %230, %cst_99 {dimension_numbers = #tpu.dot_dimension_numbers<[1], [0], [0], [1], [0, 0, 1, 1], [], []>, precision = #tpu.contract_precision<fp32>} : vector<8x20xf32>, vector<20x20xf32>, vector<8x20xf32> -> vector<8x20xf32>
    %c1_100 = arith.constant 1 : index
    %c0_101 = arith.constant 0 : index
    %c0_102 = arith.constant 0 : index
    %232 = vector.load %arg7[%c1_100, %c0_101, %c0_102] : memref<2x1x20xf32, #tpu.memory_space<vmem>>, vector<1x1x20xf32>
    %233 = vector.shape_cast %232 : vector<1x1x20xf32> to vector<1x20xf32>
    %234 = vector.broadcast %233 : vector<1x20xf32> to vector<8x20xf32>
    %235 = arith.addf %231, %234 : vector<8x20xf32>
    %236 = arith.addf %155, %235 : vector<8x20xf32>
    %c1_103 = arith.constant 1 : index
    %c0_104 = arith.constant 0 : index
    %c0_105 = arith.constant 0 : index
    %237 = vector.load %arg8[%c1_103, %c0_104, %c0_105] : memref<2x1x20xf32, #tpu.memory_space<vmem>>, vector<1x1x20xf32>
    %238 = vector.shape_cast %237 : vector<1x1x20xf32> to vector<1x20xf32>
    %c1_106 = arith.constant 1 : index
    %c0_107 = arith.constant 0 : index
    %c0_108 = arith.constant 0 : index
    %239 = vector.load %arg9[%c1_106, %c0_107, %c0_108] : memref<2x1x20xf32, #tpu.memory_space<vmem>>, vector<1x1x20xf32>
    %240 = vector.shape_cast %239 : vector<1x1x20xf32> to vector<1x20xf32>
    %cst_109 = arith.constant dense<0.000000e+00> : vector<8xf32>
    %241 = vector.multi_reduction <add>, %236, %cst_109 [1] : vector<8x20xf32> to vector<8xf32>
    %242 = vector.shape_cast %241 : vector<8xf32> to vector<8x1xf32>
    %cst_110 = arith.constant 2.000000e+01 : f32
    %243 = vector.broadcast %cst_110 : f32 to vector<8x1xf32>
    %244 = arith.divf %242, %243 : vector<8x1xf32>
    %245 = vector.broadcast %244 : vector<8x1xf32> to vector<8x20xf32>
    %246 = arith.subf %236, %245 : vector<8x20xf32>
    %247 = arith.mulf %246, %246 : vector<8x20xf32>
    %cst_111 = arith.constant dense<0.000000e+00> : vector<8xf32>
    %248 = vector.multi_reduction <add>, %247, %cst_111 [1] : vector<8x20xf32> to vector<8xf32>
    %249 = vector.shape_cast %248 : vector<8xf32> to vector<8x1xf32>
    %cst_112 = arith.constant 2.000000e+01 : f32
    %250 = vector.broadcast %cst_112 : f32 to vector<8x1xf32>
    %251 = arith.divf %249, %250 : vector<8x1xf32>
    %252 = vector.broadcast %244 : vector<8x1xf32> to vector<8x20xf32>
    %253 = arith.subf %236, %252 : vector<8x20xf32>
    %cst_113 = arith.constant 9.99999974E-6 : f32
    %254 = vector.broadcast %cst_113 : f32 to vector<8x1xf32>
    %255 = arith.addf %251, %254 : vector<8x1xf32>
    %256 = math.rsqrt %255 : vector<8x1xf32>
    %257 = vector.broadcast %256 : vector<8x1xf32> to vector<8x20xf32>
    %258 = arith.mulf %253, %257 : vector<8x20xf32>
    %259 = vector.broadcast %238 : vector<1x20xf32> to vector<8x20xf32>
    %260 = arith.mulf %258, %259 : vector<8x20xf32>
    %261 = vector.broadcast %240 : vector<1x20xf32> to vector<8x20xf32>
    %262 = arith.addf %260, %261 : vector<8x20xf32>
    %c1_114 = arith.constant 1 : index
    %c0_115 = arith.constant 0 : index
    %c0_116 = arith.constant 0 : index
    %263 = vector.load %arg12[%c1_114, %c0_115, %c0_116] : memref<2x20x32xf32, #tpu.memory_space<vmem>>, vector<1x20x32xf32>
    %264 = vector.shape_cast %263 : vector<1x20x32xf32> to vector<20x32xf32>
    %cst_117 = arith.constant dense<0.000000e+00> : vector<8x32xf32>
    %265 = tpu.matmul %262, %264, %cst_117 {dimension_numbers = #tpu.dot_dimension_numbers<[1], [0], [0], [1], [0, 0, 1, 1], [], []>, precision = #tpu.contract_precision<fp32>} : vector<8x20xf32>, vector<20x32xf32>, vector<8x32xf32> -> vector<8x32xf32>
    %c1_118 = arith.constant 1 : index
    %c0_119 = arith.constant 0 : index
    %c0_120 = arith.constant 0 : index
    %266 = vector.load %arg13[%c1_118, %c0_119, %c0_120] : memref<2x1x32xf32, #tpu.memory_space<vmem>>, vector<1x1x32xf32>
    %267 = vector.shape_cast %266 : vector<1x1x32xf32> to vector<1x32xf32>
    %268 = vector.broadcast %267 : vector<1x32xf32> to vector<8x32xf32>
    %269 = arith.addf %265, %268 : vector<8x32xf32>
    %cst_121 = arith.constant 0.000000e+00 : f32
    %270 = vector.broadcast %cst_121 : f32 to vector<8x32xf32>
    %271 = arith.maximumf %269, %270 : vector<8x32xf32>
    %c1_122 = arith.constant 1 : index
    %c0_123 = arith.constant 0 : index
    %c0_124 = arith.constant 0 : index
    %272 = vector.load %arg14[%c1_122, %c0_123, %c0_124] : memref<2x32x20xf32, #tpu.memory_space<vmem>>, vector<1x32x20xf32>
    %273 = vector.shape_cast %272 : vector<1x32x20xf32> to vector<32x20xf32>
    %cst_125 = arith.constant dense<0.000000e+00> : vector<8x20xf32>
    %274 = tpu.matmul %271, %273, %cst_125 {dimension_numbers = #tpu.dot_dimension_numbers<[1], [0], [0], [1], [0, 0, 1, 1], [], []>, precision = #tpu.contract_precision<fp32>} : vector<8x32xf32>, vector<32x20xf32>, vector<8x20xf32> -> vector<8x20xf32>
    %c1_126 = arith.constant 1 : index
    %c0_127 = arith.constant 0 : index
    %c0_128 = arith.constant 0 : index
    %275 = vector.load %arg15[%c1_126, %c0_127, %c0_128] : memref<2x1x20xf32, #tpu.memory_space<vmem>>, vector<1x1x20xf32>
    %276 = vector.shape_cast %275 : vector<1x1x20xf32> to vector<1x20xf32>
    %277 = vector.broadcast %276 : vector<1x20xf32> to vector<8x20xf32>
    %278 = arith.addf %274, %277 : vector<8x20xf32>
    %279 = arith.addf %262, %278 : vector<8x20xf32>
    %c1_129 = arith.constant 1 : index
    %c0_130 = arith.constant 0 : index
    %c0_131 = arith.constant 0 : index
    %280 = vector.load %arg10[%c1_129, %c0_130, %c0_131] : memref<2x1x20xf32, #tpu.memory_space<vmem>>, vector<1x1x20xf32>
    %281 = vector.shape_cast %280 : vector<1x1x20xf32> to vector<1x20xf32>
    %c1_132 = arith.constant 1 : index
    %c0_133 = arith.constant 0 : index
    %c0_134 = arith.constant 0 : index
    %282 = vector.load %arg11[%c1_132, %c0_133, %c0_134] : memref<2x1x20xf32, #tpu.memory_space<vmem>>, vector<1x1x20xf32>
    %283 = vector.shape_cast %282 : vector<1x1x20xf32> to vector<1x20xf32>
    %cst_135 = arith.constant dense<0.000000e+00> : vector<8xf32>
    %284 = vector.multi_reduction <add>, %279, %cst_135 [1] : vector<8x20xf32> to vector<8xf32>
    %285 = vector.shape_cast %284 : vector<8xf32> to vector<8x1xf32>
    %cst_136 = arith.constant 2.000000e+01 : f32
    %286 = vector.broadcast %cst_136 : f32 to vector<8x1xf32>
    %287 = arith.divf %285, %286 : vector<8x1xf32>
    %288 = vector.broadcast %287 : vector<8x1xf32> to vector<8x20xf32>
    %289 = arith.subf %279, %288 : vector<8x20xf32>
    %290 = arith.mulf %289, %289 : vector<8x20xf32>
    %cst_137 = arith.constant dense<0.000000e+00> : vector<8xf32>
    %291 = vector.multi_reduction <add>, %290, %cst_137 [1] : vector<8x20xf32> to vector<8xf32>
    %292 = vector.shape_cast %291 : vector<8xf32> to vector<8x1xf32>
    %cst_138 = arith.constant 2.000000e+01 : f32
    %293 = vector.broadcast %cst_138 : f32 to vector<8x1xf32>
    %294 = arith.divf %292, %293 : vector<8x1xf32>
    %295 = vector.broadcast %287 : vector<8x1xf32> to vector<8x20xf32>
    %296 = arith.subf %279, %295 : vector<8x20xf32>
    %cst_139 = arith.constant 9.99999974E-6 : f32
    %297 = vector.broadcast %cst_139 : f32 to vector<8x1xf32>
    %298 = arith.addf %294, %297 : vector<8x1xf32>
    %299 = math.rsqrt %298 : vector<8x1xf32>
    %300 = vector.broadcast %299 : vector<8x1xf32> to vector<8x20xf32>
    %301 = arith.mulf %296, %300 : vector<8x20xf32>
    %302 = vector.broadcast %281 : vector<1x20xf32> to vector<8x20xf32>
    %303 = arith.mulf %301, %302 : vector<8x20xf32>
    %304 = vector.broadcast %283 : vector<1x20xf32> to vector<8x20xf32>
    %305 = arith.addf %303, %304 : vector<8x20xf32>
    %306 = vector.extract_strided_slice %305 {offsets = [0, 0], sizes = [1, 20], strides = [1, 1]} : vector<8x20xf32> to vector<1x20xf32>
    %c0_140 = arith.constant 0 : index
    %c0_141 = arith.constant 0 : index
    %307 = vector.load %arg16[%c0_140, %c0_141] : memref<20x1xf32, #tpu.memory_space<vmem>>, vector<20x1xf32>
    %cst_142 = arith.constant dense<0.000000e+00> : vector<1x1xf32>
    %308 = tpu.matmul %306, %307, %cst_142 {dimension_numbers = #tpu.dot_dimension_numbers<[1], [0], [0], [1], [0, 0, 1, 1], [], []>, precision = #tpu.contract_precision<fp32>} : vector<1x20xf32>, vector<20x1xf32>, vector<1x1xf32> -> vector<1x1xf32>
    %c0_143 = arith.constant 0 : index
    %c0_144 = arith.constant 0 : index
    %309 = vector.load %arg17[%c0_143, %c0_144] : memref<1x1xf32, #tpu.memory_space<vmem>>, vector<1x1xf32>
    %310 = arith.addf %308, %309 : vector<1x1xf32>
    %cst_145 = arith.constant 0.000000e+00 : f32
    %311 = vector.broadcast %cst_145 : f32 to vector<1x1xf32>
    %312 = arith.subf %311, %310 : vector<1x1xf32>
    %313 = math.exp %312 : vector<1x1xf32>
    %cst_146 = arith.constant 1.000000e+00 : f32
    %314 = vector.broadcast %cst_146 : f32 to vector<1x1xf32>
    %315 = arith.addf %314, %313 : vector<1x1xf32>
    %cst_147 = arith.constant 1.000000e+00 : f32
    %316 = vector.broadcast %cst_147 : f32 to vector<1x1xf32>
    %317 = arith.divf %316, %315 : vector<1x1xf32>
    %318 = vector.shape_cast %317 : vector<1x1xf32> to vector<1x1x1xf32>
    %c0_148 = arith.constant 0 : index
    %c0_149 = arith.constant 0 : index
    %c0_150 = arith.constant 0 : index
    %319 = vector.load %arg18[%c0_148, %c0_149, %c0_150] : memref<1x1x1xf32, #tpu.memory_space<vmem>>, vector<1x1x1xf32>
    tpu.vector_store %arg18[%c0_148, %c0_149, %c0_150], %318 {strides = array<i32>} : memref<1x1x1xf32, #tpu.memory_space<vmem>>, vector<1x1x1xf32>,
    return
  }
  func.func @transform_0(%arg0: i32) -> (i32, i32) {
    %c0_i32 = arith.constant 0 : i32
    %c0_i32_0 = arith.constant 0 : i32
    return %arg0, %c0_i32 : i32, i32
  }
  func.func @transform_1(%arg0: i32) -> (i32, i32) {
    %c0_i32 = arith.constant 0 : i32
    %c0_i32_0 = arith.constant 0 : i32
    %c0_i32_1 = arith.constant 0 : i32
    return %c0_i32, %c0_i32_0 : i32, i32
  }
  func.func @transform_2(%arg0: i32) -> (i32, i32) {
    %c0_i32 = arith.constant 0 : i32
    %c0_i32_0 = arith.constant 0 : i32
    %c0_i32_1 = arith.constant 0 : i32
    return %c0_i32, %c0_i32_0 : i32, i32
  }
  func.func @transform_3(%arg0: i32) -> (i32, i32, i32) {
    %c0_i32 = arith.constant 0 : i32
    %c0_i32_0 = arith.constant 0 : i32
    %c0_i32_1 = arith.constant 0 : i32
    %c0_i32_2 = arith.constant 0 : i32
    return %c0_i32, %c0_i32_0, %c0_i32_1 : i32, i32, i32
  }
  func.func @transform_4(%arg0: i32) -> (i32, i32, i32) {
    %c0_i32 = arith.constant 0 : i32
    %c0_i32_0 = arith.constant 0 : i32
    %c0_i32_1 = arith.constant 0 : i32
    %c0_i32_2 = arith.constant 0 : i32
    return %c0_i32, %c0_i32_0, %c0_i32_1 : i32, i32, i32
  }
  func.func @transform_5(%arg0: i32) -> (i32, i32, i32) {
    %c0_i32 = arith.constant 0 : i32
    %c0_i32_0 = arith.constant 0 : i32
    %c0_i32_1 = arith.constant 0 : i32
    %c0_i32_2 = arith.constant 0 : i32
    return %c0_i32, %c0_i32_0, %c0_i32_1 : i32, i32, i32
  }
  func.func @transform_6(%arg0: i32) -> (i32, i32, i32) {
    %c0_i32 = arith.constant 0 : i32
    %c0_i32_0 = arith.constant 0 : i32
    %c0_i32_1 = arith.constant 0 : i32
    %c0_i32_2 = arith.constant 0 : i32
    return %c0_i32, %c0_i32_0, %c0_i32_1 : i32, i32, i32
  }
  func.func @transform_7(%arg0: i32) -> (i32, i32, i32) {
    %c0_i32 = arith.constant 0 : i32
    %c0_i32_0 = arith.constant 0 : i32
    %c0_i32_1 = arith.constant 0 : i32
    %c0_i32_2 = arith.constant 0 : i32
    return %c0_i32, %c0_i32_0, %c0_i32_1 : i32, i32, i32
  }
  func.func @transform_8(%arg0: i32) -> (i32, i32, i32) {
    %c0_i32 = arith.constant 0 : i32
    %c0_i32_0 = arith.constant 0 : i32
    %c0_i32_1 = arith.constant 0 : i32
    %c0_i32_2 = arith.constant 0 : i32
    return %c0_i32, %c0_i32_0, %c0_i32_1 : i32, i32, i32
  }
  func.func @transform_9(%arg0: i32) -> (i32, i32, i32) {
    %c0_i32 = arith.constant 0 : i32
    %c0_i32_0 = arith.constant 0 : i32
    %c0_i32_1 = arith.constant 0 : i32
    %c0_i32_2 = arith.constant 0 : i32
    return %c0_i32, %c0_i32_0, %c0_i32_1 : i32, i32, i32
  }
  func.func @transform_10(%arg0: i32) -> (i32, i32, i32) {
    %c0_i32 = arith.constant 0 : i32
    %c0_i32_0 = arith.constant 0 : i32
    %c0_i32_1 = arith.constant 0 : i32
    %c0_i32_2 = arith.constant 0 : i32
    return %c0_i32, %c0_i32_0, %c0_i32_1 : i32, i32, i32
  }
  func.func @transform_11(%arg0: i32) -> (i32, i32, i32) {
    %c0_i32 = arith.constant 0 : i32
    %c0_i32_0 = arith.constant 0 : i32
    %c0_i32_1 = arith.constant 0 : i32
    %c0_i32_2 = arith.constant 0 : i32
    return %c0_i32, %c0_i32_0, %c0_i32_1 : i32, i32, i32
  }
  func.func @transform_12(%arg0: i32) -> (i32, i32, i32) {
    %c0_i32 = arith.constant 0 : i32
    %c0_i32_0 = arith.constant 0 : i32
    %c0_i32_1 = arith.constant 0 : i32
    %c0_i32_2 = arith.constant 0 : i32
    return %c0_i32, %c0_i32_0, %c0_i32_1 : i32, i32, i32
  }
  func.func @transform_13(%arg0: i32) -> (i32, i32, i32) {
    %c0_i32 = arith.constant 0 : i32
    %c0_i32_0 = arith.constant 0 : i32
    %c0_i32_1 = arith.constant 0 : i32
    %c0_i32_2 = arith.constant 0 : i32
    return %c0_i32, %c0_i32_0, %c0_i32_1 : i32, i32, i32
  }
  func.func @transform_14(%arg0: i32) -> (i32, i32, i32) {
    %c0_i32 = arith.constant 0 : i32
    %c0_i32_0 = arith.constant 0 : i32
    %c0_i32_1 = arith.constant 0 : i32
    %c0_i32_2 = arith.constant 0 : i32
    return %c0_i32, %c0_i32_0, %c0_i32_1 : i32, i32, i32
  }
  func.func @transform_15(%arg0: i32) -> (i32, i32) {
    %c0_i32 = arith.constant 0 : i32
    %c0_i32_0 = arith.constant 0 : i32
    %c0_i32_1 = arith.constant 0 : i32
    return %c0_i32, %c0_i32_0 : i32, i32
  }
  func.func @transform_16(%arg0: i32) -> (i32, i32) {
    %c0_i32 = arith.constant 0 : i32
    %c0_i32_0 = arith.constant 0 : i32
    %c0_i32_1 = arith.constant 0 : i32
    return %c0_i32, %c0_i32_0 : i32, i32
  }
  func.func @transform_17(%arg0: i32) -> (i32, i32, i32) {
    %c0_i32 = arith.constant 0 : i32
    %c0_i32_0 = arith.constant 0 : i32
    %c0_i32_1 = arith.constant 0 : i32
    return %arg0, %c0_i32, %c0_i32_0 : i32, i32, i32
  }
}

</mosaic_0001>

<bundles_post_ra>
// kernel: transformer_classifier.1
= control target key start
LH: loop header
LB: loop body
LE: loop exit
PB: predicated region body
PF: predicated region fallthrough
CT: control target
= control target key end

     0   :  { %s14691_s26 = smov 0   ;;  %s15939_s0 = inlined_call_operand.vmem [shape: f32[16,16], index: 0, kind: input, shape index: {}]   ;;  %s15940_s1 = inlined_call_operand.vmem [shape: f32[16,20], index: 1, kind: input, shape index: {}]   ;;  %s15941_s2 = inlined_call_operand.vmem [shape: f32[1,20], index: 2, kind: input, shape index: {}]   ;;  %s15942_s3 = inlined_call_operand.vmem [shape: f32[2,20,60], index: 3, kind: input, shape index: {}]   ;;  %s15943_s4 = inlined_call_operand.vmem [shape: f32[2,1,60], index: 4, kind: input, shape index: {}]   ;;  %s15944_s5 = inlined_call_operand.vmem [shape: f32[2,20,20], index: 5, kind: input, shape index: {}]   ;;  %s15945_s6 = inlined_call_operand.vmem [shape: f32[2,1,20], index: 6, kind: input, shape index: {}]   ;;  %s15946_s7 = inlined_call_operand.vmem [shape: f32[2,1,20], index: 7, kind: input, shape index: {}]   ;;  %s15947_s8 = inlined_call_operand.vmem [shape: f32[2,1,20], index: 8, kind: input, shape index: {}]   ;;  %s15948_s9 = inlined_call_operand.vmem [shape: f32[2,1,20], index: 9, kind: input, shape index: {}]   ;;  %s15949_s10 = inlined_call_operand.vmem [shape: f32[2,1,20], index: 10, kind: input, shape index: {}]   ;;  %s15950_s11 = inlined_call_operand.vmem [shape: f32[2,20,32], index: 11, kind: input, shape index: {}]   ;;  %s15951_s12 = inlined_call_operand.vmem [shape: f32[2,1,32], index: 12, kind: input, shape index: {}]   ;;  %s15952_s13 = inlined_call_operand.vmem [shape: f32[2,32,20], index: 13, kind: input, shape index: {}]   ;;  %s15953_s14 = inlined_call_operand.vmem [shape: f32[2,1,20], index: 14, kind: input, shape index: {}]   ;;  %s15954_s15 = inlined_call_operand.vmem [shape: f32[20,1], index: 15, kind: input, shape index: {}]   ;;  %s15955_s16 = inlined_call_operand.<no memory space> [shape: f32[1,1], index: 16, kind: input, shape index: {}]   ;;  %s15956_s17 = inlined_call_operand.vmem [shape: f32[2,1,1], index: 17, kind: output, shape index: {}]  }
   0x1   :  { %15965 = sst [smem:[#allocation3_spill]] %s15939_s0  ;;  %v22_v0 = vstv %s15955_s16 }
   0x2   :  { %15966 = sst [smem:[#allocation4_spill]] %s15940_s1  ;;  %23 = vst [vmem:[#allocation2] sm:$0x1] %v22_v0 }
   0x3 LB: > { %s12990_s27 = sadd.s32 4294967295, %s14580_s26   ;;  %p12994_p0 = scmp.ge.s32.totalorder %s14580_s26, 1  ;;  %s14580_s26 = sphi %s14691_s26, %s29_s26  }
   0x4   : > { %p488_p1 = scmp.lt.s32.totalorder %s14580_s26, 3 }
   0x6   : > { %p489_p2 = pnand %p12994_p0, %p488_p1 }
   0x7   : > { %s15967_s0 = sld [smem:[#allocation4_spill]] (!%p489_p2)  ;;  %p537_p3 = scmp.lt.s32.totalorder (!%p489_p2), %s12990_s27, 1 }
   0x8   : > { %492 = sbr.rel (%p489_p2) target bundleno = 8698 (0x21fa), region = 88  ;;  %s15968_s20 = sld [smem:[#allocation3_spill]] (!%p489_p2) }
   0x9   : > { %s14584_s1 = smov (!%p489_p2), 88   ;;  %s14587_s22 = smov (!%p489_p2), 123  }
   0xa   : > { %s14588_s23 = smov (!%p489_p2), 83   ;;  %s14589_s24 = smov (!%p489_p2), 98  }
   0xb   : > { %s14590_s25 = smov (!%p489_p2), 118   ;;  %s15964_s28 = smov (!%p489_p2), 78  }
   0xc   : > { %s15961_s29 = smov (!%p489_p2), 93   ;;  %s15963_s16 = smov (!%p489_p2), 113  }
   0xd   : > { %v546_v1 = vld [vmem:[%s15967_s0 + $0x8] sm:$0xff]  ;;  %v545_v2 = vld [vmem:[%s15967_s0] sm:$0xff]  ;;  %v14582_v3 = vmov 0.0   ;;  %vm14583_vm0 = vmmov 0   ;;  %s15977_s27 = smov (!%p537_p3, %s12990_s27), 1  ;;  %vm554_vm1 = vcmask 130048  }
   0xe   : > { %13474 = vmatprep.subr.mxu0 %v14582_v3  ;;  %13481 = vmatprep.subr.mxu1 %v14582_v3  ;;  %v587_v4 = vand.u32 4294901760, %v546_v1  ;;  %v590_v5 = vand.u32 4294901760, %v545_v2  ;;  %s12995_s18 = sshll.u32 %s15977_s27, 3  ;;  %v1019_v21 = vld [vmem:[%s15942_s3 + $0x10] sm:$0xf]  ;;  %vm1031_vm2 = vcmask 1043456  }
   0xf   : > { %13478 = vmatprep.mubr.msk.f32.mxu0 %vm14583_vm0, %v14582_v3  ;;  %13485 = vmatprep.mubr.msk.f32.mxu1 %vm14583_vm0, %v14582_v3  ;;  %s540_s21 = scalar_lea.vmem %s15968_s20, %s12995_s18  ;;  %v1033_v22 = vsel %vm1031_vm2, %v1019_v21, 0  ;;  %v1018_v24 = vld [vmem:[%s15942_s3 + $0x8] sm:$0xff]  ;;  %v1017_v27 = vld [vmem:[%s15942_s3] sm:$0xff]  ;;  %vm1027_vm3 = vcmask 162816   ;;  %s14585_s20 = smov 108   ;;  %vm1511_vm4 = vcmask 39936  }
  0x10   : > { %13475 = vmatpush3.msra.mxu0 %v587_v4  ;;  %v665_v6 = vsub.f32 %v546_v1, %v587_v4  ;;  %v672_v7 = vsub.f32 %v545_v2, %v590_v5  ;;  %v544_v10 = vld [vmem:[%s540_s21] sm:$0xff]  ;;  %v14745_v23 = vand.u32 4294901760, %v1033_v22  ;;  %v14753_v26 = vand.u32 4294901760, %v1018_v24  ;;  %s14586_s21 = smov 103   ;;  %s15958_s30 = smov 73  }
  0x11   : > { %13476 = vmatprep.subr.mxu0 %v14582_v3  ;;  %v556_v13 = vsel %vm554_vm1, %v544_v10, 0  ;;  %v14764_v30 = vand.u32 4294901760, %v1017_v27  ;;  %v12996_v41 = vld [vmem:[%s15941_s2] ss:$0 sm:$0xff]  ;;  %vm1963_vm5 = vcmask 64512   ;;  %s15960_s18 = smov 5  }
  0x12   : > { %v666_v8 = vand.u32 4294901760, %v665_v6  ;;  %13477 = vmatpush3.msra.mxu0 %v590_v5  ;;  %v673_v9 = vand.u32 4294901760, %v672_v7  ;;  %v625_v14 = vand.u32 4294901760, %v556_v13  ;;  %v14751_v25 = vsub.f32 %v1033_v22, %v14745_v23  ;;  %s15959_s19 = smov 10  }
  0x13   : > { %13488 = vmatprep.subr.mxu0 %v14582_v3  ;;  %v14762_v29 = vsub.f32 %v1018_v24, %v14753_v26  ;;  %v14773_v33 = vsub.f32 %v1017_v27, %v14764_v30  ;;  %vm5191_vm6 = vcmask 80896   ;;  %vm5193_vm7 = vcmask 121856  }
  0x14   : > { %v667_v11 = vsub.f32 %v665_v6, %v666_v8  ;;  %v674_v12 = vsub.f32 %v672_v7, %v673_v9  ;;  %v626_v17 = vsub.f32 %v556_v13, %v625_v14  ;;  %v1142_v28 = vand.u32 4294901760, %v14751_v25 }
  0x15   : > { %v1149_v32 = vand.u32 4294901760, %v14762_v29  ;;  %v1156_v36 = vand.u32 4294901760, %v14773_v33  ;;  %vm6214_vm8 = vcmask 261120   ;;  %vm12941_vm9 = vcmask 0  }
  0x16   : > { %v668_v15 = vand.u32 4294901760, %v667_v11  ;;  %v675_v16 = vand.u32 4294901760, %v674_v12  ;;  %v627_v18 = vand.u32 4294901760, %v626_v17  ;;  %v1143_v31 = vsub.f32 %v14751_v25, %v1142_v28 }
  0x17   : > { %v1150_v35 = vsub.f32 %v14762_v29, %v1149_v32  ;;  %v1157_v38 = vsub.f32 %v14773_v33, %v1156_v36 }
  0x18   : > { %13482 = vmatpush3.msra.mxu1 %v668_v15  ;;  %v628_v19 = vsub.f32 %v626_v17, %v627_v18  ;;  %v1144_v34 = vand.u32 4294901760, %v1143_v31 }
  0x19   : > { %13483 = vmatprep.subr.mxu1 %v14582_v3  ;;  %v1151_v37 = vand.u32 4294901760, %v1150_v35  ;;  %v1158_v39 = vand.u32 4294901760, %v1157_v38 }
  0x1a   : > { %13484 = vmatpush3.msra.mxu1 %v675_v16  ;;  %v629_v20 = vand.u32 4294901760, %v628_v19 }
  0x1b   : > { %13486 = vmatmul.mubr.f32.vlgmr.msra.gmra.mxu1 %v625_v14  ;;  %13495 = vmatprep.subr.mxu1 %v14582_v3 }
  0x1c   : > { %13496 = vmatpush3.msra.mxu1 %v587_v4  ;;  %13499 = vmatprep.mubr.msk.f32.mxu1 %vm14583_vm0, %v14582_v3 }
  0x1d   : > { %13497 = vmatprep.subr.mxu1 %v14582_v3  ;;  %13479 = vmatmul.mubr.f32.vlgmr.msra.gmra.mxu0 %v629_v20 }
  0x1e   : > { %13498 = vmatpush3.msra.mxu1 %v590_v5  ;;  %13489 = vmatpush3.msra.mxu0 %v665_v6 }
  0x1f   : > { %13500 = vmatmul.mubr.f32.vlgmr.msra.gmra.mxu1 %v627_v18  ;;  %13492 = vmatprep.mubr.msk.f32.mxu0 %vm14583_vm0, %v14582_v3 }
  0x20   : > { %13490 = vmatprep.subr.mxu0 %v14582_v3  ;;  %13509 = vmatprep.subr.mxu1 %v14582_v3 }
  0x21   : > { %13491 = vmatpush3.msra.mxu0 %v672_v7  ;;  %13510 = vmatpush3.msra.mxu1 %v587_v4 }
  0x22   : > { %13493 = vmatmul.mubr.f32.vlgmr.msra.gmra.mxu0 %v626_v17  ;;  %13502 = vmatprep.subr.mxu0 %v14582_v3 }
  0x23   : > { %13503 = vmatpush3.msra.mxu0 %v666_v8  ;;  %13511 = vmatprep.subr.mxu1 %v14582_v3 }
  0x24   : > { %13504 = vmatprep.subr.mxu0 %v14582_v3  ;;  %13506 = vmatprep.mubr.msk.f32.mxu0 %vm14583_vm0, %v14582_v3 }
  0x25   : > { %13505 = vmatpush3.msra.mxu0 %v673_v9  ;;  %13512 = vmatpush3.msra.mxu1 %v590_v5  ;;  %v12997_v5 = vld [vmem:[%s15943_s4] ss:$0 sm:$0xff] }
  0x26   : > { %13513 = vmatprep.mubr.msk.f32.mxu1 %vm14583_vm0, %v14582_v3  ;;  %13507 = vmatmul.mubr.f32.vlgmr.msra.gmra.mxu0 %v625_v14 }
  0x27   : > { %13514 = vmatmul.mubr.f32.vlgmr.msra.gmra.mxu1 %v625_v14  ;;  %13525 = vmatprep.subr.mxu1 %v14582_v3 }
  0x28   : > { %13531 = vmatprep.mubr.msk.f32.mxu1 %vm14583_vm0, %v14582_v3  ;;  %13516 = vmatprep.subr.mxu0 %v14582_v3 }
  0x29   : > { %13522 = vmatprep.mubr.msk.f32.mxu0 %vm14583_vm0, %v14582_v3  ;;  %13517 = vmatpush3.msra.mxu0 %v14745_v23 }
  0x2a   : > { %13518 = vmatprep.subr.mxu0 %v14582_v3  ;;  %13526 = vmatpush3.msra.mxu1 %v1144_v34 }
  0x2b   : > { %13519 = vmatpush3.msra.mxu0 %v14753_v26  ;;  %13527 = vmatprep.subr.mxu1 %v14582_v3 }
  0x2c   : > { %13520 = vmatprep.subr.mxu0 %v14582_v3  ;;  %13528 = vmatpush3.msra.mxu1 %v1151_v37 }
  0x2d   : > { %13521 = vmatpush3.msra.mxu0 %v14764_v30  ;;  %13529 = vmatprep.subr.mxu1 %v14582_v3 }
  0x2e   : > { %13534 = vmatprep.subr.mxu0 %v14582_v3  ;;  %13530 = vmatpush3.msra.mxu1 %v1158_v39 }
  0x2f   : > { %13543 = vmatprep.subr.mxu1 %v14582_v3 }
  0xdb   : > { %v712_v40 = vpop.f32.mrf.mxu1 }
  0xdd   : > { %v13487_v42 = vpop.f32.mrf.mxu1  ;;  %v631_v43 = vpop.f32.mrf.mxu0 }
  0xde   : > { %v632_v45 = vadd.f32 %v12996_v41, %v631_v43 }
  0xdf   : > { %v863_v44 = vpop.f32.mrf.mxu1  ;;  %v13480_v46 = vpop.f32.mrf.mxu0 }
  0xe0   : > { %v713_v48 = vadd.f32 %v712_v40, %v632_v45 }
  0xe1   : > { %v13501_v47 = vpop.f32.mrf.mxu1 }
  0xe2   : > { %v788_v49 = vpop.f32.mrf.mxu0 }
  0xe3   : > { %v789_v50 = vadd.f32 %v788_v49, %v713_v48 }
  0xe4   : > { %v13494_v51 = vpop.f32.mrf.mxu0 }
  0xe5   : > { %v864_v52 = vadd.f32 %v863_v44, %v789_v50 }
  0xe6   : > { %v940_v53 = vpop.f32.mrf.mxu0 }
  0xe7   : > { %v941_v54 = vadd.f32 %v940_v53, %v864_v52  ;;  %v1013_v55 = vpop.f32.mrf.mxu1 }
  0xe8   : > { %v13508_v56 = vpop.f32.mrf.mxu0 }
  0xe9   : > { %v14790_v57 = vadd.f32 %v1013_v55, %v941_v54  ;;  %v13515_v58 = vpop.f32.mrf.mxu1 }
  0xeb   : > { %v1029_v59 = vsel %vm1027_vm3, %v14790_v57, 0 }
  0xec   : > { %v1103_v60 = vand.u32 4294901760, %v1029_v59 }
  0xee   : > { %v1104_v61 = vsub.f32 %v1029_v59, %v1103_v60  ;;  %13532 = vmatmul.mubr.f32.vlgmr.msra.gmra.mxu1 %v1103_v60 }
  0xef   : > { %13544 = vmatpush3.msra.mxu1 %v14745_v23  ;;  %13549 = vmatprep.mubr.msk.f32.mxu1 %vm14583_vm0, %v14582_v3 }
  0xf0   : > { %13545 = vmatprep.subr.mxu1 %v14582_v3  ;;  %v1105_v62 = vand.u32 4294901760, %v1104_v61 }
  0xf1   : > { %13546 = vmatpush3.msra.mxu1 %v14753_v26 }
  0xf2   : > { %13547 = vmatprep.subr.mxu1 %v14582_v3  ;;  %v1106_v63 = vsub.f32 %v1104_v61, %v1105_v62 }
  0xf3   : > { %13548 = vmatpush3.msra.mxu1 %v14764_v30 }
  0xf4   : > { %13550 = vmatmul.mubr.f32.vlgmr.msra.gmra.mxu1 %v1105_v62  ;;  %13561 = vmatprep.subr.mxu1 %v14582_v3  ;;  %v1107_v0 = vand.u32 4294901760, %v1106_v63 }
  0xf5   : > { %13562 = vmatpush3.msra.mxu1 %v14745_v23  ;;  %13567 = vmatprep.mubr.msk.f32.mxu1 %vm14583_vm0, %v14582_v3 }
  0xf6   : > { %13563 = vmatprep.subr.mxu1 %v14582_v3  ;;  %13523 = vmatmul.mubr.f32.vlgmr.msra.gmra.mxu0 %v1107_v0 }
  0xf7   : > { %13535 = vmatpush3.msra.mxu0 %v14751_v25  ;;  %13564 = vmatpush3.msra.mxu1 %v14753_v26 }
  0xf8   : > { %13536 = vmatprep.subr.mxu0 %v14582_v3  ;;  %13565 = vmatprep.subr.mxu1 %v14582_v3 }
  0xf9   : > { %13537 = vmatpush3.msra.mxu0 %v14762_v29  ;;  %13566 = vmatpush3.msra.mxu1 %v14764_v30 }
  0xfa   : > { %13538 = vmatprep.subr.mxu0 %v14582_v3  ;;  %13568 = vmatmul.mubr.f32.vlgmr.msra.gmra.mxu1 %v1103_v60 }
  0xfb   : > { %13539 = vmatpush3.msra.mxu0 %v14773_v33  ;;  %13540 = vmatprep.mubr.msk.f32.mxu0 %vm14583_vm0, %v14582_v3 }
  0xfc   : > { %13541 = vmatmul.mubr.f32.vlgmr.msra.gmra.mxu0 %v1104_v61  ;;  %13552 = vmatprep.subr.mxu0 %v14582_v3 }
  0xfd   : > { %13553 = vmatpush3.msra.mxu0 %v1142_v28  ;;  %13558 = vmatprep.mubr.msk.f32.mxu0 %vm14583_vm0, %v14582_v3 }
  0xfe   : > { %13554 = vmatprep.subr.mxu0 %v14582_v3  ;;  %13575 = vmatprep.subr.mxu1 %v14582_v3 }
  0xff   : > { %13555 = vmatpush3.msra.mxu0 %v1149_v32  ;;  %13577 = vmatprep.mubr.msk.f32.mxu1 %vm14583_vm0, %v14582_v3 }
 0x100   : > { %13556 = vmatprep.subr.mxu0 %v14582_v3 }
 0x101   : > { %13557 = vmatpush3.msra.mxu0 %v1156_v36 }
 0x102   : > { %13559 = vmatmul.mubr.f32.vlgmr.msra.gmra.mxu0 %v1103_v60  ;;  %13570 = vmatprep.subr.mxu0 %v14582_v3 }
 0x103   : > { %13572 = vmatprep.mubr.msk.f32.mxu0 %vm14583_vm0, %v14582_v3 }
 0x1ae   : > { %v1195_v1 = vpop.f32.mrf.mxu1 }
 0x1b0   : > { %v13533_v2 = vpop.f32.mrf.mxu1 }
 0x1b4   : > { %v1349_v4 = vpop.f32.mrf.mxu1 }
 0x1b6   : > { %v13551_v6 = vpop.f32.mrf.mxu1  ;;  %v1109_v7 = vpop.f32.mrf.mxu0 }
 0x1b7   : > { %v1110_v8 = vadd.f32 %v12997_v5, %v1109_v7 }
 0x1b8   : > { %v13524_v9 = vpop.f32.mrf.mxu0 }
 0x1b9   : > { %v1196_v10 = vadd.f32 %v1195_v1, %v1110_v8 }
 0x1ba   : > { %v1503_v11 = vpop.f32.mrf.mxu1 }
 0x1bc   : > { %v1273_v12 = vpop.f32.mrf.mxu0  ;;  %v13569_v13 = vpop.f32.mrf.mxu1 }
 0x1bd   : > { %v1274_v14 = vadd.f32 %v1273_v12, %v1196_v10 }
 0x1be   : > { %v13542_v15 = vpop.f32.mrf.mxu0 }
 0x1bf   : > { %v1350_v16 = vadd.f32 %v1349_v4, %v1274_v14 }
 0x1c2   : > { %v1429_v17 = vpop.f32.mrf.mxu0 }
 0x1c3   : > { %v1430_v18 = vadd.f32 %v1429_v17, %v1350_v16 }
 0x1c4   : > { %v13560_v19 = vpop.f32.mrf.mxu0 }
 0x1c5   : > { %v14836_v20 = vadd.f32 %v1503_v11, %v1430_v18 }
 0x1c7   : > { %1975 = vrot.lane.b32.xlu1 %v14836_v20, %s14584_s1  ;;  %1509 = vrot.lane.b32.xlu0 %v14836_v20, %s14585_s20  ;;  %v14843_v21 = vmul.f32 0.4472136, %v14836_v20 }
 0x1c9   : > { %v1513_v22 = vsel %vm1511_vm4, %v14843_v21, 0 }
 0x1ca   : > { %v1583_v23 = vand.u32 4294901760, %v1513_v22 }
 0x1cc   : > { %v1584_v24 = vsub.f32 %v1513_v22, %v1583_v23 }
 0x1ce   : > { %v1585_v25 = vand.u32 4294901760, %v1584_v24 }
 0x1d0   : > { %v1586_v28 = vsub.f32 %v1584_v24, %v1585_v25 }
 0x1d2   : > { %v1587_v32 = vand.u32 4294901760, %v1586_v28 }
 0x239   : > { %v1510_v26 = vpop.permute.xlu0 %1509  ;;  %v1976_v30 = vpop.permute.xlu1 %1975 }
 0x23a   : > { %v1515_v27 = vsel %vm1511_vm4, %v1510_v26, 0  ;;  %v14849_v33 = vand.u32 4294901760, %v1976_v30 }
 0x23b   : > { %v1548_v29 = vand.u32 4294901760, %v1515_v27 }
 0x23c   : > { %v14855_v36 = vsub.f32 %v1976_v30, %v14849_v33 }
 0x23d   : > { %v1625_v31 = vsub.f32 %v1515_v27, %v1548_v29  ;;  %13571 = vmatpush3.xpose.msra.mxu0 %v1548_v29 }
 0x23e   : > { %13580 = vmatprep.subr.mxu0 %v14582_v3  ;;  %v2090_v38 = vand.u32 4294901760, %v14855_v36 }
 0x23f   : > { %v1626_v34 = vand.u32 4294901760, %v1625_v31 }
 0x240   : > { %13573 = vmatmul.mubr.f32.vlgmr.msra.gmra.mxu0 %v1587_v32  ;;  %v2091_v39 = vsub.f32 %v14855_v36, %v2090_v38 }
 0x241   : > { %v1627_v35 = vsub.f32 %v1625_v31, %v1626_v34  ;;  %13581 = vmatpush3.xpose.msra.mxu0 %v1625_v31  ;;  %13582 = vmatprep.mubr.msk.f32.mxu0 %vm14583_vm0, %v14582_v3 }
 0x242   : > { %13590 = vmatprep.subr.mxu0 %v14582_v3  ;;  %v2092_v40 = vand.u32 4294901760, %v2091_v39 }
 0x243   : > { %v1628_v37 = vand.u32 4294901760, %v1627_v35 }
 0x244   : > { %13583 = vmatmul.mubr.f32.vlgmr.msra.gmra.mxu0 %v1584_v24 }
 0x245   : > { %13576 = vmatpush3.xpose.msra.mxu1 %v1628_v37  ;;  %13591 = vmatpush3.xpose.msra.mxu0 %v1626_v34 }
 0x246   : > { %13592 = vmatprep.mubr.msk.f32.mxu0 %vm14583_vm0, %v14582_v3  ;;  %13585 = vmatprep.subr.mxu1 %v14582_v3 }
 0x247   : > { %13600 = vmatprep.subr.mxu0 %v14582_v3 }
 0x248   : > { %13578 = vmatmul.mubr.f32.vlgmr.msra.gmra.mxu1 %v1583_v23  ;;  %13593 = vmatmul.mubr.f32.vlgmr.msra.gmra.mxu0 %v1583_v23 }
 0x249   : > { %13586 = vmatpush3.xpose.msra.mxu1 %v1548_v29  ;;  %13601 = vmatpush3.msra.mxu0 %v14849_v33 }
 0x24a   : > { %13587 = vmatprep.mubr.msk.f32.mxu1 %vm14583_vm0, %v14582_v3  ;;  %13595 = vmatprep.subr.mxu1 %v14582_v3 }
 0x24b   : > { %13602 = vmatprep.mubr.msk.f32.mxu0 %vm14583_vm0, %v14582_v3  ;;  %13610 = vmatprep.subr.mxu0 %v14582_v3 }
 0x24c   : > { %13588 = vmatmul.mubr.f32.vlgmr.msra.gmra.mxu1 %v1585_v25 }
 0x24d   : > { %13596 = vmatpush3.xpose.msra.mxu1 %v1548_v29  ;;  %13597 = vmatprep.mubr.msk.f32.mxu1 %vm14583_vm0, %v14582_v3 }
 0x24e   : > { %13605 = vmatprep.subr.mxu1 %v14582_v3 }
 0x250   : > { %13598 = vmatmul.mubr.f32.vlgmr.msra.gmra.mxu1 %v1583_v23 }
 0x251   : > { %13606 = vmatpush3.msra.mxu1 %v2092_v40  ;;  %13607 = vmatprep.mubr.msk.f32.mxu1 %vm14583_vm0, %v14582_v3 }
 0x252   : > { %13615 = vmatprep.subr.mxu1 %v14582_v3 }
 0x300   : > { %v1589_v41 = vpop.f32.mrf.mxu0 }
 0x302   : > { %v13574_v42 = vpop.f32.mrf.mxu0 }
 0x304   : > { %v1739_v43 = vpop.f32.mrf.mxu0 }
 0x306   : > { %v13584_v44 = vpop.f32.mrf.mxu0 }
 0x308   : > { %v1665_v45 = vpop.f32.mrf.mxu1  ;;  %v1887_v46 = vpop.f32.mrf.mxu0 }
 0x309   : > { %v1666_v47 = vadd.f32 %v1665_v45, %v1589_v41 }
 0x30a   : > { %v13579_v48 = vpop.f32.mrf.mxu1  ;;  %v13594_v49 = vpop.f32.mrf.mxu0 }
 0x30b   : > { %v1740_v50 = vadd.f32 %v1739_v43, %v1666_v47 }
 0x30c   : > { %v1813_v51 = vpop.f32.mrf.mxu1 }
 0x30d   : > { %v1814_v52 = vadd.f32 %v1813_v51, %v1740_v50 }
 0x30e   : > { %v13589_v53 = vpop.f32.mrf.mxu1 }
 0x30f   : > { %v1888_v54 = vadd.f32 %v1887_v46, %v1814_v52 }
 0x310   : > { %v1959_v55 = vpop.f32.mrf.mxu1 }
 0x311   : > { %v1960_v56 = vadd.f32 %v1959_v55, %v1888_v54 }
 0x312   : > { %v13599_v58 = vpop.f32.mrf.mxu1 }
 0x313   : > { %v1964_v59 = vsel %vm1963_vm5, %v1960_v56, -inf }
 0x314   : > { %1965 = vmax.xlane.f32.xlu0 %v1964_v59 }
 0x39d   : > { %v1966_v60 = vpop.xlane.xlu0 %1965 }
 0x39e   : > { %v1967_v61 = vsub.f32 %v1960_v56, %v1966_v60 }
 0x3a0   : > { %v1968_v62 = vmul.f32 1.442695, %v1967_v61 }
 0x3a2   : > { %14530 = vpow2.f32 %v1968_v62 }
 0x3af   : > { %v14531_v63 = vpop.eup %14530 }
 0x3b0   : > { %v1970_v0 = vsel %vm1963_vm5, %v14531_v63, 0.0 }
 0x3b1   : > { %1971 = vadd.xlane.f32.xlu1 %v1970_v0 }
 0x3c2   : > { %2429 = vrot.lane.b32.xlu1 %v14836_v20, %s14586_s21 }
 0x3c6   : > { %2427 = vrot.lane.b32.xlu1 %v14843_v21, %s14587_s22 }
 0x43a   : > { %v1972_v1 = vpop.xlane.xlu1 %1971 }
 0x43b   : > { %14532 = vrcp.f32 %v1972_v1 }
 0x43e   : > { %v2430_v2 = vpop.permute.xlu1 %2429 }
 0x43f   : > { %v2433_v4 = vsel %vm1511_vm4, %v2430_v2, 0 }
 0x440   : > { %v2466_v5 = vand.u32 4294901760, %v2433_v4 }
 0x442   : > { %v2543_v7 = vsub.f32 %v2433_v4, %v2466_v5  ;;  %v2428_v9 = vpop.permute.xlu1 %2427 }
 0x443   : > { %v2431_v13 = vsel %vm1511_vm4, %v2428_v9, 0 }
 0x444   : > { %v2544_v12 = vand.u32 4294901760, %v2543_v7  ;;  %v2501_v15 = vand.u32 4294901760, %v2431_v13 }
 0x446   : > { %v2545_v17 = vsub.f32 %v2543_v7, %v2544_v12  ;;  %v2502_v19 = vsub.f32 %v2431_v13, %v2501_v15 }
 0x448   : > { %v14533_v6 = vpop.eup %14532  ;;  %v2546_v23 = vand.u32 4294901760, %v2545_v17  ;;  %v2503_v24 = vand.u32 4294901760, %v2502_v19 }
 0x449   : > { %v1974_v8 = vmul.f32 %v14533_v6, %v14531_v63 }
 0x44a   : > { %v2504_v25 = vsub.f32 %v2502_v19, %v2503_v24 }
 0x44b   : > { %v1979_v10 = vsel %vm1963_vm5, %v1974_v8, 0 }
 0x44c   : > { %v2047_v11 = vand.u32 4294901760, %v1979_v10  ;;  %v2505_v26 = vand.u32 4294901760, %v2504_v25 }
 0x44e   : > { %v2048_v14 = vsub.f32 %v1979_v10, %v2047_v11  ;;  %13608 = vmatmul.mubr.f32.vlgmr.msra.gmra.mxu1 %v2047_v11 }
 0x44f   : > { %13616 = vmatpush3.msra.mxu1 %v14849_v33  ;;  %13617 = vmatprep.mubr.msk.f32.mxu1 %vm14583_vm0, %v14582_v3 }
 0x450   : > { %13625 = vmatprep.subr.mxu1 %v14582_v3  ;;  %v2049_v16 = vand.u32 4294901760, %v2048_v14 }
 0x452   : > { %13618 = vmatmul.mubr.f32.vlgmr.msra.gmra.mxu1 %v2049_v16  ;;  %v2050_v18 = vsub.f32 %v2048_v14, %v2049_v16 }
 0x453   : > { %13626 = vmatpush3.msra.mxu1 %v14849_v33  ;;  %13627 = vmatprep.mubr.msk.f32.mxu1 %vm14583_vm0, %v14582_v3 }
 0x454   : > { %13635 = vmatprep.subr.mxu1 %v14582_v3  ;;  %v2051_v22 = vand.u32 4294901760, %v2050_v18 }
 0x456   : > { %13603 = vmatmul.mubr.f32.vlgmr.msra.gmra.mxu0 %v2051_v22  ;;  %13628 = vmatmul.mubr.f32.vlgmr.msra.gmra.mxu1 %v2047_v11 }
 0x457   : > { %13611 = vmatpush3.msra.mxu0 %v14855_v36  ;;  %13636 = vmatpush3.xpose.msra.mxu1 %v2546_v23 }
 0x458   : > { %13612 = vmatprep.mubr.msk.f32.mxu0 %vm14583_vm0, %v14582_v3  ;;  %13620 = vmatprep.subr.mxu0 %v14582_v3 }
 0x459   : > { %13637 = vmatprep.mubr.msk.f32.mxu1 %vm14583_vm0, %v14582_v3  ;;  %13645 = vmatprep.subr.mxu1 %v14582_v3 }
 0x45a   : > { %13613 = vmatmul.mubr.f32.vlgmr.msra.gmra.mxu0 %v2048_v14  ;;  %13638 = vmatmul.mubr.f32.vlgmr.msra.gmra.mxu1 %v2501_v15 }
 0x45b   : > { %13621 = vmatpush3.msra.mxu0 %v2090_v38  ;;  %13646 = vmatpush3.xpose.msra.mxu1 %v2466_v5 }
 0x45c   : > { %13622 = vmatprep.mubr.msk.f32.mxu0 %vm14583_vm0, %v14582_v3  ;;  %13630 = vmatprep.subr.mxu0 %v14582_v3 }
 0x45d   : > { %13647 = vmatprep.mubr.msk.f32.mxu1 %vm14583_vm0, %v14582_v3  ;;  %13655 = vmatprep.subr.mxu1 %v14582_v3 }
 0x45e   : > { %13623 = vmatmul.mubr.f32.vlgmr.msra.gmra.mxu0 %v2047_v11  ;;  %13648 = vmatmul.mubr.f32.vlgmr.msra.gmra.mxu1 %v2503_v24 }
 0x45f   : > { %13631 = vmatpush3.xpose.msra.mxu0 %v2466_v5  ;;  %13656 = vmatpush3.xpose.msra.mxu1 %v2466_v5 }
 0x460   : > { %13632 = vmatprep.mubr.msk.f32.mxu0 %vm14583_vm0, %v14582_v3  ;;  %13640 = vmatprep.subr.mxu0 %v14582_v3 }
 0x461   : > { %13657 = vmatprep.mubr.msk.f32.mxu1 %vm14583_vm0, %v14582_v3  ;;  %13665 = vmatprep.subr.mxu1 %v14582_v3 }
 0x462   : > { %13633 = vmatmul.mubr.f32.vlgmr.msra.gmra.mxu0 %v2505_v26  ;;  %13658 = vmatmul.mubr.f32.vlgmr.msra.gmra.mxu1 %v2501_v15 }
 0x463   : > { %13641 = vmatpush3.xpose.msra.mxu0 %v2543_v7  ;;  %13642 = vmatprep.mubr.msk.f32.mxu0 %vm14583_vm0, %v14582_v3 }
 0x464   : > { %13650 = vmatprep.subr.mxu0 %v14582_v3  ;;  %13667 = vmatprep.mubr.msk.f32.mxu1 %vm14583_vm0, %v14582_v3 }
 0x466   : > { %13643 = vmatmul.mubr.f32.vlgmr.msra.gmra.mxu0 %v2502_v19 }
 0x467   : > { %13651 = vmatpush3.xpose.msra.mxu0 %v2544_v12  ;;  %13652 = vmatprep.mubr.msk.f32.mxu0 %vm14583_vm0, %v14582_v3 }
 0x468   : > { %13660 = vmatprep.subr.mxu0 %v14582_v3 }
 0x46a   : > { %13653 = vmatmul.mubr.f32.vlgmr.msra.gmra.mxu0 %v2501_v15 }
 0x46b   : > { %13662 = vmatprep.mubr.msk.f32.mxu0 %vm14583_vm0, %v14582_v3 }
 0x50e   : > { %v2129_v27 = vpop.f32.mrf.mxu1 }
 0x510   : > { %v13609_v28 = vpop.f32.mrf.mxu1 }
 0x512   : > { %v2277_v29 = vpop.f32.mrf.mxu1 }
 0x514   : > { %v13619_v30 = vpop.f32.mrf.mxu1 }
 0x516   : > { %v2053_v31 = vpop.f32.mrf.mxu0  ;;  %v2423_v32 = vpop.f32.mrf.mxu1 }
 0x517   : > { %v2130_v33 = vadd.f32 %v2129_v27, %v2053_v31 }
 0x518   : > { %v13604_v34 = vpop.f32.mrf.mxu0  ;;  %v13629_v35 = vpop.f32.mrf.mxu1 }
 0x51a   : > { %v2203_v36 = vpop.f32.mrf.mxu0  ;;  %v2583_v37 = vpop.f32.mrf.mxu1 }
 0x51b   : > { %v2204_v38 = vadd.f32 %v2203_v36, %v2130_v33 }
 0x51c   : > { %v13614_v39 = vpop.f32.mrf.mxu0  ;;  %v13639_v40 = vpop.f32.mrf.mxu1 }
 0x51d   : > { %v2278_v41 = vadd.f32 %v2277_v29, %v2204_v38 }
 0x51e   : > { %v2351_v42 = vpop.f32.mrf.mxu0  ;;  %v2731_v43 = vpop.f32.mrf.mxu1 }
 0x51f   : > { %v2352_v44 = vadd.f32 %v2351_v42, %v2278_v41 }
 0x520   : > { %v13624_v45 = vpop.f32.mrf.mxu0  ;;  %v13649_v46 = vpop.f32.mrf.mxu1 }
 0x521   : > { %v14926_v47 = vadd.f32 %v2423_v32, %v2352_v44 }
 0x522   : > { %v2507_v48 = vpop.f32.mrf.mxu0  ;;  %v2877_v49 = vpop.f32.mrf.mxu1 }
 0x523   : > { %v2584_v52 = vadd.f32 %v2583_v37, %v2507_v48 }
 0x524   : > { %v13634_v50 = vpop.f32.mrf.mxu0  ;;  %v13659_v51 = vpop.f32.mrf.mxu1 }
 0x526   : > { %v2657_v53 = vpop.f32.mrf.mxu0 }
 0x527   : > { %v2658_v54 = vadd.f32 %v2657_v53, %v2584_v52 }
 0x528   : > { %v13644_v55 = vpop.f32.mrf.mxu0 }
 0x529   : > { %v2732_v56 = vadd.f32 %v2731_v43, %v2658_v54 }
 0x52a   : > { %v2805_v58 = vpop.f32.mrf.mxu0 }
 0x52b   : > { %v2806_v59 = vadd.f32 %v2805_v58, %v2732_v56 }
 0x52c   : > { %v13654_v60 = vpop.f32.mrf.mxu0 }
 0x52d   : > { %v2878_v61 = vadd.f32 %v2877_v49, %v2806_v59 }
 0x52f   : > { %v2881_v62 = vsel %vm1963_vm5, %v2878_v61, -inf }
 0x530   : > { %2882 = vmax.xlane.f32.xlu1 %v2881_v62 }
 0x5b9   : > { %v2883_v63 = vpop.xlane.xlu1 %2882 }
 0x5ba   : > { %v2884_v0 = vsub.f32 %v2878_v61, %v2883_v63 }
 0x5bc   : > { %v2885_v1 = vmul.f32 1.442695, %v2884_v0 }
 0x5be   : > { %14534 = vpow2.f32 %v2885_v1 }
 0x5cb   : > { %v14535_v2 = vpop.eup %14534 }
 0x5cc   : > { %v2887_v4 = vsel %vm1963_vm5, %v14535_v2, 0.0 }
 0x5cd   : > { %2888 = vadd.xlane.f32.xlu0 %v2887_v4 }
 0x5e3   : > { %2892 = vrot.lane.b32.xlu0 %v14836_v20, %s14588_s23 }
 0x5e7   : > { %3346 = vrot.lane.b32.xlu0 %v14836_v20, %s14589_s24 }
 0x5eb   : > { %3344 = vrot.lane.b32.xlu0 %v14843_v21, %s14590_s25 }
 0x656   : > { %v2889_v5 = vpop.xlane.xlu0 %2888 }
 0x657   : > { %14536 = vrcp.f32 %v2889_v5 }
 0x65a   : > { %v2893_v6 = vpop.permute.xlu0 %2892 }
 0x65b   : > { %v2929_v7 = vand.u32 4294901760, %v2893_v6 }
 0x65d   : > { %v3006_v8 = vsub.f32 %v2893_v6, %v2929_v7  ;;  %13661 = vmatpush3.msra.mxu0 %v2929_v7 }
 0x65e   : > { %v3347_v9 = vpop.permute.xlu0 %3346  ;;  %13670 = vmatprep.subr.mxu0 %v14582_v3 }
 0x65f   : > { %v3007_v10 = vand.u32 4294901760, %v3006_v8  ;;  %v3350_v11 = vsel %vm1511_vm4, %v3347_v9, 0 }
 0x660   : > { %v3383_v13 = vand.u32 4294901760, %v3350_v11 }
 0x661   : > { %v3008_v12 = vsub.f32 %v3006_v8, %v3007_v10 }
 0x662   : > { %v3460_v16 = vsub.f32 %v3350_v11, %v3383_v13  ;;  %v3345_v18 = vpop.permute.xlu0 %3344 }
 0x663   : > { %v3009_v14 = vand.u32 4294901760, %v3008_v12  ;;  %v3348_v24 = vsel %vm1511_vm4, %v3345_v18, 0 }
 0x664   : > { %v14537_v15 = vpop.eup %14536  ;;  %v3461_v23 = vand.u32 4294901760, %v3460_v16  ;;  %v3418_v26 = vand.u32 4294901760, %v3348_v24 }
 0x665   : > { %13666 = vmatpush3.msra.mxu1 %v3009_v14  ;;  %v2891_v17 = vmul.f32 %v14537_v15, %v14535_v2 }
 0x666   : > { %13675 = vmatprep.subr.mxu1 %v14582_v3  ;;  %v3462_v28 = vsub.f32 %v3460_v16, %v3461_v23  ;;  %v3419_v30 = vsub.f32 %v3348_v24, %v3418_v26 }
 0x667   : > { %v2896_v19 = vsel %vm1963_vm5, %v2891_v17, 0 }
 0x668   : > { %v2964_v22 = vand.u32 4294901760, %v2896_v19  ;;  %v3463_v32 = vand.u32 4294901760, %v3462_v28  ;;  %v3420_v33 = vand.u32 4294901760, %v3419_v30 }
 0x66a   : > { %v2965_v25 = vsub.f32 %v2896_v19, %v2964_v22  ;;  %13668 = vmatmul.mubr.f32.vlgmr.msra.gmra.mxu1 %v2964_v22  ;;  %v3421_v34 = vsub.f32 %v3419_v30, %v3420_v33 }
 0x66b   : > { %13676 = vmatpush3.msra.mxu1 %v2929_v7  ;;  %13677 = vmatprep.mubr.msk.f32.mxu1 %vm14583_vm0, %v14582_v3 }
 0x66c   : > { %13685 = vmatprep.subr.mxu1 %v14582_v3  ;;  %v2966_v27 = vand.u32 4294901760, %v2965_v25  ;;  %v3422_v35 = vand.u32 4294901760, %v3421_v34 }
 0x66e   : > { %13678 = vmatmul.mubr.f32.vlgmr.msra.gmra.mxu1 %v2966_v27  ;;  %v2967_v29 = vsub.f32 %v2965_v25, %v2966_v27 }
 0x66f   : > { %13686 = vmatpush3.msra.mxu1 %v2929_v7  ;;  %13687 = vmatprep.mubr.msk.f32.mxu1 %vm14583_vm0, %v14582_v3 }
 0x670   : > { %13695 = vmatprep.subr.mxu1 %v14582_v3  ;;  %v2968_v31 = vand.u32 4294901760, %v2967_v29 }
 0x672   : > { %13663 = vmatmul.mubr.f32.vlgmr.msra.gmra.mxu0 %v2968_v31  ;;  %13688 = vmatmul.mubr.f32.vlgmr.msra.gmra.mxu1 %v2964_v22 }
 0x673   : > { %13671 = vmatpush3.msra.mxu0 %v3006_v8  ;;  %13696 = vmatpush3.xpose.msra.mxu1 %v3463_v32 }
 0x674   : > { %13672 = vmatprep.mubr.msk.f32.mxu0 %vm14583_vm0, %v14582_v3  ;;  %13680 = vmatprep.subr.mxu0 %v14582_v3 }
 0x675   : > { %13697 = vmatprep.mubr.msk.f32.mxu1 %vm14583_vm0, %v14582_v3  ;;  %13705 = vmatprep.subr.mxu1 %v14582_v3 }
 0x676   : > { %13673 = vmatmul.mubr.f32.vlgmr.msra.gmra.mxu0 %v2965_v25  ;;  %13698 = vmatmul.mubr.f32.vlgmr.msra.gmra.mxu1 %v3418_v26 }
 0x677   : > { %13681 = vmatpush3.msra.mxu0 %v3007_v10  ;;  %13706 = vmatpush3.xpose.msra.mxu1 %v3383_v13 }
 0x678   : > { %13682 = vmatprep.mubr.msk.f32.mxu0 %vm14583_vm0, %v14582_v3  ;;  %13690 = vmatprep.subr.mxu0 %v14582_v3 }
 0x679   : > { %13707 = vmatprep.mubr.msk.f32.mxu1 %vm14583_vm0, %v14582_v3  ;;  %13715 = vmatprep.subr.mxu1 %v14582_v3 }
 0x67a   : > { %13683 = vmatmul.mubr.f32.vlgmr.msra.gmra.mxu0 %v2964_v22  ;;  %13708 = vmatmul.mubr.f32.vlgmr.msra.gmra.mxu1 %v3420_v33 }
 0x67b   : > { %13691 = vmatpush3.xpose.msra.mxu0 %v3383_v13  ;;  %13716 = vmatpush3.xpose.msra.mxu1 %v3383_v13 }
 0x67c   : > { %13692 = vmatprep.mubr.msk.f32.mxu0 %vm14583_vm0, %v14582_v3  ;;  %13700 = vmatprep.subr.mxu0 %v14582_v3 }
 0x67d   : > { %13717 = vmatprep.mubr.msk.f32.mxu1 %vm14583_vm0, %v14582_v3  ;;  %13725 = vmatprep.subr.mxu1 %v14582_v3 }
 0x67e   : > { %13693 = vmatmul.mubr.f32.vlgmr.msra.gmra.mxu0 %v3422_v35  ;;  %13718 = vmatmul.mubr.f32.vlgmr.msra.gmra.mxu1 %v3418_v26 }
 0x67f   : > { %13701 = vmatpush3.xpose.msra.mxu0 %v3460_v16  ;;  %13702 = vmatprep.mubr.msk.f32.mxu0 %vm14583_vm0, %v14582_v3 }
 0x680   : > { %13710 = vmatprep.subr.mxu0 %v14582_v3  ;;  %13727 = vmatprep.mubr.msk.f32.mxu1 %vm14583_vm0, %v14582_v3 }
 0x682   : > { %13703 = vmatmul.mubr.f32.vlgmr.msra.gmra.mxu0 %v3419_v30 }
 0x683   : > { %13711 = vmatpush3.xpose.msra.mxu0 %v3461_v23  ;;  %13712 = vmatprep.mubr.msk.f32.mxu0 %vm14583_vm0, %v14582_v3 }
 0x684   : > { %13720 = vmatprep.subr.mxu0 %v14582_v3 }
 0x686   : > { %13713 = vmatmul.mubr.f32.vlgmr.msra.gmra.mxu0 %v3418_v26 }
 0x687   : > { %13722 = vmatprep.mubr.msk.f32.mxu0 %vm14583_vm0, %v14582_v3 }
 0x72a   : > { %v3046_v36 = vpop.f32.mrf.mxu1 }
 0x72c   : > { %v13669_v37 = vpop.f32.mrf.mxu1 }
 0x72e   : > { %v3194_v38 = vpop.f32.mrf.mxu1 }
 0x730   : > { %v13679_v39 = vpop.f32.mrf.mxu1 }
 0x732   : > { %v2970_v40 = vpop.f32.mrf.mxu0  ;;  %v3340_v41 = vpop.f32.mrf.mxu1 }
 0x733   : > { %v3047_v42 = vadd.f32 %v3046_v36, %v2970_v40 }
 0x734   : > { %v13664_v43 = vpop.f32.mrf.mxu0  ;;  %v13689_v44 = vpop.f32.mrf.mxu1 }
 0x736   : > { %v3120_v45 = vpop.f32.mrf.mxu0  ;;  %v3500_v46 = vpop.f32.mrf.mxu1 }
 0x737   : > { %v3121_v48 = vadd.f32 %v3120_v45, %v3047_v42 }
 0x738   : > { %v13674_v49 = vpop.f32.mrf.mxu0  ;;  %v13699_v50 = vpop.f32.mrf.mxu1 }
 0x739   : > { %v3195_v51 = vadd.f32 %v3194_v38, %v3121_v48 }
 0x73a   : > { %v3268_v52 = vpop.f32.mrf.mxu0  ;;  %v3648_v53 = vpop.f32.mrf.mxu1 }
 0x73b   : > { %v3269_v54 = vadd.f32 %v3268_v52, %v3195_v51 }
 0x73c   : > { %v13684_v55 = vpop.f32.mrf.mxu0  ;;  %v13709_v56 = vpop.f32.mrf.mxu1 }
 0x73d   : > { %v14975_v58 = vadd.f32 %v3340_v41, %v3269_v54 }
 0x73e   : > { %v3424_v59 = vpop.f32.mrf.mxu0  ;;  %v3794_v60 = vpop.f32.mrf.mxu1 }
 0x73f   : > { %v3501_v63 = vadd.f32 %v3500_v46, %v3424_v59 }
 0x740   : > { %v13694_v61 = vpop.f32.mrf.mxu0  ;;  %v13719_v62 = vpop.f32.mrf.mxu1 }
 0x742   : > { %v3574_v0 = vpop.f32.mrf.mxu0 }
 0x743   : > { %v3575_v1 = vadd.f32 %v3574_v0, %v3501_v63 }
 0x744   : > { %v13704_v2 = vpop.f32.mrf.mxu0 }
 0x745   : > { %v3649_v4 = vadd.f32 %v3648_v53, %v3575_v1 }
 0x746   : > { %v3722_v5 = vpop.f32.mrf.mxu0 }
 0x747   : > { %v3723_v6 = vadd.f32 %v3722_v5, %v3649_v4 }
 0x748   : > { %v13714_v7 = vpop.f32.mrf.mxu0 }
 0x749   : > { %v3795_v8 = vadd.f32 %v3794_v60, %v3723_v6 }
 0x74b   : > { %v3798_v9 = vsel %vm1963_vm5, %v3795_v8, -inf }
 0x74c   : > { %3799 = vmax.xlane.f32.xlu1 %v3798_v9 }
 0x75d   : > { %3809 = vrot.lane.b32.xlu1 %v14836_v20, %s15964_s28 }
 0x761   : > { %4263 = vrot.lane.b32.xlu1 %v14836_v20, %s15961_s29  ;;  %s15962_s29 = smov 15  }
 0x765   : > { %4261 = vrot.lane.b32.xlu1 %v14843_v21, %s15963_s16  ;;  %s543_s16 = scalar_lea.vmem %s15956_s17, %s15977_s27 }
 0x7d5   : > { %v3800_v10 = vpop.xlane.xlu1 %3799 }
 0x7d6   : > { %v3801_v11 = vsub.f32 %v3795_v8, %v3800_v10 }
 0x7d8   : > { %v3802_v12 = vmul.f32 1.442695, %v3801_v11 }
 0x7d9   : > { %v3810_v13 = vpop.permute.xlu1 %3809 }
 0x7da   : > { %14538 = vpow2.f32 %v3802_v12  ;;  %v3846_v14 = vand.u32 4294901760, %v3810_v13 }
 0x7dc   : > { %v3923_v15 = vsub.f32 %v3810_v13, %v3846_v14  ;;  %13721 = vmatpush3.msra.mxu0 %v3846_v14 }
 0x7dd   : > { %13730 = vmatprep.subr.mxu0 %v14582_v3  ;;  %v4264_v23 = vpop.permute.xlu1 %4263 }
 0x7de   : > { %v3924_v16 = vand.u32 4294901760, %v3923_v15  ;;  %v4267_v24 = vsel %vm1511_vm4, %v4264_v23, 0 }
 0x7df   : > { %v4300_v25 = vand.u32 4294901760, %v4267_v24 }
 0x7e0   : > { %v3925_v17 = vsub.f32 %v3923_v15, %v3924_v16 }
 0x7e1   : > { %v4377_v27 = vsub.f32 %v4267_v24, %v4300_v25  ;;  %v4262_v29 = vpop.permute.xlu1 %4261 }
 0x7e2   : > { %v3926_v18 = vand.u32 4294901760, %v3925_v17  ;;  %v4265_v33 = vsel %vm1511_vm4, %v4262_v29, 0 }
 0x7e3   : > { %v4378_v32 = vand.u32 4294901760, %v4377_v27  ;;  %v4335_v35 = vand.u32 4294901760, %v4265_v33 }
 0x7e4   : > { %13726 = vmatpush3.msra.mxu1 %v3926_v18 }
 0x7e5   : > { %13735 = vmatprep.subr.mxu1 %v14582_v3  ;;  %v4379_v37 = vsub.f32 %v4377_v27, %v4378_v32  ;;  %v4336_v39 = vsub.f32 %v4265_v33, %v4335_v35 }
 0x7e7   : > { %v14539_v19 = vpop.eup %14538  ;;  %v4380_v41 = vand.u32 4294901760, %v4379_v37  ;;  %v4337_v42 = vand.u32 4294901760, %v4336_v39 }
 0x7e8   : > { %v3804_v22 = vsel %vm1963_vm5, %v14539_v19, 0.0 }
 0x7e9   : > { %3805 = vadd.xlane.f32.xlu0 %v3804_v22  ;;  %v4338_v43 = vsub.f32 %v4336_v39, %v4337_v42 }
 0x7eb   : > { %v4339_v44 = vand.u32 4294901760, %v4338_v43 }
 0x872   : > { %v3806_v21 = vpop.xlane.xlu0 %3805 }
 0x873   : > { %14540 = vrcp.f32 %v3806_v21 }
 0x880   : > { %v14541_v26 = vpop.eup %14540 }
 0x881   : > { %v3808_v28 = vmul.f32 %v14541_v26, %v14539_v19 }
 0x883   : > { %v3813_v30 = vsel %vm1963_vm5, %v3808_v28, 0 }
 0x884   : > { %v3881_v31 = vand.u32 4294901760, %v3813_v30 }
 0x886   : > { %v3882_v34 = vsub.f32 %v3813_v30, %v3881_v31  ;;  %13728 = vmatmul.mubr.f32.vlgmr.msra.gmra.mxu1 %v3881_v31 }
 0x887   : > { %13736 = vmatpush3.msra.mxu1 %v3846_v14  ;;  %13737 = vmatprep.mubr.msk.f32.mxu1 %vm14583_vm0, %v14582_v3 }
 0x888   : > { %13745 = vmatprep.subr.mxu1 %v14582_v3  ;;  %v3883_v36 = vand.u32 4294901760, %v3882_v34 }
 0x88a   : > { %13738 = vmatmul.mubr.f32.vlgmr.msra.gmra.mxu1 %v3883_v36  ;;  %v3884_v38 = vsub.f32 %v3882_v34, %v3883_v36 }
 0x88b   : > { %13746 = vmatpush3.msra.mxu1 %v3846_v14  ;;  %13747 = vmatprep.mubr.msk.f32.mxu1 %vm14583_vm0, %v14582_v3 }
 0x88c   : > { %13755 = vmatprep.subr.mxu1 %v14582_v3  ;;  %v3885_v40 = vand.u32 4294901760, %v3884_v38 }
 0x88e   : > { %13723 = vmatmul.mubr.f32.vlgmr.msra.gmra.mxu0 %v3885_v40  ;;  %13748 = vmatmul.mubr.f32.vlgmr.msra.gmra.mxu1 %v3881_v31 }
 0x88f   : > { %13731 = vmatpush3.msra.mxu0 %v3923_v15  ;;  %13756 = vmatpush3.xpose.msra.mxu1 %v4380_v41 }
 0x890   : > { %13732 = vmatprep.mubr.msk.f32.mxu0 %vm14583_vm0, %v14582_v3  ;;  %13740 = vmatprep.subr.mxu0 %v14582_v3 }
 0x891   : > { %13757 = vmatprep.mubr.msk.f32.mxu1 %vm14583_vm0, %v14582_v3  ;;  %13765 = vmatprep.subr.mxu1 %v14582_v3 }
 0x892   : > { %13733 = vmatmul.mubr.f32.vlgmr.msra.gmra.mxu0 %v3882_v34  ;;  %13758 = vmatmul.mubr.f32.vlgmr.msra.gmra.mxu1 %v4335_v35 }
 0x893   : > { %13741 = vmatpush3.msra.mxu0 %v3924_v16  ;;  %13766 = vmatpush3.xpose.msra.mxu1 %v4300_v25 }
 0x894   : > { %13742 = vmatprep.mubr.msk.f32.mxu0 %vm14583_vm0, %v14582_v3  ;;  %13750 = vmatprep.subr.mxu0 %v14582_v3 }
 0x895   : > { %13767 = vmatprep.mubr.msk.f32.mxu1 %vm14583_vm0, %v14582_v3  ;;  %13775 = vmatprep.subr.mxu1 %v14582_v3 }
 0x896   : > { %13743 = vmatmul.mubr.f32.vlgmr.msra.gmra.mxu0 %v3881_v31  ;;  %13768 = vmatmul.mubr.f32.vlgmr.msra.gmra.mxu1 %v4337_v42 }
 0x897   : > { %13751 = vmatpush3.xpose.msra.mxu0 %v4300_v25  ;;  %13776 = vmatpush3.xpose.msra.mxu1 %v4300_v25 }
 0x898   : > { %13752 = vmatprep.mubr.msk.f32.mxu0 %vm14583_vm0, %v14582_v3  ;;  %13760 = vmatprep.subr.mxu0 %v14582_v3 }
 0x899   : > { %13777 = vmatprep.mubr.msk.f32.mxu1 %vm14583_vm0, %v14582_v3  ;;  %13785 = vmatprep.subr.mxu1 %v14582_v3 }
 0x89a   : > { %13753 = vmatmul.mubr.f32.vlgmr.msra.gmra.mxu0 %v4339_v44  ;;  %13778 = vmatmul.mubr.f32.vlgmr.msra.gmra.mxu1 %v4335_v35 }
 0x89b   : > { %13761 = vmatpush3.xpose.msra.mxu0 %v4377_v27  ;;  %13762 = vmatprep.mubr.msk.f32.mxu0 %vm14583_vm0, %v14582_v3 }
 0x89c   : > { %13770 = vmatprep.subr.mxu0 %v14582_v3  ;;  %13787 = vmatprep.mubr.msk.f32.mxu1 %vm14583_vm0, %v14582_v3 }
 0x89e   : > { %13763 = vmatmul.mubr.f32.vlgmr.msra.gmra.mxu0 %v4336_v39  ;;  %v5197_v39 = vld [vmem:[%s15944_s5 + $0x10] sm:$0xf] }
 0x89f   : > { %13771 = vmatpush3.xpose.msra.mxu0 %v4378_v32  ;;  %13772 = vmatprep.mubr.msk.f32.mxu0 %vm14583_vm0, %v14582_v3  ;;  %v5209_v40 = vsel %vm1031_vm2, %v5197_v39, 0 }
 0x8a0   : > { %13780 = vmatprep.subr.mxu0 %v14582_v3  ;;  %v15054_v41 = vand.u32 4294901760, %v5209_v40 }
 0x8a2   : > { %13773 = vmatmul.mubr.f32.vlgmr.msra.gmra.mxu0 %v4335_v35  ;;  %v15057_v42 = vsub.f32 %v5209_v40, %v15054_v41 }
 0x8a3   : > { %13782 = vmatprep.mubr.msk.f32.mxu0 %vm14583_vm0, %v14582_v3 }
 0x8a4   : > { %v5318_v43 = vand.u32 4294901760, %v15057_v42 }
 0x8a6   : > { %v5319_v44 = vsub.f32 %v15057_v42, %v5318_v43 }
 0x946   : > { %v3963_v45 = vpop.f32.mrf.mxu1 }
 0x948   : > { %v13729_v46 = vpop.f32.mrf.mxu1 }
 0x949   : > { %v5196_v46 = vld [vmem:[%s15944_s5 + $0x8] sm:$0xff] }
 0x94a   : > { %v4111_v48 = vpop.f32.mrf.mxu1 }
 0x94c   : > { %v13739_v49 = vpop.f32.mrf.mxu1 }
 0x94e   : > { %v3887_v50 = vpop.f32.mrf.mxu0  ;;  %v4257_v51 = vpop.f32.mrf.mxu1 }
 0x94f   : > { %v3964_v52 = vadd.f32 %v3963_v45, %v3887_v50  ;;  %v5320_v45 = vand.u32 4294901760, %v5319_v44  ;;  %v5195_v50 = vld [vmem:[%s15944_s5] sm:$0xff] }
 0x950   : > { %v13724_v53 = vpop.f32.mrf.mxu0  ;;  %v13749_v54 = vpop.f32.mrf.mxu1 }
 0x952   : > { %v4037_v55 = vpop.f32.mrf.mxu0  ;;  %v4417_v56 = vpop.f32.mrf.mxu1 }
 0x953   : > { %v4038_v59 = vadd.f32 %v4037_v55, %v3964_v52  ;;  %v15077_v52 = vand.u32 4294901760, %v5195_v50 }
 0x954   : > { %v13734_v60 = vpop.f32.mrf.mxu0  ;;  %v13759_v61 = vpop.f32.mrf.mxu1 }
 0x955   : > { %v4112_v62 = vadd.f32 %v4111_v48, %v4038_v59  ;;  %v15069_v48 = vand.u32 4294901760, %v5196_v46  ;;  %v15083_v55 = vsub.f32 %v5195_v50, %v15077_v52 }
 0x956   : > { %v4185_v63 = vpop.f32.mrf.mxu0  ;;  %v4565_v0 = vpop.f32.mrf.mxu1 }
 0x957   : > { %v4186_v1 = vadd.f32 %v4185_v63, %v4112_v62  ;;  %v5332_v60 = vand.u32 4294901760, %v15083_v55 }
 0x958   : > { %v13744_v2 = vpop.f32.mrf.mxu0  ;;  %v13769_v4 = vpop.f32.mrf.mxu1 }
 0x959   : > { %v4258_v5 = vadd.f32 %v4257_v51, %v4186_v1  ;;  %v15075_v51 = vsub.f32 %v5196_v46, %v15069_v48  ;;  %v5333_v63 = vsub.f32 %v15083_v55, %v5332_v60 }
 0x95a   : > { %v4341_v6 = vpop.f32.mrf.mxu0  ;;  %v4711_v7 = vpop.f32.mrf.mxu1 }
 0x95b   : > { %v4418_v10 = vadd.f32 %v4417_v56, %v4341_v6  ;;  %v5325_v54 = vand.u32 4294901760, %v15075_v51  ;;  %v5334_v2 = vand.u32 4294901760, %v5333_v63 }
 0x95c   : > { %v13754_v8 = vpop.f32.mrf.mxu0  ;;  %v13779_v9 = vpop.f32.mrf.mxu1 }
 0x95d   : > { %v5326_v59 = vsub.f32 %v15075_v51, %v5325_v54 }
 0x95e   : > { %v4491_v11 = vpop.f32.mrf.mxu0 }
 0x95f   : > { %v4492_v12 = vadd.f32 %v4491_v11, %v4418_v10  ;;  %v5327_v62 = vand.u32 4294901760, %v5326_v59 }
 0x960   : > { %v13764_v13 = vpop.f32.mrf.mxu0 }
 0x961   : > { %v4566_v14 = vadd.f32 %v4565_v0, %v4492_v12 }
 0x962   : > { %v4639_v15 = vpop.f32.mrf.mxu0 }
 0x963   : > { %v4640_v16 = vadd.f32 %v4639_v15, %v4566_v14 }
 0x964   : > { %v13774_v17 = vpop.f32.mrf.mxu0 }
 0x965   : > { %v4712_v18 = vadd.f32 %v4711_v7, %v4640_v16 }
 0x967   : > { %v4715_v19 = vsel %vm1963_vm5, %v4712_v18, -inf }
 0x968   : > { %4716 = vmax.xlane.f32.xlu1 %v4715_v19 }
 0x9f1   : > { %v4717_v22 = vpop.xlane.xlu1 %4716 }
 0x9f2   : > { %v4718_v21 = vsub.f32 %v4712_v18, %v4717_v22 }
 0x9f4   : > { %v4719_v23 = vmul.f32 1.442695, %v4718_v21 }
 0x9f6   : > { %14542 = vpow2.f32 %v4719_v23 }
 0xa03   : > { %v14543_v24 = vpop.eup %14542 }
 0xa04   : > { %v4721_v25 = vsel %vm1963_vm5, %v14543_v24, 0.0 }
 0xa05   : > { %4722 = vadd.xlane.f32.xlu0 %v4721_v25 }
 0xa1b   : > { %4726 = vrot.lane.b32.xlu0 %v14836_v20, %s15958_s30 }
 0xa1f   : > { %5179 = vrot.lane.b32.xlu0 %v14975_v58, %s15960_s18 }
 0xa23   : > { %5183 = vrot.lane.b32.xlu0 %v4258_v5, %s15959_s19  ;;  %s15975_s19 = smov 15  }
 0xa8e   : > { %v4723_v26 = vpop.xlane.xlu0 %4722 }
 0xa8f   : > { %14544 = vrcp.f32 %v4723_v26 }
 0xa92   : > { %v4727_v27 = vpop.permute.xlu0 %4726 }
 0xa93   : > { %v4763_v28 = vand.u32 4294901760, %v4727_v27 }
 0xa95   : > { %v4840_v29 = vsub.f32 %v4727_v27, %v4763_v28  ;;  %13781 = vmatpush3.msra.mxu0 %v4763_v28 }
 0xa96   : > { %13790 = vmatprep.subr.mxu0 %v14582_v3  ;;  %v5180_v15 = vpop.permute.xlu0 %5179 }
 0xa97   : > { %v4841_v30 = vand.u32 4294901760, %v4840_v29  ;;  %v5190_v17 = vsel %vm1511_vm4, %v14926_v47, %v5180_v15  ;;  %v13000_v15 = vld [vmem:[%s15947_s8] ss:$0 sm:$0xff] }
 0xa99   : > { %v4842_v31 = vsub.f32 %v4840_v29, %v4841_v30 }
 0xa9a   : > { %v5184_v16 = vpop.permute.xlu0 %5183 }
 0xa9b   : > { %v4843_v32 = vand.u32 4294901760, %v4842_v31  ;;  %v5192_v18 = vsel %vm5191_vm6, %v5190_v17, %v5184_v16 }
 0xa9c   : > { %v14545_v33 = vpop.eup %14544 }
 0xa9d   : > { %13786 = vmatpush3.msra.mxu1 %v4843_v32  ;;  %v4725_v20 = vmul.f32 %v14545_v33, %v14543_v24 }
 0xa9e   : > { %13795 = vmatprep.subr.mxu1 %v14582_v3 }
 0xa9f   : > { %v4730_v58 = vsel %vm1963_vm5, %v4725_v20, 0 }
 0xaa0   : > { %v4798_v34 = vand.u32 4294901760, %v4730_v58 }
 0xaa2   : > { %v4799_v35 = vsub.f32 %v4730_v58, %v4798_v34  ;;  %13788 = vmatmul.mubr.f32.vlgmr.msra.gmra.mxu1 %v4798_v34 }
 0xaa3   : > { %13796 = vmatpush3.msra.mxu1 %v4763_v28  ;;  %13797 = vmatprep.mubr.msk.f32.mxu1 %vm14583_vm0, %v14582_v3 }
 0xaa4   : > { %13805 = vmatprep.subr.mxu1 %v14582_v3  ;;  %v4800_v36 = vand.u32 4294901760, %v4799_v35 }
 0xaa6   : > { %13798 = vmatmul.mubr.f32.vlgmr.msra.gmra.mxu1 %v4800_v36  ;;  %v4801_v37 = vsub.f32 %v4799_v35, %v4800_v36 }
 0xaa7   : > { %13806 = vmatpush3.msra.mxu1 %v4763_v28  ;;  %13807 = vmatprep.mubr.msk.f32.mxu1 %vm14583_vm0, %v14582_v3 }
 0xaa8   : > { %v4802_v38 = vand.u32 4294901760, %v4801_v37  ;;  %13819 = vmatprep.subr.mxu1 %v14582_v3 }
 0xaaa   : > { %13783 = vmatmul.mubr.f32.vlgmr.msra.gmra.mxu0 %v4802_v38  ;;  %13808 = vmatmul.mubr.f32.vlgmr.msra.gmra.mxu1 %v4798_v34 }
 0xaab   : > { %13791 = vmatpush3.msra.mxu0 %v4840_v29  ;;  %13792 = vmatprep.mubr.msk.f32.mxu0 %vm14583_vm0, %v14582_v3 }
 0xaac   : > { %13800 = vmatprep.subr.mxu0 %v14582_v3  ;;  %13825 = vmatprep.mubr.msk.f32.mxu1 %vm14583_vm0, %v14582_v3 }
 0xaad   : > { %13820 = vmatpush3.msra.mxu1 %v5320_v45 }
 0xaae   : > { %13793 = vmatmul.mubr.f32.vlgmr.msra.gmra.mxu0 %v4799_v35  ;;  %13821 = vmatprep.subr.mxu1 %v14582_v3 }
 0xaaf   : > { %13801 = vmatpush3.msra.mxu0 %v4841_v30  ;;  %13802 = vmatprep.mubr.msk.f32.mxu0 %vm14583_vm0, %v14582_v3  ;;  %v12998_v30 = vld [vmem:[%s15945_s6] ss:$0 sm:$0xff] }
 0xab0   : > { %13810 = vmatprep.subr.mxu0 %v14582_v3  ;;  %13822 = vmatpush3.msra.mxu1 %v5327_v62 }
 0xab1   : > { %13823 = vmatprep.subr.mxu1 %v14582_v3 }
 0xab2   : > { %13803 = vmatmul.mubr.f32.vlgmr.msra.gmra.mxu0 %v4798_v34  ;;  %13824 = vmatpush3.msra.mxu1 %v5334_v2 }
 0xab3   : > { %13816 = vmatprep.mubr.msk.f32.mxu0 %vm14583_vm0, %v14582_v3  ;;  %13811 = vmatpush3.msra.mxu0 %v15054_v41 }
 0xab4   : > { %13812 = vmatprep.subr.mxu0 %v14582_v3  ;;  %13837 = vmatprep.subr.mxu1 %v14582_v3 }
 0xab5   : > { %13813 = vmatpush3.msra.mxu0 %v15069_v48 }
 0xab6   : > { %13814 = vmatprep.subr.mxu0 %v14582_v3 }
 0xab7   : > { %13815 = vmatpush3.msra.mxu0 %v15077_v52 }
 0xab8   : > { %13828 = vmatprep.subr.mxu0 %v14582_v3 }
 0xb62   : > { %v4880_v49 = vpop.f32.mrf.mxu1 }
 0xb64   : > { %v13789_v53 = vpop.f32.mrf.mxu1 }
 0xb65   : > { %v5715_v53 = vld [vmem:[%s15950_s11 + $0x8] sm:$0xff] }
 0xb66   : > { %v5028_v56 = vpop.f32.mrf.mxu1 }
 0xb68   : > { %v13799_v61 = vpop.f32.mrf.mxu1 }
 0xb6a   : > { %v4804_v0 = vpop.f32.mrf.mxu0  ;;  %v5174_v1 = vpop.f32.mrf.mxu1 }
 0xb6b   : > { %v4881_v6 = vadd.f32 %v4880_v49, %v4804_v0 }
 0xb6c   : > { %v13784_v4 = vpop.f32.mrf.mxu0  ;;  %v13809_v5 = vpop.f32.mrf.mxu1 }
 0xb6e   : > { %v4954_v7 = vpop.f32.mrf.mxu0 }
 0xb6f   : > { %v4955_v8 = vadd.f32 %v4954_v7, %v4881_v6 }
 0xb70   : > { %v13794_v9 = vpop.f32.mrf.mxu0 }
 0xb71   : > { %v5029_v10 = vadd.f32 %v5028_v56, %v4955_v8 }
 0xb72   : > { %v5102_v11 = vpop.f32.mrf.mxu0 }
 0xb73   : > { %v5103_v12 = vadd.f32 %v5102_v11, %v5029_v10 }
 0xb74   : > { %v13804_v13 = vpop.f32.mrf.mxu0 }
 0xb75   : > { %v5175_v14 = vadd.f32 %v5174_v1, %v5103_v12  ;;  %v12999_v13 = vld [vmem:[%s15946_s7] ss:$0 sm:$0xff] }
 0xb77   : > { %5187 = vrot.lane.b32.xlu1 %v5175_v14, %s15962_s29 }
 0xbe9   : > { %v5188_v19 = vpop.permute.xlu1 %5187 }
 0xbea   : > { %v5194_v22 = vsel %vm5193_vm7, %v5192_v18, %v5188_v19 }
 0xbeb   : > { %v5206_v21 = vsel %vm1027_vm3, %v5194_v22, 0 }
 0xbec   : > { %v5279_v23 = vand.u32 4294901760, %v5206_v21 }
 0xbee   : > { %v5280_v24 = vsub.f32 %v5206_v21, %v5279_v23  ;;  %13826 = vmatmul.mubr.f32.vlgmr.msra.gmra.mxu1 %v5279_v23 }
 0xbef   : > { %13838 = vmatpush3.msra.mxu1 %v15054_v41  ;;  %13843 = vmatprep.mubr.msk.f32.mxu1 %vm14583_vm0, %v14582_v3 }
 0xbf0   : > { %13839 = vmatprep.subr.mxu1 %v14582_v3  ;;  %v5281_v25 = vand.u32 4294901760, %v5280_v24 }
 0xbf1   : > { %13840 = vmatpush3.msra.mxu1 %v15069_v48 }
 0xbf2   : > { %13841 = vmatprep.subr.mxu1 %v14582_v3  ;;  %v5282_v47 = vsub.f32 %v5280_v24, %v5281_v25 }
 0xbf3   : > { %13842 = vmatpush3.msra.mxu1 %v15077_v52 }
 0xbf4   : > { %13844 = vmatmul.mubr.f32.vlgmr.msra.gmra.mxu1 %v5281_v25  ;;  %13855 = vmatprep.subr.mxu1 %v14582_v3  ;;  %v5283_v26 = vand.u32 4294901760, %v5282_v47  ;;  %v6206_v25 = vld [vmem:[%s15952_s13 + $0x18] sm:$0xff] }
 0xbf5   : > { %13856 = vmatpush3.msra.mxu1 %v15054_v41  ;;  %13861 = vmatprep.mubr.msk.f32.mxu1 %vm14583_vm0, %v14582_v3  ;;  %v15223_v47 = vand.u32 4294901760, %v6206_v25 }
 0xbf6   : > { %13857 = vmatprep.subr.mxu1 %v14582_v3  ;;  %13817 = vmatmul.mubr.f32.vlgmr.msra.gmra.mxu0 %v5283_v26  ;;  %v6205_v26 = vld [vmem:[%s15952_s13 + $0x10] sm:$0xff] }
 0xbf7   : > { %13829 = vmatpush3.msra.mxu0 %v15057_v42  ;;  %13858 = vmatpush3.msra.mxu1 %v15069_v48 }
 0xbf8   : > { %13830 = vmatprep.subr.mxu0 %v14582_v3  ;;  %13859 = vmatprep.subr.mxu1 %v14582_v3 }
 0xbf9   : > { %13831 = vmatpush3.msra.mxu0 %v15075_v51  ;;  %13860 = vmatpush3.msra.mxu1 %v15077_v52  ;;  %v5716_v52 = vld [vmem:[%s15950_s11 + $0x10] sm:$0xf] }
 0xbfa   : > { %13832 = vmatprep.subr.mxu0 %v14582_v3  ;;  %13862 = vmatmul.mubr.f32.vlgmr.msra.gmra.mxu1 %v5279_v23 }
 0xbfb   : > { %13833 = vmatpush3.msra.mxu0 %v15083_v55  ;;  %13834 = vmatprep.mubr.msk.f32.mxu0 %vm14583_vm0, %v14582_v3  ;;  %v5760_v55 = vand.u32 4294901760, %v5715_v53 }
 0xbfc   : > { %13835 = vmatmul.mubr.f32.vlgmr.msra.gmra.mxu0 %v5280_v24  ;;  %13846 = vmatprep.subr.mxu0 %v14582_v3 }
 0xbfd   : > { %13847 = vmatpush3.msra.mxu0 %v5318_v43  ;;  %13852 = vmatprep.mubr.msk.f32.mxu0 %vm14583_vm0, %v14582_v3 }
 0xbfe   : > { %13848 = vmatprep.subr.mxu0 %v14582_v3  ;;  %13873 = vmatprep.subr.mxu1 %v14582_v3 }
 0xbff   : > { %13849 = vmatpush3.msra.mxu0 %v5325_v54  ;;  %13879 = vmatprep.mubr.msk.f32.mxu1 %vm14583_vm0, %v14582_v3  ;;  %v5728_v54 = vsel %vm1031_vm2, %v5716_v52, 0 }
 0xc00   : > { %13850 = vmatprep.subr.mxu0 %v14582_v3  ;;  %v5757_v59 = vand.u32 4294901760, %v5728_v54 }
 0xc01   : > { %13851 = vmatpush3.msra.mxu0 %v5332_v60  ;;  %v15157_v60 = vsub.f32 %v5715_v53, %v5760_v55 }
 0xc02   : > { %13853 = vmatmul.mubr.f32.vlgmr.msra.gmra.mxu0 %v5279_v23  ;;  %13864 = vmatprep.subr.mxu0 %v14582_v3  ;;  %v15161_v62 = vsub.f32 %v5728_v54, %v5757_v59 }
 0xc03   : > { %13870 = vmatprep.mubr.msk.f32.mxu0 %vm14583_vm0, %v14582_v3  ;;  %13865 = vmatpush3.msra.mxu0 %v5757_v59  ;;  %v5844_v63 = vand.u32 4294901760, %v15157_v60 }
 0xc04   : > { %13866 = vmatprep.subr.mxu0 %v14582_v3  ;;  %v5837_v1 = vand.u32 4294901760, %v15161_v62 }
 0xc05   : > { %13867 = vmatpush3.msra.mxu0 %v5760_v55  ;;  %v5845_v2 = vsub.f32 %v15157_v60, %v5844_v63 }
 0xc06   : > { %13868 = vmatprep.subr.mxu0 %v14582_v3  ;;  %v5838_v4 = vsub.f32 %v15161_v62, %v5837_v1 }
 0xc07   : > { %v5846_v7 = vand.u32 4294901760, %v5845_v2 }
 0xc08   : > { %v5839_v6 = vand.u32 4294901760, %v5838_v4 }
 0xc0a   : > { %13874 = vmatpush3.msra.mxu1 %v5839_v6 }
 0xc0b   : > { %13875 = vmatprep.subr.mxu1 %v14582_v3 }
 0xc0c   : > { %13876 = vmatpush3.msra.mxu1 %v5846_v7 }
 0xc0d   : > { %13877 = vmatprep.subr.mxu1 %v14582_v3 }
 0xcae   : > { %v5371_v27 = vpop.f32.mrf.mxu1 }
 0xcb0   : > { %v13827_v28 = vpop.f32.mrf.mxu1 }
 0xcb1   : > { %v15231_v28 = vand.u32 4294901760, %v6205_v26 }
 0xcb4   : > { %v5525_v29 = vpop.f32.mrf.mxu1 }
 0xcb6   : > { %v13845_v31 = vpop.f32.mrf.mxu1  ;;  %v5285_v32 = vpop.f32.mrf.mxu0 }
 0xcb7   : > { %v5286_v33 = vadd.f32 %v12998_v30, %v5285_v32  ;;  %v15240_v31 = vsub.f32 %v6205_v26, %v15231_v28 }
 0xcb8   : > { %v13818_v20 = vpop.f32.mrf.mxu0 }
 0xcb9   : > { %v5372_v58 = vadd.f32 %v5371_v27, %v5286_v33  ;;  %v15229_v27 = vsub.f32 %v6206_v25, %v15223_v47  ;;  %v6203_v33 = vld [vmem:[%s15952_s13] sm:$0xff] }
 0xcba   : > { %v5679_v34 = vpop.f32.mrf.mxu1 }
 0xcbb   : > { %v6324_v30 = vand.u32 4294901760, %v15229_v27 }
 0xcbc   : > { %v5449_v35 = vpop.f32.mrf.mxu0  ;;  %v13863_v36 = vpop.f32.mrf.mxu1 }
 0xcbd   : > { %v5450_v37 = vadd.f32 %v5449_v35, %v5372_v58  ;;  %v6325_v20 = vsub.f32 %v15229_v27, %v6324_v30  ;;  %v6331_v58 = vand.u32 4294901760, %v15240_v31  ;;  %v15256_v35 = vand.u32 4294901760, %v6203_v33 }
 0xcbe   : > { %v13836_v38 = vpop.f32.mrf.mxu0 }
 0xcbf   : > { %v5526_v39 = vadd.f32 %v5525_v29, %v5450_v37  ;;  %v6204_v29 = vld [vmem:[%s15952_s13 + $0x8] sm:$0xff]  ;;  %v6326_v36 = vand.u32 4294901760, %v6325_v20  ;;  %v6332_v37 = vsub.f32 %v15240_v31, %v6331_v58 }
 0xcc0   : > { %v15242_v32 = vand.u32 4294901760, %v6204_v29 }
 0xcc2   : > { %v5605_v40 = vpop.f32.mrf.mxu0 }
 0xcc3   : > { %v5606_v41 = vadd.f32 %v5605_v40, %v5526_v39  ;;  %v15265_v39 = vsub.f32 %v6203_v33, %v15256_v35  ;;  %v6333_v40 = vand.u32 4294901760, %v6332_v37  ;;  %v13006_v37 = vld [vmem:[%s15942_s3 + $0x20] sm:$0xff] }
 0xcc4   : > { %v13854_v42 = vpop.f32.mrf.mxu0 }
 0xcc5   : > { %v5680_v43 = vadd.f32 %v5679_v34, %v5606_v41  ;;  %v15254_v34 = vsub.f32 %v6204_v29, %v15242_v32  ;;  %v6345_v42 = vand.u32 4294901760, %v15265_v39 }
 0xcc7   : > { %v5683_v44 = vadd.f32 %v5680_v43, %v14790_v57  ;;  %v5714_v57 = vld [vmem:[%s15950_s11] sm:$0xff]  ;;  %v6338_v38 = vand.u32 4294901760, %v15254_v34 }
 0xcc8   : > { %v5763_v56 = vand.u32 4294901760, %v5714_v57 }
 0xcc9   : > { %v5686_v45 = vsel %vm1027_vm3, %v5683_v44, 0.0  ;;  %v6339_v41 = vsub.f32 %v15254_v34, %v6338_v38 }
 0xcca   : > { %5687 = vadd.xlane.f32.xlu0 %v5686_v45  ;;  %v15159_v61 = vsub.f32 %v5714_v57, %v5763_v56  ;;  %13869 = vmatpush3.msra.mxu0 %v5763_v56 }
 0xccb   : > { %13882 = vmatprep.subr.mxu0 %v14582_v3  ;;  %v6340_v43 = vand.u32 4294901760, %v6339_v41 }
 0xccc   : > { %v5851_v0 = vand.u32 4294901760, %v15159_v61 }
 0xcce   : > { %v5852_v5 = vsub.f32 %v15159_v61, %v5851_v0 }
 0xcd0   : > { %v5853_v8 = vand.u32 4294901760, %v5852_v5 }
 0xcd2   : > { %13878 = vmatpush3.msra.mxu1 %v5853_v8 }
 0xcd3   : > { %13891 = vmatprep.subr.mxu1 %v14582_v3 }
 0xd53   : > { %v5688_v46 = vpop.xlane.xlu0 %5687 }
 0xd54   : > { %v5690_v48 = vmul.f32 0.05, %v5688_v46 }
 0xd56   : > { %v5691_v49 = vsub.f32 %v5683_v44, %v5690_v48  ;;  %v6346_v44 = vsub.f32 %v15265_v39, %v6345_v42 }
 0xd58   : > { %v5692_v50 = vmul.f32 %v5691_v49, %v5691_v49  ;;  %v6347_v45 = vand.u32 4294901760, %v6346_v44 }
 0xd5a   : > { %v5693_v51 = vsel %vm1027_vm3, %v5692_v50, 0.0  ;;  %v13001_v50 = vld [vmem:[%s15951_s12] ss:$0 sm:$0xff] }
 0xd5b   : > { %5694 = vadd.xlane.f32.xlu1 %v5693_v51 }
 0xde4   : > { %v5695_v9 = vpop.xlane.xlu1 %5694 }
 0xde5   : > { %v5696_v10 = vmul.f32 0.05, %v5695_v9 }
 0xde7   : > { %v5697_v11 = vadd.f32 1e-05, %v5696_v10 }
 0xde9   : > { %14546 = vrsqrt.f32 %v5697_v11 }
 0xdf6   : > { %v14547_v12 = vpop.eup %14546 }
 0xdf7   : > { %v5699_v14 = vmul.f32 %v14547_v12, %v5691_v49 }
 0xdf9   : > { %v5706_v16 = vmul.f32 %v12999_v13, %v5699_v14 }
 0xdfb   : > { %v15185_v17 = vadd.f32 %v13000_v15, %v5706_v16 }
 0xdfd   : > { %v5725_v18 = vsel %vm1027_vm3, %v15185_v17, 0 }
 0xdfe   : > { %v5798_v19 = vand.u32 4294901760, %v5725_v18 }
 0xe00   : > { %v5799_v22 = vsub.f32 %v5725_v18, %v5798_v19  ;;  %13880 = vmatmul.mubr.f32.vlgmr.msra.gmra.mxu1 %v5798_v19  ;;  %v13002_v18 = vld [vmem:[%s15953_s14] ss:$0 sm:$0xff] }
 0xe01   : > { %13892 = vmatpush3.msra.mxu1 %v5757_v59  ;;  %13897 = vmatprep.mubr.msk.f32.mxu1 %vm14583_vm0, %v14582_v3 }
 0xe02   : > { %13893 = vmatprep.subr.mxu1 %v14582_v3  ;;  %v5800_v21 = vand.u32 4294901760, %v5799_v22 }
 0xe03   : > { %13894 = vmatpush3.msra.mxu1 %v5760_v55 }
 0xe04   : > { %13895 = vmatprep.subr.mxu1 %v14582_v3  ;;  %v5801_v23 = vsub.f32 %v5799_v22, %v5800_v21 }
 0xe05   : > { %13896 = vmatpush3.msra.mxu1 %v5763_v56 }
 0xe06   : > { %13898 = vmatmul.mubr.f32.vlgmr.msra.gmra.mxu1 %v5800_v21  ;;  %13909 = vmatprep.subr.mxu1 %v14582_v3  ;;  %v5802_v24 = vand.u32 4294901760, %v5801_v23 }
 0xe07   : > { %13910 = vmatpush3.msra.mxu1 %v5757_v59  ;;  %13915 = vmatprep.mubr.msk.f32.mxu1 %vm14583_vm0, %v14582_v3 }
 0xe08   : > { %13911 = vmatprep.subr.mxu1 %v14582_v3  ;;  %13871 = vmatmul.mubr.f32.vlgmr.msra.gmra.mxu0 %v5802_v24 }
 0xe09   : > { %13883 = vmatpush3.msra.mxu0 %v15161_v62  ;;  %13912 = vmatpush3.msra.mxu1 %v5760_v55 }
 0xe0a   : > { %13884 = vmatprep.subr.mxu0 %v14582_v3  ;;  %13913 = vmatprep.subr.mxu1 %v14582_v3 }
 0xe0b   : > { %13885 = vmatpush3.msra.mxu0 %v15157_v60  ;;  %13914 = vmatpush3.msra.mxu1 %v5763_v56 }
 0xe0c   : > { %13886 = vmatprep.subr.mxu0 %v14582_v3  ;;  %13916 = vmatmul.mubr.f32.vlgmr.msra.gmra.mxu1 %v5798_v19 }
 0xe0d   : > { %13887 = vmatpush3.msra.mxu0 %v15159_v61  ;;  %13888 = vmatprep.mubr.msk.f32.mxu0 %vm14583_vm0, %v14582_v3 }
 0xe0e   : > { %13889 = vmatmul.mubr.f32.vlgmr.msra.gmra.mxu0 %v5799_v22  ;;  %13900 = vmatprep.subr.mxu0 %v14582_v3 }
 0xe0f   : > { %13901 = vmatpush3.msra.mxu0 %v5837_v1  ;;  %13906 = vmatprep.mubr.msk.f32.mxu0 %vm14583_vm0, %v14582_v3 }
 0xe10   : > { %13902 = vmatprep.subr.mxu0 %v14582_v3  ;;  %13929 = vmatprep.subr.mxu1 %v14582_v3 }
 0xe11   : > { %13903 = vmatpush3.msra.mxu0 %v5844_v63  ;;  %13937 = vmatprep.mubr.msk.f32.mxu1 %vm14583_vm0, %v14582_v3 }
 0xe12   : > { %13904 = vmatprep.subr.mxu0 %v14582_v3  ;;  %13930 = vmatpush3.msra.mxu1 %v6326_v36  ;;  %v13007_v36 = vld [vmem:[%s15942_s3 + $0x28] sm:$0xf] }
 0xe13   : > { %13905 = vmatpush3.msra.mxu0 %v5851_v0  ;;  %13931 = vmatprep.subr.mxu1 %v14582_v3 }
 0xe14   : > { %13907 = vmatmul.mubr.f32.vlgmr.msra.gmra.mxu0 %v5798_v19  ;;  %13918 = vmatprep.subr.mxu0 %v14582_v3 }
 0xe15   : > { %13926 = vmatprep.mubr.msk.f32.mxu0 %vm14583_vm0, %v14582_v3  ;;  %13919 = vmatpush3.msra.mxu0 %v15223_v47 }
 0xe16   : > { %13920 = vmatprep.subr.mxu0 %v14582_v3  ;;  %13932 = vmatpush3.msra.mxu1 %v6333_v40 }
 0xe17   : > { %13921 = vmatpush3.msra.mxu0 %v15231_v28  ;;  %13933 = vmatprep.subr.mxu1 %v14582_v3 }
 0xe18   : > { %13922 = vmatprep.subr.mxu0 %v14582_v3  ;;  %13934 = vmatpush3.msra.mxu1 %v6340_v43 }
 0xe19   : > { %13923 = vmatpush3.msra.mxu0 %v15242_v32  ;;  %13935 = vmatprep.subr.mxu1 %v14582_v3 }
 0xe1a   : > { %13924 = vmatprep.subr.mxu0 %v14582_v3  ;;  %13936 = vmatpush3.msra.mxu1 %v6347_v45 }
 0xe1b   : > { %13925 = vmatpush3.msra.mxu0 %v15256_v35  ;;  %13951 = vmatprep.subr.mxu1 %v14582_v3 }
 0xe1c   : > { %13940 = vmatprep.subr.mxu0 %v14582_v3 }
 0xec0   : > { %v5890_v46 = vpop.f32.mrf.mxu1 }
 0xec2   : > { %v13881_v48 = vpop.f32.mrf.mxu1 }
 0xec6   : > { %v6044_v49 = vpop.f32.mrf.mxu1 }
 0xec8   : > { %v13899_v51 = vpop.f32.mrf.mxu1  ;;  %v5804_v52 = vpop.f32.mrf.mxu0 }
 0xec9   : > { %v5805_v53 = vadd.f32 %v13001_v50, %v5804_v52 }
 0xeca   : > { %v13872_v57 = vpop.f32.mrf.mxu0 }
 0xecb   : > { %v5891_v54 = vadd.f32 %v5890_v46, %v5805_v53 }
 0xecc   : > { %v6198_v55 = vpop.f32.mrf.mxu1 }
 0xece   : > { %v5968_v56 = vpop.f32.mrf.mxu0  ;;  %v13917_v59 = vpop.f32.mrf.mxu1 }
 0xecf   : > { %v5969_v60 = vadd.f32 %v5968_v56, %v5891_v54 }
 0xed0   : > { %v13890_v61 = vpop.f32.mrf.mxu0 }
 0xed1   : > { %v6045_v62 = vadd.f32 %v6044_v49, %v5969_v60  ;;  %v13003_v60 = vld [vmem:[%s15948_s9] ss:$0 sm:$0xff] }
 0xed4   : > { %v6124_v63 = vpop.f32.mrf.mxu0 }
 0xed5   : > { %v6125_v0 = vadd.f32 %v6124_v63, %v6045_v62  ;;  %v13004_v62 = vld [vmem:[%s15949_s10] ss:$0 sm:$0xff] }
 0xed6   : > { %v13908_v1 = vpop.f32.mrf.mxu0 }
 0xed7   : > { %v6199_v2 = vadd.f32 %v6198_v55, %v6125_v0 }
 0xed9   : > { %v6202_v4 = vmax.f32 %v6199_v2, 0.0 }
 0xedb   : > { %v6216_v5 = vsel %vm6214_vm8, %v6202_v4, 0 }
 0xedc   : > { %v6287_v6 = vand.u32 4294901760, %v6216_v5 }
 0xede   : > { %v6288_v7 = vsub.f32 %v6216_v5, %v6287_v6  ;;  %13938 = vmatmul.mubr.f32.vlgmr.msra.gmra.mxu1 %v6287_v6 }
 0xedf   : > { %13952 = vmatpush3.msra.mxu1 %v15223_v47  ;;  %13959 = vmatprep.mubr.msk.f32.mxu1 %vm14583_vm0, %v14582_v3 }
 0xee0   : > { %13953 = vmatprep.subr.mxu1 %v14582_v3  ;;  %v6289_v8 = vand.u32 4294901760, %v6288_v7 }
 0xee1   : > { %13954 = vmatpush3.msra.mxu1 %v15231_v28 }
 0xee2   : > { %13955 = vmatprep.subr.mxu1 %v14582_v3  ;;  %v6290_v9 = vsub.f32 %v6288_v7, %v6289_v8 }
 0xee3   : > { %13956 = vmatpush3.msra.mxu1 %v15242_v32 }
 0xee4   : > { %13957 = vmatprep.subr.mxu1 %v14582_v3  ;;  %v6291_v10 = vand.u32 4294901760, %v6290_v9 }
 0xee5   : > { %13958 = vmatpush3.msra.mxu1 %v15256_v35 }
 0xee6   : > { %13960 = vmatmul.mubr.f32.vlgmr.msra.gmra.mxu1 %v6289_v8  ;;  %13973 = vmatprep.subr.mxu1 %v14582_v3 }
 0xee7   : > { %13927 = vmatmul.mubr.f32.vlgmr.msra.gmra.mxu0 %v6291_v10  ;;  %13974 = vmatpush3.msra.mxu1 %v15223_v47 }
 0xee8   : > { %13941 = vmatpush3.msra.mxu0 %v15229_v27  ;;  %13975 = vmatprep.subr.mxu1 %v14582_v3 }
 0xee9   : > { %13942 = vmatprep.subr.mxu0 %v14582_v3  ;;  %13976 = vmatpush3.msra.mxu1 %v15231_v28 }
 0xeea   : > { %13943 = vmatpush3.msra.mxu0 %v15240_v31  ;;  %13977 = vmatprep.subr.mxu1 %v14582_v3 }
 0xeeb   : > { %13944 = vmatprep.subr.mxu0 %v14582_v3  ;;  %13978 = vmatpush3.msra.mxu1 %v15242_v32 }
 0xeec   : > { %13945 = vmatpush3.msra.mxu0 %v15254_v34  ;;  %13979 = vmatprep.subr.mxu1 %v14582_v3 }
 0xeed   : > { %13946 = vmatprep.subr.mxu0 %v14582_v3  ;;  %13948 = vmatprep.mubr.msk.f32.mxu0 %vm14583_vm0, %v14582_v3 }
 0xeee   : > { %13947 = vmatpush3.msra.mxu0 %v15265_v39  ;;  %13980 = vmatpush3.msra.mxu1 %v15256_v35  ;;  %v6781_v39 = vand.u32 4294901760, %v13006_v37 }
 0xeef   : > { %13981 = vmatprep.mubr.msk.f32.mxu1 %vm14583_vm0, %v14582_v3  ;;  %13949 = vmatmul.mubr.f32.vlgmr.msra.gmra.mxu0 %v6288_v7 }
 0xef0   : > { %13962 = vmatprep.subr.mxu0 %v14582_v3  ;;  %13982 = vmatmul.mubr.f32.vlgmr.msra.gmra.mxu1 %v6287_v6 }
 0xef1   : > { %13963 = vmatpush3.msra.mxu0 %v6324_v30  ;;  %13970 = vmatprep.mubr.msk.f32.mxu0 %vm14583_vm0, %v14582_v3 }
 0xef2   : > { %13964 = vmatprep.subr.mxu0 %v14582_v3  ;;  %13993 = vmatprep.subr.mxu1 %v14582_v3 }
 0xef3   : > { %13965 = vmatpush3.msra.mxu0 %v6331_v58  ;;  %13999 = vmatprep.mubr.msk.f32.mxu1 %vm14583_vm0, %v14582_v3 }
 0xef4   : > { %13966 = vmatprep.subr.mxu0 %v14582_v3 }
 0xef5   : > { %13967 = vmatpush3.msra.mxu0 %v6338_v38  ;;  %v6749_v38 = vsel %vm1031_vm2, %v13007_v36, 0 }
 0xef6   : > { %13968 = vmatprep.subr.mxu0 %v14582_v3  ;;  %v6778_v41 = vand.u32 4294901760, %v6749_v38 }
 0xef7   : > { %13969 = vmatpush3.msra.mxu0 %v6345_v42  ;;  %v15348_v42 = vsub.f32 %v13006_v37, %v6781_v39 }
 0xef8   : > { %13971 = vmatmul.mubr.f32.vlgmr.msra.gmra.mxu0 %v6287_v6  ;;  %13984 = vmatprep.subr.mxu0 %v14582_v3  ;;  %v15352_v44 = vsub.f32 %v6749_v38, %v6778_v41 }
 0xef9   : > { %13990 = vmatprep.mubr.msk.f32.mxu0 %vm14583_vm0, %v14582_v3  ;;  %13985 = vmatpush3.msra.mxu0 %v6778_v41  ;;  %v6865_v45 = vand.u32 4294901760, %v15348_v42 }
 0xefa   : > { %13986 = vmatprep.subr.mxu0 %v14582_v3  ;;  %v6858_v48 = vand.u32 4294901760, %v15352_v44 }
 0xefb   : > { %13987 = vmatpush3.msra.mxu0 %v6781_v39  ;;  %v6866_v49 = vsub.f32 %v15348_v42, %v6865_v45 }
 0xefc   : > { %13988 = vmatprep.subr.mxu0 %v14582_v3  ;;  %v6859_v50 = vsub.f32 %v15352_v44, %v6858_v48 }
 0xefd   : > { %v6867_v53 = vand.u32 4294901760, %v6866_v49 }
 0xefe   : > { %v6860_v52 = vand.u32 4294901760, %v6859_v50 }
 0xf00   : > { %13994 = vmatpush3.msra.mxu1 %v6860_v52 }
 0xf01   : > { %13995 = vmatprep.subr.mxu1 %v14582_v3 }
 0xf02   : > { %13996 = vmatpush3.msra.mxu1 %v6867_v53 }
 0xf03   : > { %13997 = vmatprep.subr.mxu1 %v14582_v3 }
 0xf9e   : > { %v6384_v11 = vpop.f32.mrf.mxu1 }
 0xfa0   : > { %v13939_v12 = vpop.f32.mrf.mxu1 }
 0xfa6   : > { %v6541_v13 = vpop.f32.mrf.mxu1 }
 0xfa7   : > { %v6293_v14 = vpop.f32.mrf.mxu0 }
 0xfa8   : > { %v13961_v15 = vpop.f32.mrf.mxu1  ;;  %v6294_v19 = vadd.f32 %v13002_v18, %v6293_v14 }
 0xfa9   : > { %v13928_v16 = vpop.f32.mrf.mxu0 }
 0xfaa   : > { %v6385_v23 = vadd.f32 %v6384_v11, %v6294_v19  ;;  %v13009_v11 = vld [vmem:[%s15943_s4 + $0x1] ss:$0 sm:$0xff] }
 0xfaf   : > { %v6464_v22 = vpop.f32.mrf.mxu0 }
 0xfb0   : > { %v6699_v21 = vpop.f32.mrf.mxu1  ;;  %v6465_v47 = vadd.f32 %v6464_v22, %v6385_v23 }
 0xfb1   : > { %v13950_v24 = vpop.f32.mrf.mxu0 }
 0xfb2   : > { %v13983_v25 = vpop.f32.mrf.mxu1  ;;  %v6542_v26 = vadd.f32 %v6541_v13, %v6465_v47 }
 0xfb8   : > { %v6624_v27 = vpop.f32.mrf.mxu0 }
 0xfb9   : > { %v6625_v28 = vadd.f32 %v6624_v27, %v6542_v26 }
 0xfba   : > { %v13972_v29 = vpop.f32.mrf.mxu0 }
 0xfbb   : > { %v6700_v30 = vadd.f32 %v6699_v21, %v6625_v28 }
 0xfbd   : > { %v6703_v31 = vadd.f32 %v6700_v30, %v15185_v17  ;;  %v13005_v17 = vld [vmem:[%s15942_s3 + $0x18] sm:$0xff] }
 0xfbe   : > { %v6784_v40 = vand.u32 4294901760, %v13005_v17 }
 0xfbf   : > { %v6706_v32 = vsel %vm1027_vm3, %v6703_v31, 0.0 }
 0xfc0   : > { %6707 = vadd.xlane.f32.xlu0 %v6706_v32  ;;  %v15350_v43 = vsub.f32 %v13005_v17, %v6784_v40  ;;  %13989 = vmatpush3.msra.mxu0 %v6784_v40 }
 0xfc1   : > { %14002 = vmatprep.subr.mxu0 %v14582_v3 }
 0xfc2   : > { %v6872_v46 = vand.u32 4294901760, %v15350_v43 }
 0xfc4   : > { %v6873_v51 = vsub.f32 %v15350_v43, %v6872_v46 }
 0xfc6   : > { %v6874_v57 = vand.u32 4294901760, %v6873_v51 }
 0xfc8   : > { %13998 = vmatpush3.msra.mxu1 %v6874_v57 }
 0xfc9   : > { %14011 = vmatprep.subr.mxu1 %v14582_v3 }
0x1049   : > { %v6708_v33 = vpop.xlane.xlu0 %6707 }
0x104a   : > { %v6709_v20 = vmul.f32 0.05, %v6708_v33 }
0x104c   : > { %v6710_v58 = vsub.f32 %v6703_v31, %v6709_v20 }
0x104e   : > { %v6711_v34 = vmul.f32 %v6710_v58, %v6710_v58 }
0x1050   : > { %v6712_v35 = vsel %vm1027_vm3, %v6711_v34, 0.0 }
0x1051   : > { %6713 = vadd.xlane.f32.xlu0 %v6712_v35 }
0x10da   : > { %v6714_v54 = vpop.xlane.xlu0 %6713 }
0x10db   : > { %v6715_v55 = vmul.f32 0.05, %v6714_v54 }
0x10dd   : > { %v6716_v56 = vadd.f32 1e-05, %v6715_v55 }
0x10df   : > { %14548 = vrsqrt.f32 %v6716_v56 }
0x10ec   : > { %v14549_v59 = vpop.eup %14548 }
0x10ed   : > { %v6718_v61 = vmul.f32 %v14549_v59, %v6710_v58 }
0x10ef   : > { %v6725_v63 = vmul.f32 %v13003_v60, %v6718_v61 }
0x10f1   : > { %v15376_v0 = vadd.f32 %v13004_v62, %v6725_v63 }
0x10f3   : > { %v6746_v1 = vsel %vm1027_vm3, %v15376_v0, 0 }
0x10f4   : > { %v6819_v2 = vand.u32 4294901760, %v6746_v1 }
0x10f6   : > { %v6820_v4 = vsub.f32 %v6746_v1, %v6819_v2  ;;  %14000 = vmatmul.mubr.f32.vlgmr.msra.gmra.mxu1 %v6819_v2 }
0x10f7   : > { %14012 = vmatpush3.msra.mxu1 %v6778_v41  ;;  %14017 = vmatprep.mubr.msk.f32.mxu1 %vm14583_vm0, %v14582_v3 }
0x10f8   : > { %14013 = vmatprep.subr.mxu1 %v14582_v3  ;;  %v6821_v5 = vand.u32 4294901760, %v6820_v4 }
0x10f9   : > { %14014 = vmatpush3.msra.mxu1 %v6781_v39 }
0x10fa   : > { %14015 = vmatprep.subr.mxu1 %v14582_v3  ;;  %v6822_v6 = vsub.f32 %v6820_v4, %v6821_v5 }
0x10fb   : > { %14016 = vmatpush3.msra.mxu1 %v6784_v40 }
0x10fc   : > { %14018 = vmatmul.mubr.f32.vlgmr.msra.gmra.mxu1 %v6821_v5  ;;  %14029 = vmatprep.subr.mxu1 %v14582_v3  ;;  %v6823_v7 = vand.u32 4294901760, %v6822_v6 }
0x10fd   : > { %14030 = vmatpush3.msra.mxu1 %v6778_v41  ;;  %14035 = vmatprep.mubr.msk.f32.mxu1 %vm14583_vm0, %v14582_v3 }
0x10fe   : > { %14031 = vmatprep.subr.mxu1 %v14582_v3  ;;  %13991 = vmatmul.mubr.f32.vlgmr.msra.gmra.mxu0 %v6823_v7 }
0x10ff   : > { %14003 = vmatpush3.msra.mxu0 %v15352_v44  ;;  %14032 = vmatpush3.msra.mxu1 %v6781_v39 }
0x1100   : > { %14004 = vmatprep.subr.mxu0 %v14582_v3  ;;  %14033 = vmatprep.subr.mxu1 %v14582_v3 }
0x1101   : > { %14005 = vmatpush3.msra.mxu0 %v15348_v42  ;;  %14034 = vmatpush3.msra.mxu1 %v6784_v40 }
0x1102   : > { %14006 = vmatprep.subr.mxu0 %v14582_v3  ;;  %14036 = vmatmul.mubr.f32.vlgmr.msra.gmra.mxu1 %v6819_v2 }
0x1103   : > { %14007 = vmatpush3.msra.mxu0 %v15350_v43  ;;  %14008 = vmatprep.mubr.msk.f32.mxu0 %vm14583_vm0, %v14582_v3 }
0x1104   : > { %14009 = vmatmul.mubr.f32.vlgmr.msra.gmra.mxu0 %v6820_v4  ;;  %14020 = vmatprep.subr.mxu0 %v14582_v3 }
0x1105   : > { %14021 = vmatpush3.msra.mxu0 %v6858_v48  ;;  %14026 = vmatprep.mubr.msk.f32.mxu0 %vm14583_vm0, %v14582_v3 }
0x1106   : > { %14022 = vmatprep.subr.mxu0 %v14582_v3  ;;  %14043 = vmatprep.subr.mxu1 %v14582_v3 }
0x1107   : > { %14023 = vmatpush3.msra.mxu0 %v6865_v45  ;;  %14045 = vmatprep.mubr.msk.f32.mxu1 %vm14583_vm0, %v14582_v3 }
0x1108   : > { %14024 = vmatprep.subr.mxu0 %v14582_v3 }
0x1109   : > { %14025 = vmatpush3.msra.mxu0 %v6872_v46 }
0x110a   : > { %14027 = vmatmul.mubr.f32.vlgmr.msra.gmra.mxu0 %v6819_v2  ;;  %14038 = vmatprep.subr.mxu0 %v14582_v3 }
0x110b   : > { %14040 = vmatprep.mubr.msk.f32.mxu0 %vm14583_vm0, %v14582_v3 }
0x11b6   : > { %v6911_v8 = vpop.f32.mrf.mxu1 }
0x11b8   : > { %v14001_v9 = vpop.f32.mrf.mxu1 }
0x11bc   : > { %v7065_v10 = vpop.f32.mrf.mxu1 }
0x11be   : > { %v14019_v12 = vpop.f32.mrf.mxu1  ;;  %v6825_v13 = vpop.f32.mrf.mxu0 }
0x11bf   : > { %v6826_v14 = vadd.f32 %v13009_v11, %v6825_v13 }
0x11c0   : > { %v13992_v15 = vpop.f32.mrf.mxu0 }
0x11c1   : > { %v6912_v16 = vadd.f32 %v6911_v8, %v6826_v14 }
0x11c2   : > { %v7219_v18 = vpop.f32.mrf.mxu1 }
0x11c4   : > { %v6989_v19 = vpop.f32.mrf.mxu0  ;;  %v14037_v22 = vpop.f32.mrf.mxu1 }
0x11c5   : > { %v6990_v21 = vadd.f32 %v6989_v19, %v6912_v16 }
0x11c6   : > { %v14010_v23 = vpop.f32.mrf.mxu0 }
0x11c7   : > { %v7066_v24 = vadd.f32 %v7065_v10, %v6990_v21 }
0x11ca   : > { %v7145_v25 = vpop.f32.mrf.mxu0 }
0x11cb   : > { %v7146_v47 = vadd.f32 %v7145_v25, %v7066_v24 }
0x11cc   : > { %v14028_v26 = vpop.f32.mrf.mxu0 }
0x11cd   : > { %v15414_v27 = vadd.f32 %v7219_v18, %v7146_v47 }
0x11cf   : > { %7225 = vrot.lane.b32.xlu0 %v15414_v27, %s14585_s20  ;;  %v15421_v28 = vmul.f32 0.4472136, %v15414_v27  ;;  %s15970_s20 = smov 113  }
0x11d1   : > { %v7228_v29 = vsel %vm1511_vm4, %v15421_v28, 0 }
0x11d2   : > { %v7298_v30 = vand.u32 4294901760, %v7228_v29 }
0x11d3   : > { %8143 = vrot.lane.b32.xlu0 %v15414_v27, %s14586_s21  ;;  %s15971_s21 = smov 93  }
0x11d4   : > { %v7299_v31 = vsub.f32 %v7228_v29, %v7298_v30 }
0x11d6   : > { %v7300_v32 = vand.u32 4294901760, %v7299_v31 }
0x11d7   : > { %8141 = vrot.lane.b32.xlu0 %v15421_v28, %s14587_s22  ;;  %s15972_s22 = smov 5  }
0x11d8   : > { %v7301_v58 = vsub.f32 %v7299_v31, %v7300_v32 }
0x11da   : > { %v7302_v36 = vand.u32 4294901760, %v7301_v58 }
0x1241   : > { %v7226_v33 = vpop.permute.xlu0 %7225 }
0x1242   : > { %v7230_v20 = vsel %vm1511_vm4, %v7226_v33, 0 }
0x1243   : > { %v7263_v34 = vand.u32 4294901760, %v7230_v20 }
0x1245   : > { %v7340_v35 = vsub.f32 %v7230_v20, %v7263_v34  ;;  %14039 = vmatpush3.xpose.msra.mxu0 %v7263_v34  ;;  %v8144_v4 = vpop.permute.xlu0 %8143 }
0x1246   : > { %14048 = vmatprep.subr.mxu0 %v14582_v3  ;;  %v8147_v7 = vsel %vm1511_vm4, %v8144_v4, 0 }
0x1247   : > { %v7341_v37 = vand.u32 4294901760, %v7340_v35  ;;  %v8180_v9 = vand.u32 4294901760, %v8147_v7 }
0x1248   : > { %14041 = vmatmul.mubr.f32.vlgmr.msra.gmra.mxu0 %v7302_v36 }
0x1249   : > { %v7342_v17 = vsub.f32 %v7340_v35, %v7341_v37  ;;  %14049 = vmatpush3.xpose.msra.mxu0 %v7340_v35  ;;  %14050 = vmatprep.mubr.msk.f32.mxu0 %vm14583_vm0, %v14582_v3  ;;  %v8257_v13 = vsub.f32 %v8147_v7, %v8180_v9  ;;  %v8142_v15 = vpop.permute.xlu0 %8141 }
0x124a   : > { %14058 = vmatprep.subr.mxu0 %v14582_v3  ;;  %v8145_v22 = vsel %vm1511_vm4, %v8142_v15, 0 }
0x124b   : > { %v7343_v38 = vand.u32 4294901760, %v7342_v17  ;;  %v8258_v19 = vand.u32 4294901760, %v8257_v13  ;;  %v8215_v23 = vand.u32 4294901760, %v8145_v22 }
0x124c   : > { %14051 = vmatmul.mubr.f32.vlgmr.msra.gmra.mxu0 %v7299_v31 }
0x124d   : > { %14044 = vmatpush3.xpose.msra.mxu1 %v7343_v38  ;;  %14059 = vmatpush3.xpose.msra.mxu0 %v7341_v37  ;;  %v8259_v25 = vsub.f32 %v8257_v13, %v8258_v19  ;;  %v8216_v26 = vsub.f32 %v8145_v22, %v8215_v23 }
0x124e   : > { %14060 = vmatprep.mubr.msk.f32.mxu0 %vm14583_vm0, %v14582_v3  ;;  %14053 = vmatprep.subr.mxu1 %v14582_v3 }
0x124f   : > { %14068 = vmatprep.subr.mxu0 %v14582_v3  ;;  %v8217_v31 = vand.u32 4294901760, %v8216_v26 }
0x1250   : > { %14046 = vmatmul.mubr.f32.vlgmr.msra.gmra.mxu1 %v7298_v30  ;;  %14061 = vmatmul.mubr.f32.vlgmr.msra.gmra.mxu0 %v7298_v30 }
0x1251   : > { %14054 = vmatpush3.xpose.msra.mxu1 %v7263_v34  ;;  %14055 = vmatprep.mubr.msk.f32.mxu1 %vm14583_vm0, %v14582_v3 }
0x1252   : > { %14063 = vmatprep.subr.mxu1 %v14582_v3  ;;  %14070 = vmatprep.mubr.msk.f32.mxu0 %vm14583_vm0, %v14582_v3 }
0x1254   : > { %14056 = vmatmul.mubr.f32.vlgmr.msra.gmra.mxu1 %v7300_v32  ;;  %v8218_v32 = vsub.f32 %v8216_v26, %v8217_v31 }
0x1255   : > { %14064 = vmatpush3.xpose.msra.mxu1 %v7263_v34  ;;  %14065 = vmatprep.mubr.msk.f32.mxu1 %vm14583_vm0, %v14582_v3 }
0x1256   : > { %14073 = vmatprep.subr.mxu1 %v14582_v3  ;;  %v8219_v33 = vand.u32 4294901760, %v8218_v32 }
0x1258   : > { %14066 = vmatmul.mubr.f32.vlgmr.msra.gmra.mxu1 %v7298_v30  ;;  %v8260_v30 = vand.u32 4294901760, %v8259_v25 }
0x1259   : > { %14075 = vmatprep.mubr.msk.f32.mxu1 %vm14583_vm0, %v14582_v3 }
0x1308   : > { %v7304_v39 = vpop.f32.mrf.mxu0 }
0x130a   : > { %v14042_v40 = vpop.f32.mrf.mxu0 }
0x130c   : > { %v7454_v41 = vpop.f32.mrf.mxu0 }
0x130e   : > { %v14052_v42 = vpop.f32.mrf.mxu0 }
0x1310   : > { %v7380_v43 = vpop.f32.mrf.mxu1  ;;  %v7602_v44 = vpop.f32.mrf.mxu0 }
0x1311   : > { %v7381_v45 = vadd.f32 %v7380_v43, %v7304_v39 }
0x1312   : > { %v14047_v46 = vpop.f32.mrf.mxu1  ;;  %v14062_v48 = vpop.f32.mrf.mxu0 }
0x1313   : > { %v7455_v49 = vadd.f32 %v7454_v41, %v7381_v45 }
0x1314   : > { %v7528_v50 = vpop.f32.mrf.mxu1 }
0x1315   : > { %v7529_v51 = vadd.f32 %v7528_v50, %v7455_v49 }
0x1316   : > { %v14057_v52 = vpop.f32.mrf.mxu1 }
0x1317   : > { %v7603_v53 = vadd.f32 %v7602_v44, %v7529_v51 }
0x1318   : > { %v7674_v57 = vpop.f32.mrf.mxu1 }
0x1319   : > { %v7675_v54 = vadd.f32 %v7674_v57, %v7603_v53 }
0x131a   : > { %v14067_v55 = vpop.f32.mrf.mxu1 }
0x131b   : > { %v7678_v56 = vsel %vm1963_vm5, %v7675_v54, -inf }
0x131c   : > { %7679 = vmax.xlane.f32.xlu1 %v7678_v56 }
0x13a5   : > { %v7680_v59 = vpop.xlane.xlu1 %7679 }
0x13a6   : > { %v7681_v60 = vsub.f32 %v7675_v54, %v7680_v59 }
0x13a8   : > { %v7682_v61 = vmul.f32 1.442695, %v7681_v60 }
0x13aa   : > { %14550 = vpow2.f32 %v7682_v61 }
0x13b7   : > { %v14551_v62 = vpop.eup %14550 }
0x13b8   : > { %v7684_v63 = vsel %vm1963_vm5, %v14551_v62, 0.0 }
0x13b9   : > { %7685 = vadd.xlane.f32.xlu1 %v7684_v63 }
0x13ca   : > { %7689 = vrot.lane.b32.xlu1 %v15414_v27, %s14584_s1  ;;  %s15969_s1 = smov 78  }
0x1442   : > { %v7686_v1 = vpop.xlane.xlu1 %7685 }
0x1443   : > { %14552 = vrcp.f32 %v7686_v1 }
0x1446   : > { %v7690_v2 = vpop.permute.xlu1 %7689 }
0x1447   : > { %v7726_v5 = vand.u32 4294901760, %v7690_v2 }
0x1449   : > { %v7803_v6 = vsub.f32 %v7690_v2, %v7726_v5  ;;  %14069 = vmatpush3.msra.mxu0 %v7726_v5 }
0x144a   : > { %14078 = vmatprep.subr.mxu0 %v14582_v3 }
0x144b   : > { %v7804_v8 = vand.u32 4294901760, %v7803_v6 }
0x144d   : > { %v7805_v10 = vsub.f32 %v7803_v6, %v7804_v8 }
0x144f   : > { %v7806_v11 = vand.u32 4294901760, %v7805_v10 }
0x1450   : > { %v14553_v12 = vpop.eup %14552 }
0x1451   : > { %14074 = vmatpush3.msra.mxu1 %v7806_v11  ;;  %v7688_v14 = vmul.f32 %v14553_v12, %v14551_v62 }
0x1452   : > { %14083 = vmatprep.subr.mxu1 %v14582_v3 }
0x1453   : > { %v7693_v16 = vsel %vm1963_vm5, %v7688_v14, 0 }
0x1454   : > { %v7761_v18 = vand.u32 4294901760, %v7693_v16 }
0x1456   : > { %v7762_v21 = vsub.f32 %v7693_v16, %v7761_v18  ;;  %14076 = vmatmul.mubr.f32.vlgmr.msra.gmra.mxu1 %v7761_v18 }
0x1457   : > { %14084 = vmatpush3.msra.mxu1 %v7726_v5  ;;  %14085 = vmatprep.mubr.msk.f32.mxu1 %vm14583_vm0, %v14582_v3 }
0x1458   : > { %14093 = vmatprep.subr.mxu1 %v14582_v3  ;;  %v7763_v24 = vand.u32 4294901760, %v7762_v21 }
0x145a   : > { %14086 = vmatmul.mubr.f32.vlgmr.msra.gmra.mxu1 %v7763_v24  ;;  %v7764_v47 = vsub.f32 %v7762_v21, %v7763_v24 }
0x145b   : > { %14094 = vmatpush3.msra.mxu1 %v7726_v5  ;;  %14095 = vmatprep.mubr.msk.f32.mxu1 %vm14583_vm0, %v14582_v3 }
0x145c   : > { %14103 = vmatprep.subr.mxu1 %v14582_v3  ;;  %v7765_v29 = vand.u32 4294901760, %v7764_v47 }
0x145e   : > { %14071 = vmatmul.mubr.f32.vlgmr.msra.gmra.mxu0 %v7765_v29  ;;  %14096 = vmatmul.mubr.f32.vlgmr.msra.gmra.mxu1 %v7761_v18 }
0x145f   : > { %14079 = vmatpush3.msra.mxu0 %v7803_v6  ;;  %14104 = vmatpush3.xpose.msra.mxu1 %v8260_v30 }
0x1460   : > { %14080 = vmatprep.mubr.msk.f32.mxu0 %vm14583_vm0, %v14582_v3  ;;  %14088 = vmatprep.subr.mxu0 %v14582_v3 }
0x1461   : > { %14105 = vmatprep.mubr.msk.f32.mxu1 %vm14583_vm0, %v14582_v3  ;;  %14113 = vmatprep.subr.mxu1 %v14582_v3 }
0x1462   : > { %14081 = vmatmul.mubr.f32.vlgmr.msra.gmra.mxu0 %v7762_v21  ;;  %14106 = vmatmul.mubr.f32.vlgmr.msra.gmra.mxu1 %v8215_v23 }
0x1463   : > { %14089 = vmatpush3.msra.mxu0 %v7804_v8  ;;  %14114 = vmatpush3.xpose.msra.mxu1 %v8180_v9 }
0x1464   : > { %14090 = vmatprep.mubr.msk.f32.mxu0 %vm14583_vm0, %v14582_v3  ;;  %14098 = vmatprep.subr.mxu0 %v14582_v3 }
0x1465   : > { %14115 = vmatprep.mubr.msk.f32.mxu1 %vm14583_vm0, %v14582_v3  ;;  %14123 = vmatprep.subr.mxu1 %v14582_v3 }
0x1466   : > { %14091 = vmatmul.mubr.f32.vlgmr.msra.gmra.mxu0 %v7761_v18  ;;  %14116 = vmatmul.mubr.f32.vlgmr.msra.gmra.mxu1 %v8217_v31 }
0x1467   : > { %14099 = vmatpush3.xpose.msra.mxu0 %v8180_v9  ;;  %14124 = vmatpush3.xpose.msra.mxu1 %v8180_v9 }
0x1468   : > { %14100 = vmatprep.mubr.msk.f32.mxu0 %vm14583_vm0, %v14582_v3  ;;  %14108 = vmatprep.subr.mxu0 %v14582_v3 }
0x1469   : > { %14125 = vmatprep.mubr.msk.f32.mxu1 %vm14583_vm0, %v14582_v3  ;;  %14133 = vmatprep.subr.mxu1 %v14582_v3 }
0x146a   : > { %14101 = vmatmul.mubr.f32.vlgmr.msra.gmra.mxu0 %v8219_v33  ;;  %14126 = vmatmul.mubr.f32.vlgmr.msra.gmra.mxu1 %v8215_v23 }
0x146b   : > { %14109 = vmatpush3.xpose.msra.mxu0 %v8257_v13  ;;  %14110 = vmatprep.mubr.msk.f32.mxu0 %vm14583_vm0, %v14582_v3 }
0x146c   : > { %14118 = vmatprep.subr.mxu0 %v14582_v3  ;;  %14135 = vmatprep.mubr.msk.f32.mxu1 %vm14583_vm0, %v14582_v3 }
0x146e   : > { %14111 = vmatmul.mubr.f32.vlgmr.msra.gmra.mxu0 %v8216_v26 }
0x146f   : > { %14119 = vmatpush3.xpose.msra.mxu0 %v8258_v19  ;;  %14120 = vmatprep.mubr.msk.f32.mxu0 %vm14583_vm0, %v14582_v3 }
0x1470   : > { %14128 = vmatprep.subr.mxu0 %v14582_v3 }
0x1472   : > { %14121 = vmatmul.mubr.f32.vlgmr.msra.gmra.mxu0 %v8215_v23 }
0x1473   : > { %14130 = vmatprep.mubr.msk.f32.mxu0 %vm14583_vm0, %v14582_v3 }
0x1516   : > { %v7843_v20 = vpop.f32.mrf.mxu1 }
0x1518   : > { %v14077_v58 = vpop.f32.mrf.mxu1 }
0x151a   : > { %v7991_v34 = vpop.f32.mrf.mxu1 }
0x151c   : > { %v14087_v35 = vpop.f32.mrf.mxu1 }
0x151e   : > { %v7767_v36 = vpop.f32.mrf.mxu0  ;;  %v8137_v37 = vpop.f32.mrf.mxu1 }
0x151f   : > { %v7844_v17 = vadd.f32 %v7843_v20, %v7767_v36 }
0x1520   : > { %v14072_v38 = vpop.f32.mrf.mxu0  ;;  %v14097_v39 = vpop.f32.mrf.mxu1 }
0x1522   : > { %v7917_v40 = vpop.f32.mrf.mxu0  ;;  %v8297_v41 = vpop.f32.mrf.mxu1 }
0x1523   : > { %v7918_v42 = vadd.f32 %v7917_v40, %v7844_v17 }
0x1524   : > { %v14082_v43 = vpop.f32.mrf.mxu0  ;;  %v14107_v44 = vpop.f32.mrf.mxu1 }
0x1525   : > { %v7992_v45 = vadd.f32 %v7991_v34, %v7918_v42 }
0x1526   : > { %v8065_v46 = vpop.f32.mrf.mxu0  ;;  %v8445_v48 = vpop.f32.mrf.mxu1 }
0x1527   : > { %v8066_v49 = vadd.f32 %v8065_v46, %v7992_v45 }
0x1528   : > { %v14092_v50 = vpop.f32.mrf.mxu0  ;;  %v14117_v51 = vpop.f32.mrf.mxu1 }
0x1529   : > { %v15489_v52 = vadd.f32 %v8137_v37, %v8066_v49 }
0x152a   : > { %v8221_v53 = vpop.f32.mrf.mxu0  ;;  %v8591_v57 = vpop.f32.mrf.mxu1 }
0x152b   : > { %v8298_v56 = vadd.f32 %v8297_v41, %v8221_v53 }
0x152c   : > { %v14102_v54 = vpop.f32.mrf.mxu0  ;;  %v14127_v55 = vpop.f32.mrf.mxu1 }
0x152e   : > { %v8371_v59 = vpop.f32.mrf.mxu0 }
0x152f   : > { %v8372_v60 = vadd.f32 %v8371_v59, %v8298_v56 }
0x1530   : > { %v14112_v61 = vpop.f32.mrf.mxu0 }
0x1531   : > { %v8446_v62 = vadd.f32 %v8445_v48, %v8372_v60 }
0x1532   : > { %v8519_v63 = vpop.f32.mrf.mxu0 }
0x1533   : > { %v8520_v1 = vadd.f32 %v8519_v63, %v8446_v62 }
0x1534   : > { %v14122_v2 = vpop.f32.mrf.mxu0 }
0x1535   : > { %v8592_v4 = vadd.f32 %v8591_v57, %v8520_v1 }
0x1537   : > { %v8595_v5 = vsel %vm1963_vm5, %v8592_v4, -inf }
0x1538   : > { %8596 = vmax.xlane.f32.xlu0 %v8595_v5 }
0x154e   : > { %8606 = vrot.lane.b32.xlu0 %v15414_v27, %s14588_s23  ;;  %s15973_s23 = smov 10  }
0x1552   : > { %9058 = vrot.lane.b32.xlu0 %v15421_v28, %s14590_s25 }
0x15c1   : > { %v8597_v6 = vpop.xlane.xlu0 %8596 }
0x15c2   : > { %v8598_v7 = vsub.f32 %v8592_v4, %v8597_v6 }
0x15c4   : > { %v8599_v8 = vmul.f32 1.442695, %v8598_v7 }
0x15c5   : > { %v8607_v9 = vpop.permute.xlu0 %8606 }
0x15c6   : > { %14554 = vpow2.f32 %v8599_v8  ;;  %v8643_v10 = vand.u32 4294901760, %v8607_v9 }
0x15c8   : > { %v8720_v11 = vsub.f32 %v8607_v9, %v8643_v10  ;;  %14129 = vmatpush3.msra.mxu0 %v8643_v10 }
0x15c9   : > { %14138 = vmatprep.subr.mxu0 %v14582_v3  ;;  %v9059_v47 = vpop.permute.xlu0 %9058 }
0x15ca   : > { %v8721_v12 = vand.u32 4294901760, %v8720_v11  ;;  %v9062_v30 = vsel %vm1511_vm4, %v9059_v47, 0 }
0x15cb   : > { %v9132_v33 = vand.u32 4294901760, %v9062_v30 }
0x15cc   : > { %v8722_v13 = vsub.f32 %v8720_v11, %v8721_v12 }
0x15cd   : > { %v9133_v35 = vsub.f32 %v9062_v30, %v9132_v33 }
0x15ce   : > { %v8723_v14 = vand.u32 4294901760, %v8722_v13 }
0x15cf   : > { %v9134_v17 = vand.u32 4294901760, %v9133_v35 }
0x15d0   : > { %14134 = vmatpush3.msra.mxu1 %v8723_v14 }
0x15d1   : > { %14143 = vmatprep.subr.mxu1 %v14582_v3  ;;  %v9135_v38 = vsub.f32 %v9133_v35, %v9134_v17 }
0x15d3   : > { %v14555_v15 = vpop.eup %14554  ;;  %v9136_v39 = vand.u32 4294901760, %v9135_v38 }
0x15d4   : > { %v8601_v16 = vsel %vm1963_vm5, %v14555_v15, 0.0 }
0x15d5   : > { %8602 = vadd.xlane.f32.xlu1 %v8601_v16 }
0x15e6   : > { %9060 = vrot.lane.b32.xlu1 %v15414_v27, %s14589_s24  ;;  %s15974_s24 = smov 73  }
0x165e   : > { %v8603_v18 = vpop.xlane.xlu1 %8602 }
0x165f   : > { %14556 = vrcp.f32 %v8603_v18 }
0x1662   : > { %v9061_v19 = vpop.permute.xlu1 %9060 }
0x1663   : > { %v9064_v22 = vsel %vm1511_vm4, %v9061_v19, 0 }
0x1664   : > { %v9097_v21 = vand.u32 4294901760, %v9064_v22 }
0x1666   : > { %v9174_v24 = vsub.f32 %v9064_v22, %v9097_v21 }
0x1668   : > { %v9175_v31 = vand.u32 4294901760, %v9174_v24 }
0x166a   : > { %v9176_v58 = vsub.f32 %v9174_v24, %v9175_v31 }
0x166c   : > { %v14557_v23 = vpop.eup %14556  ;;  %v9177_v37 = vand.u32 4294901760, %v9176_v58 }
0x166d   : > { %v8605_v25 = vmul.f32 %v14557_v23, %v14555_v15 }
0x166f   : > { %v8610_v26 = vsel %vm1963_vm5, %v8605_v25, 0 }
0x1670   : > { %v8678_v29 = vand.u32 4294901760, %v8610_v26 }
0x1672   : > { %v8679_v32 = vsub.f32 %v8610_v26, %v8678_v29  ;;  %14136 = vmatmul.mubr.f32.vlgmr.msra.gmra.mxu1 %v8678_v29 }
0x1673   : > { %14144 = vmatpush3.msra.mxu1 %v8643_v10  ;;  %14145 = vmatprep.mubr.msk.f32.mxu1 %vm14583_vm0, %v14582_v3 }
0x1674   : > { %14153 = vmatprep.subr.mxu1 %v14582_v3  ;;  %v8680_v20 = vand.u32 4294901760, %v8679_v32 }
0x1676   : > { %14146 = vmatmul.mubr.f32.vlgmr.msra.gmra.mxu1 %v8680_v20  ;;  %v8681_v34 = vsub.f32 %v8679_v32, %v8680_v20 }
0x1677   : > { %14154 = vmatpush3.msra.mxu1 %v8643_v10  ;;  %14155 = vmatprep.mubr.msk.f32.mxu1 %vm14583_vm0, %v14582_v3 }
0x1678   : > { %14163 = vmatprep.subr.mxu1 %v14582_v3  ;;  %v8682_v36 = vand.u32 4294901760, %v8681_v34 }
0x167a   : > { %14131 = vmatmul.mubr.f32.vlgmr.msra.gmra.mxu0 %v8682_v36  ;;  %14156 = vmatmul.mubr.f32.vlgmr.msra.gmra.mxu1 %v8678_v29 }
0x167b   : > { %14139 = vmatpush3.msra.mxu0 %v8720_v11  ;;  %14164 = vmatpush3.xpose.msra.mxu1 %v9177_v37 }
0x167c   : > { %14140 = vmatprep.mubr.msk.f32.mxu0 %vm14583_vm0, %v14582_v3  ;;  %14148 = vmatprep.subr.mxu0 %v14582_v3 }
0x167d   : > { %14165 = vmatprep.mubr.msk.f32.mxu1 %vm14583_vm0, %v14582_v3  ;;  %14173 = vmatprep.subr.mxu1 %v14582_v3 }
0x167e   : > { %14141 = vmatmul.mubr.f32.vlgmr.msra.gmra.mxu0 %v8679_v32  ;;  %14166 = vmatmul.mubr.f32.vlgmr.msra.gmra.mxu1 %v9132_v33 }
0x167f   : > { %14149 = vmatpush3.msra.mxu0 %v8721_v12  ;;  %14174 = vmatpush3.xpose.msra.mxu1 %v9097_v21 }
0x1680   : > { %14150 = vmatprep.mubr.msk.f32.mxu0 %vm14583_vm0, %v14582_v3  ;;  %14158 = vmatprep.subr.mxu0 %v14582_v3 }
0x1681   : > { %14175 = vmatprep.mubr.msk.f32.mxu1 %vm14583_vm0, %v14582_v3  ;;  %14183 = vmatprep.subr.mxu1 %v14582_v3 }
0x1682   : > { %14151 = vmatmul.mubr.f32.vlgmr.msra.gmra.mxu0 %v8678_v29  ;;  %14176 = vmatmul.mubr.f32.vlgmr.msra.gmra.mxu1 %v9134_v17 }
0x1683   : > { %14159 = vmatpush3.xpose.msra.mxu0 %v9097_v21  ;;  %14184 = vmatpush3.xpose.msra.mxu1 %v9097_v21 }
0x1684   : > { %14160 = vmatprep.mubr.msk.f32.mxu0 %vm14583_vm0, %v14582_v3  ;;  %14168 = vmatprep.subr.mxu0 %v14582_v3 }
0x1685   : > { %14185 = vmatprep.mubr.msk.f32.mxu1 %vm14583_vm0, %v14582_v3  ;;  %14193 = vmatprep.subr.mxu1 %v14582_v3 }
0x1686   : > { %14161 = vmatmul.mubr.f32.vlgmr.msra.gmra.mxu0 %v9136_v39  ;;  %14186 = vmatmul.mubr.f32.vlgmr.msra.gmra.mxu1 %v9132_v33 }
0x1687   : > { %14169 = vmatpush3.xpose.msra.mxu0 %v9174_v24  ;;  %14170 = vmatprep.mubr.msk.f32.mxu0 %vm14583_vm0, %v14582_v3 }
0x1688   : > { %14178 = vmatprep.subr.mxu0 %v14582_v3  ;;  %14195 = vmatprep.mubr.msk.f32.mxu1 %vm14583_vm0, %v14582_v3 }
0x168a   : > { %14171 = vmatmul.mubr.f32.vlgmr.msra.gmra.mxu0 %v9133_v35 }
0x168b   : > { %14179 = vmatpush3.xpose.msra.mxu0 %v9175_v31  ;;  %14180 = vmatprep.mubr.msk.f32.mxu0 %vm14583_vm0, %v14582_v3 }
0x168c   : > { %14188 = vmatprep.subr.mxu0 %v14582_v3 }
0x168e   : > { %14181 = vmatmul.mubr.f32.vlgmr.msra.gmra.mxu0 %v9132_v33 }
0x168f   : > { %14190 = vmatprep.mubr.msk.f32.mxu0 %vm14583_vm0, %v14582_v3 }
0x1732   : > { %v8760_v40 = vpop.f32.mrf.mxu1 }
0x1734   : > { %v14137_v41 = vpop.f32.mrf.mxu1 }
0x1736   : > { %v8908_v42 = vpop.f32.mrf.mxu1 }
0x1738   : > { %v14147_v43 = vpop.f32.mrf.mxu1 }
0x173a   : > { %v8684_v44 = vpop.f32.mrf.mxu0  ;;  %v9054_v45 = vpop.f32.mrf.mxu1 }
0x173b   : > { %v8761_v46 = vadd.f32 %v8760_v40, %v8684_v44 }
0x173c   : > { %v14132_v48 = vpop.f32.mrf.mxu0  ;;  %v14157_v49 = vpop.f32.mrf.mxu1 }
0x173e   : > { %v8834_v50 = vpop.f32.mrf.mxu0  ;;  %v9214_v51 = vpop.f32.mrf.mxu1 }
0x173f   : > { %v8835_v53 = vadd.f32 %v8834_v50, %v8761_v46 }
0x1740   : > { %v14142_v57 = vpop.f32.mrf.mxu0  ;;  %v14167_v54 = vpop.f32.mrf.mxu1 }
0x1741   : > { %v8909_v55 = vadd.f32 %v8908_v42, %v8835_v53 }
0x1742   : > { %v8982_v56 = vpop.f32.mrf.mxu0  ;;  %v9362_v59 = vpop.f32.mrf.mxu1 }
0x1743   : > { %v8983_v60 = vadd.f32 %v8982_v56, %v8909_v55 }
0x1744   : > { %v14152_v61 = vpop.f32.mrf.mxu0  ;;  %v14177_v62 = vpop.f32.mrf.mxu1 }
0x1745   : > { %v15538_v63 = vadd.f32 %v9054_v45, %v8983_v60 }
0x1746   : > { %v9138_v1 = vpop.f32.mrf.mxu0  ;;  %v9508_v2 = vpop.f32.mrf.mxu1 }
0x1747   : > { %v9215_v6 = vadd.f32 %v9214_v51, %v9138_v1 }
0x1748   : > { %v14162_v4 = vpop.f32.mrf.mxu0  ;;  %v14187_v5 = vpop.f32.mrf.mxu1 }
0x174a   : > { %v9288_v7 = vpop.f32.mrf.mxu0 }
0x174b   : > { %v9289_v8 = vadd.f32 %v9288_v7, %v9215_v6 }
0x174c   : > { %v14172_v9 = vpop.f32.mrf.mxu0 }
0x174d   : > { %v9363_v10 = vadd.f32 %v9362_v59, %v9289_v8 }
0x174e   : > { %v9436_v11 = vpop.f32.mrf.mxu0 }
0x174f   : > { %v9437_v12 = vadd.f32 %v9436_v11, %v9363_v10 }
0x1750   : > { %v14182_v13 = vpop.f32.mrf.mxu0 }
0x1751   : > { %v9509_v14 = vadd.f32 %v9508_v2, %v9437_v12 }
0x1753   : > { %v9512_v15 = vsel %vm1963_vm5, %v9509_v14, -inf }
0x1754   : > { %9513 = vmax.xlane.f32.xlu0 %v9512_v15 }
0x176a   : > { %9523 = vrot.lane.b32.xlu0 %v15414_v27, %s15969_s1 }
0x176e   : > { %9975 = vrot.lane.b32.xlu0 %v15421_v28, %s15970_s20 }
0x17dd   : > { %v9514_v16 = vpop.xlane.xlu0 %9513 }
0x17de   : > { %v9515_v18 = vsub.f32 %v9509_v14, %v9514_v16 }
0x17e0   : > { %v9516_v19 = vmul.f32 1.442695, %v9515_v18 }
0x17e1   : > { %v9524_v22 = vpop.permute.xlu0 %9523 }
0x17e2   : > { %14558 = vpow2.f32 %v9516_v19  ;;  %v9560_v21 = vand.u32 4294901760, %v9524_v22 }
0x17e4   : > { %v9637_v23 = vsub.f32 %v9524_v22, %v9560_v21  ;;  %14189 = vmatpush3.msra.mxu0 %v9560_v21 }
0x17e5   : > { %14198 = vmatprep.subr.mxu0 %v14582_v3  ;;  %v9976_v34 = vpop.permute.xlu0 %9975 }
0x17e6   : > { %v9638_v24 = vand.u32 4294901760, %v9637_v23  ;;  %v9979_v37 = vsel %vm1511_vm4, %v9976_v34, 0 }
0x17e7   : > { %v10049_v39 = vand.u32 4294901760, %v9979_v37 }
0x17e8   : > { %v9639_v25 = vsub.f32 %v9637_v23, %v9638_v24 }
0x17e9   : > { %v10050_v43 = vsub.f32 %v9979_v37, %v10049_v39 }
0x17ea   : > { %v9640_v47 = vand.u32 4294901760, %v9639_v25 }
0x17eb   : > { %v10051_v46 = vand.u32 4294901760, %v10050_v43 }
0x17ec   : > { %14194 = vmatpush3.msra.mxu1 %v9640_v47 }
0x17ed   : > { %14203 = vmatprep.subr.mxu1 %v14582_v3  ;;  %v10052_v48 = vsub.f32 %v10050_v43, %v10051_v46 }
0x17ef   : > { %v14559_v26 = vpop.eup %14558  ;;  %v10053_v49 = vand.u32 4294901760, %v10052_v48 }
0x17f0   : > { %v9518_v29 = vsel %vm1963_vm5, %v14559_v26, 0.0 }
0x17f1   : > { %9519 = vadd.xlane.f32.xlu1 %v9518_v29 }
0x1802   : > { %9977 = vrot.lane.b32.xlu1 %v15414_v27, %s15971_s21 }
0x187a   : > { %v9520_v28 = vpop.xlane.xlu1 %9519 }
0x187b   : > { %14560 = vrcp.f32 %v9520_v28 }
0x187e   : > { %v9978_v30 = vpop.permute.xlu1 %9977 }
0x187f   : > { %v9981_v31 = vsel %vm1511_vm4, %v9978_v30, 0 }
0x1880   : > { %v10014_v32 = vand.u32 4294901760, %v9981_v31 }
0x1882   : > { %v10091_v58 = vsub.f32 %v9981_v31, %v10014_v32 }
0x1884   : > { %v10092_v17 = vand.u32 4294901760, %v10091_v58 }
0x1886   : > { %v10093_v41 = vsub.f32 %v10091_v58, %v10092_v17 }
0x1888   : > { %v14561_v33 = vpop.eup %14560  ;;  %v10094_v45 = vand.u32 4294901760, %v10093_v41 }
0x1889   : > { %v9522_v20 = vmul.f32 %v14561_v33, %v14559_v26 }
0x188b   : > { %v9527_v35 = vsel %vm1963_vm5, %v9522_v20, 0 }
0x188c   : > { %v9595_v36 = vand.u32 4294901760, %v9527_v35 }
0x188e   : > { %v9596_v38 = vsub.f32 %v9527_v35, %v9595_v36  ;;  %14196 = vmatmul.mubr.f32.vlgmr.msra.gmra.mxu1 %v9595_v36 }
0x188f   : > { %14204 = vmatpush3.msra.mxu1 %v9560_v21  ;;  %14205 = vmatprep.mubr.msk.f32.mxu1 %vm14583_vm0, %v14582_v3 }
0x1890   : > { %14213 = vmatprep.subr.mxu1 %v14582_v3  ;;  %v9597_v40 = vand.u32 4294901760, %v9596_v38 }
0x1892   : > { %14206 = vmatmul.mubr.f32.vlgmr.msra.gmra.mxu1 %v9597_v40  ;;  %v9598_v42 = vsub.f32 %v9596_v38, %v9597_v40 }
0x1893   : > { %14214 = vmatpush3.msra.mxu1 %v9560_v21  ;;  %14215 = vmatprep.mubr.msk.f32.mxu1 %vm14583_vm0, %v14582_v3 }
0x1894   : > { %14223 = vmatprep.subr.mxu1 %v14582_v3  ;;  %v9599_v44 = vand.u32 4294901760, %v9598_v42 }
0x1896   : > { %14191 = vmatmul.mubr.f32.vlgmr.msra.gmra.mxu0 %v9599_v44  ;;  %14216 = vmatmul.mubr.f32.vlgmr.msra.gmra.mxu1 %v9595_v36 }
0x1897   : > { %14199 = vmatpush3.msra.mxu0 %v9637_v23  ;;  %14224 = vmatpush3.xpose.msra.mxu1 %v10094_v45 }
0x1898   : > { %14200 = vmatprep.mubr.msk.f32.mxu0 %vm14583_vm0, %v14582_v3  ;;  %14208 = vmatprep.subr.mxu0 %v14582_v3 }
0x1899   : > { %14225 = vmatprep.mubr.msk.f32.mxu1 %vm14583_vm0, %v14582_v3  ;;  %14233 = vmatprep.subr.mxu1 %v14582_v3 }
0x189a   : > { %14201 = vmatmul.mubr.f32.vlgmr.msra.gmra.mxu0 %v9596_v38  ;;  %14226 = vmatmul.mubr.f32.vlgmr.msra.gmra.mxu1 %v10049_v39 }
0x189b   : > { %14209 = vmatpush3.msra.mxu0 %v9638_v24  ;;  %14234 = vmatpush3.xpose.msra.mxu1 %v10014_v32 }
0x189c   : > { %14210 = vmatprep.mubr.msk.f32.mxu0 %vm14583_vm0, %v14582_v3  ;;  %14218 = vmatprep.subr.mxu0 %v14582_v3 }
0x189d   : > { %14235 = vmatprep.mubr.msk.f32.mxu1 %vm14583_vm0, %v14582_v3  ;;  %14243 = vmatprep.subr.mxu1 %v14582_v3 }
0x189e   : > { %14211 = vmatmul.mubr.f32.vlgmr.msra.gmra.mxu0 %v9595_v36  ;;  %14236 = vmatmul.mubr.f32.vlgmr.msra.gmra.mxu1 %v10051_v46 }
0x189f   : > { %14219 = vmatpush3.xpose.msra.mxu0 %v10014_v32  ;;  %14244 = vmatpush3.xpose.msra.mxu1 %v10014_v32 }
0x18a0   : > { %14220 = vmatprep.mubr.msk.f32.mxu0 %vm14583_vm0, %v14582_v3  ;;  %14228 = vmatprep.subr.mxu0 %v14582_v3 }
0x18a1   : > { %14245 = vmatprep.mubr.msk.f32.mxu1 %vm14583_vm0, %v14582_v3  ;;  %14253 = vmatprep.subr.mxu1 %v14582_v3 }
0x18a2   : > { %14221 = vmatmul.mubr.f32.vlgmr.msra.gmra.mxu0 %v10053_v49  ;;  %14246 = vmatmul.mubr.f32.vlgmr.msra.gmra.mxu1 %v10049_v39 }
0x18a3   : > { %14229 = vmatpush3.xpose.msra.mxu0 %v10091_v58  ;;  %14230 = vmatprep.mubr.msk.f32.mxu0 %vm14583_vm0, %v14582_v3 }
0x18a4   : > { %14238 = vmatprep.subr.mxu0 %v14582_v3  ;;  %14255 = vmatprep.mubr.msk.f32.mxu1 %vm14583_vm0, %v14582_v3 }
0x18a6   : > { %14231 = vmatmul.mubr.f32.vlgmr.msra.gmra.mxu0 %v10050_v43  ;;  %v13012_v43 = vld [vmem:[%s15944_s5 + $0x28] sm:$0xf] }
0x18a7   : > { %14239 = vmatpush3.xpose.msra.mxu0 %v10092_v17  ;;  %14240 = vmatprep.mubr.msk.f32.mxu0 %vm14583_vm0, %v14582_v3  ;;  %v10923_v44 = vsel %vm1031_vm2, %v13012_v43, 0 }
0x18a8   : > { %14248 = vmatprep.subr.mxu0 %v14582_v3  ;;  %v15617_v45 = vand.u32 4294901760, %v10923_v44 }
0x18aa   : > { %14241 = vmatmul.mubr.f32.vlgmr.msra.gmra.mxu0 %v10049_v39  ;;  %v15620_v46 = vsub.f32 %v10923_v44, %v15617_v45 }
0x18ab   : > { %14250 = vmatprep.mubr.msk.f32.mxu0 %vm14583_vm0, %v14582_v3 }
0x18ac   : > { %v11032_v48 = vand.u32 4294901760, %v15620_v46 }
0x18ae   : > { %v11033_v49 = vsub.f32 %v15620_v46, %v11032_v48 }
0x194e   : > { %v9677_v50 = vpop.f32.mrf.mxu1 }
0x1950   : > { %v14197_v51 = vpop.f32.mrf.mxu1 }
0x1951   : > { %v13011_v51 = vld [vmem:[%s15944_s5 + $0x20] sm:$0xff] }
0x1952   : > { %v9825_v53 = vpop.f32.mrf.mxu1 }
0x1954   : > { %v14207_v57 = vpop.f32.mrf.mxu1 }
0x1956   : > { %v9601_v54 = vpop.f32.mrf.mxu0  ;;  %v9971_v55 = vpop.f32.mrf.mxu1 }
0x1957   : > { %v9678_v23 = vadd.f32 %v9677_v50, %v9601_v54  ;;  %v11034_v50 = vand.u32 4294901760, %v11033_v49  ;;  %v13010_v54 = vld [vmem:[%s15944_s5 + $0x18] sm:$0xff] }
0x1958   : > { %v14192_v56 = vpop.f32.mrf.mxu0  ;;  %v14217_v59 = vpop.f32.mrf.mxu1 }
0x1959   : > { %v10958_v56 = vand.u32 4294901760, %v13010_v54 }
0x195a   : > { %v9751_v60 = vpop.f32.mrf.mxu0  ;;  %v10131_v61 = vpop.f32.mrf.mxu1 }
0x195b   : > { %v9752_v24 = vadd.f32 %v9751_v60, %v9678_v23 }
0x195c   : > { %v14202_v62 = vpop.f32.mrf.mxu0  ;;  %v14227_v1 = vpop.f32.mrf.mxu1 }
0x195d   : > { %v9826_v25 = vadd.f32 %v9825_v53, %v9752_v24  ;;  %v10955_v53 = vand.u32 4294901760, %v13011_v51 }
0x195e   : > { %v9899_v2 = vpop.f32.mrf.mxu0  ;;  %v10279_v4 = vpop.f32.mrf.mxu1 }
0x195f   : > { %v9900_v47 = vadd.f32 %v9899_v2, %v9826_v25 }
0x1960   : > { %v14212_v5 = vpop.f32.mrf.mxu0  ;;  %v14237_v6 = vpop.f32.mrf.mxu1 }
0x1961   : > { %v9972_v26 = vadd.f32 %v9971_v55, %v9900_v47  ;;  %v15635_v55 = vsub.f32 %v13011_v51, %v10955_v53 }
0x1962   : > { %v10055_v7 = vpop.f32.mrf.mxu0  ;;  %v10425_v8 = vpop.f32.mrf.mxu1 }
0x1963   : > { %v10132_v11 = vadd.f32 %v10131_v61, %v10055_v7  ;;  %v11039_v60 = vand.u32 4294901760, %v15635_v55  ;;  %v15639_v61 = vsub.f32 %v13010_v54, %v10958_v56 }
0x1964   : > { %v14222_v9 = vpop.f32.mrf.mxu0  ;;  %v14247_v10 = vpop.f32.mrf.mxu1 }
0x1965   : > { %v11040_v1 = vsub.f32 %v15635_v55, %v11039_v60  ;;  %v11046_v2 = vand.u32 4294901760, %v15639_v61 }
0x1966   : > { %v10205_v12 = vpop.f32.mrf.mxu0 }
0x1967   : > { %v10206_v13 = vadd.f32 %v10205_v12, %v10132_v11  ;;  %v11041_v5 = vand.u32 4294901760, %v11040_v1  ;;  %v11047_v6 = vsub.f32 %v15639_v61, %v11046_v2  ;;  %v13019_v1 = vld [vmem:[%s15950_s11 + $0x18] sm:$0xff] }
0x1968   : > { %v14232_v14 = vpop.f32.mrf.mxu0 }
0x1969   : > { %v10280_v15 = vadd.f32 %v10279_v4, %v10206_v13  ;;  %v11048_v9 = vand.u32 4294901760, %v11047_v6 }
0x196a   : > { %v10353_v16 = vpop.f32.mrf.mxu0 }
0x196b   : > { %v10354_v18 = vadd.f32 %v10353_v16, %v10280_v15 }
0x196c   : > { %v14242_v19 = vpop.f32.mrf.mxu0 }
0x196d   : > { %v10426_v22 = vadd.f32 %v10425_v8, %v10354_v18 }
0x196f   : > { %v10429_v21 = vsel %vm1963_vm5, %v10426_v22, -inf }
0x1970   : > { %10430 = vmax.xlane.f32.xlu1 %v10429_v21 }
0x1981   : > { %10893 = vrot.lane.b32.xlu1 %v15538_v63, %s15972_s22 }
0x1985   : > { %10897 = vrot.lane.b32.xlu1 %v9972_v26, %s15973_s23 }
0x19f9   : > { %v10431_v29 = vpop.xlane.xlu1 %10430 }
0x19fa   : > { %v10432_v28 = vsub.f32 %v10426_v22, %v10431_v29 }
0x19fc   : > { %v10433_v30 = vmul.f32 1.442695, %v10432_v28 }
0x19fd   : > { %v10894_v23 = vpop.permute.xlu1 %10893 }
0x19fe   : > { %14562 = vpow2.f32 %v10433_v30  ;;  %v10904_v25 = vsel %vm1511_vm4, %v15489_v52, %v10894_v23  ;;  %v13018_v23 = vld [vmem:[%s15947_s8 + $0x1] ss:$0 sm:$0xff] }
0x1a01   : > { %v10898_v24 = vpop.permute.xlu1 %10897 }
0x1a02   : > { %v10905_v47 = vsel %vm5191_vm6, %v10904_v25, %v10898_v24 }
0x1a0b   : > { %v14563_v31 = vpop.eup %14562 }
0x1a0c   : > { %v10435_v32 = vsel %vm1963_vm5, %v14563_v31, 0.0 }
0x1a0d   : > { %10436 = vadd.xlane.f32.xlu0 %v10435_v32 }
0x1a23   : > { %10440 = vrot.lane.b32.xlu0 %v15414_v27, %s15974_s24 }
0x1a96   : > { %v10437_v33 = vpop.xlane.xlu0 %10436 }
0x1a97   : > { %14564 = vrcp.f32 %v10437_v33 }
0x1a9a   : > { %v10441_v20 = vpop.permute.xlu0 %10440 }
0x1a9b   : > { %v10477_v58 = vand.u32 4294901760, %v10441_v20 }
0x1a9d   : > { %v10554_v34 = vsub.f32 %v10441_v20, %v10477_v58  ;;  %14249 = vmatpush3.msra.mxu0 %v10477_v58 }
0x1a9e   : > { %14258 = vmatprep.subr.mxu0 %v14582_v3 }
0x1a9f   : > { %v10555_v63 = vand.u32 4294901760, %v10554_v34 }
0x1aa1   : > { %v10556_v35 = vsub.f32 %v10554_v34, %v10555_v63 }
0x1aa3   : > { %v10557_v36 = vand.u32 4294901760, %v10556_v35 }
0x1aa4   : > { %v14565_v37 = vpop.eup %14564 }
0x1aa5   : > { %v10439_v17 = vmul.f32 %v14565_v37, %v14563_v31  ;;  %14254 = vmatpush3.msra.mxu1 %v10557_v36 }
0x1aa6   : > { %14263 = vmatprep.subr.mxu1 %v14582_v3 }
0x1aa7   : > { %v10444_v38 = vsel %vm1963_vm5, %v10439_v17, 0 }
0x1aa8   : > { %v10512_v39 = vand.u32 4294901760, %v10444_v38 }
0x1aaa   : > { %v10513_v27 = vsub.f32 %v10444_v38, %v10512_v39  ;;  %14256 = vmatmul.mubr.f32.vlgmr.msra.gmra.mxu1 %v10512_v39 }
0x1aab   : > { %14264 = vmatpush3.msra.mxu1 %v10477_v58  ;;  %14265 = vmatprep.mubr.msk.f32.mxu1 %vm14583_vm0, %v14582_v3 }
0x1aac   : > { %14273 = vmatprep.subr.mxu1 %v14582_v3  ;;  %v10514_v40 = vand.u32 4294901760, %v10513_v27 }
0x1aae   : > { %14266 = vmatmul.mubr.f32.vlgmr.msra.gmra.mxu1 %v10514_v40  ;;  %v10515_v41 = vsub.f32 %v10513_v27, %v10514_v40 }
0x1aaf   : > { %14274 = vmatpush3.msra.mxu1 %v10477_v58  ;;  %14275 = vmatprep.mubr.msk.f32.mxu1 %vm14583_vm0, %v14582_v3 }
0x1ab0   : > { %v10516_v42 = vand.u32 4294901760, %v10515_v41  ;;  %14287 = vmatprep.subr.mxu1 %v14582_v3 }
0x1ab2   : > { %14251 = vmatmul.mubr.f32.vlgmr.msra.gmra.mxu0 %v10516_v42  ;;  %14276 = vmatmul.mubr.f32.vlgmr.msra.gmra.mxu1 %v10512_v39 }
0x1ab3   : > { %14259 = vmatpush3.msra.mxu0 %v10554_v34  ;;  %14260 = vmatprep.mubr.msk.f32.mxu0 %vm14583_vm0, %v14582_v3 }
0x1ab4   : > { %14268 = vmatprep.subr.mxu0 %v14582_v3  ;;  %14293 = vmatprep.mubr.msk.f32.mxu1 %vm14583_vm0, %v14582_v3 }
0x1ab5   : > { %14288 = vmatpush3.msra.mxu1 %v11034_v50 }
0x1ab6   : > { %14261 = vmatmul.mubr.f32.vlgmr.msra.gmra.mxu0 %v10513_v27  ;;  %14289 = vmatprep.subr.mxu1 %v14582_v3 }
0x1ab7   : > { %14269 = vmatpush3.msra.mxu0 %v10555_v63  ;;  %14270 = vmatprep.mubr.msk.f32.mxu0 %vm14583_vm0, %v14582_v3  ;;  %v13014_v63 = vld [vmem:[%s15945_s6 + $0x1] ss:$0 sm:$0xff] }
0x1ab8   : > { %14278 = vmatprep.subr.mxu0 %v14582_v3  ;;  %14290 = vmatpush3.msra.mxu1 %v11041_v5  ;;  %v11480_v5 = vand.u32 4294901760, %v13019_v1 }
0x1ab9   : > { %14291 = vmatprep.subr.mxu1 %v14582_v3 }
0x1aba   : > { %14271 = vmatmul.mubr.f32.vlgmr.msra.gmra.mxu0 %v10512_v39  ;;  %14292 = vmatpush3.msra.mxu1 %v11048_v9 }
0x1abb   : > { %14284 = vmatprep.mubr.msk.f32.mxu0 %vm14583_vm0, %v14582_v3  ;;  %14279 = vmatpush3.msra.mxu0 %v15617_v45 }
0x1abc   : > { %14280 = vmatprep.subr.mxu0 %v14582_v3  ;;  %14305 = vmatprep.subr.mxu1 %v14582_v3 }
0x1abd   : > { %14281 = vmatpush3.msra.mxu0 %v10955_v53 }
0x1abe   : > { %14282 = vmatprep.subr.mxu0 %v14582_v3 }
0x1abf   : > { %14283 = vmatpush3.msra.mxu0 %v10958_v56 }
0x1ac0   : > { %14296 = vmatprep.subr.mxu0 %v14582_v3 }
0x1b6a   : > { %v10594_v57 = vpop.f32.mrf.mxu1 }
0x1b6c   : > { %v14257_v59 = vpop.f32.mrf.mxu1 }
0x1b6e   : > { %v10742_v62 = vpop.f32.mrf.mxu1 }
0x1b70   : > { %v14267_v4 = vpop.f32.mrf.mxu1 }
0x1b72   : > { %v10518_v7 = vpop.f32.mrf.mxu0  ;;  %v10888_v8 = vpop.f32.mrf.mxu1 }
0x1b73   : > { %v10595_v12 = vadd.f32 %v10594_v57, %v10518_v7 }
0x1b74   : > { %v14252_v10 = vpop.f32.mrf.mxu0  ;;  %v14277_v11 = vpop.f32.mrf.mxu1 }
0x1b76   : > { %v10668_v13 = vpop.f32.mrf.mxu0 }
0x1b77   : > { %v10669_v14 = vadd.f32 %v10668_v13, %v10595_v12 }
0x1b78   : > { %v14262_v15 = vpop.f32.mrf.mxu0 }
0x1b79   : > { %v10743_v16 = vadd.f32 %v10742_v62, %v10669_v14 }
0x1b7a   : > { %v10816_v18 = vpop.f32.mrf.mxu0 }
0x1b7b   : > { %v10817_v19 = vadd.f32 %v10816_v18, %v10743_v16 }
0x1b7c   : > { %v14272_v22 = vpop.f32.mrf.mxu0 }
0x1b7d   : > { %v10889_v21 = vadd.f32 %v10888_v8, %v10817_v19  ;;  %v15717_v8 = vsub.f32 %v13019_v1, %v11480_v5  ;;  %v13017_v22 = vld [vmem:[%s15946_s7 + $0x1] ss:$0 sm:$0xff] }
0x1b7f   : > { %10901 = vrot.lane.b32.xlu0 %v10889_v21, %s15975_s19  ;;  %v11568_v11 = vand.u32 4294901760, %v15717_v8 }
0x1b81   : > { %v11569_v13 = vsub.f32 %v15717_v8, %v11568_v11 }
0x1b83   : > { %v11570_v14 = vand.u32 4294901760, %v11569_v13 }
0x1bf1   : > { %v10902_v26 = vpop.permute.xlu0 %10901 }
0x1bf2   : > { %v10906_v29 = vsel %vm5193_vm7, %v10905_v47, %v10902_v26 }
0x1bf3   : > { %v10920_v28 = vsel %vm1027_vm3, %v10906_v29, 0 }
0x1bf4   : > { %v10993_v30 = vand.u32 4294901760, %v10920_v28 }
0x1bf6   : > { %v10994_v31 = vsub.f32 %v10920_v28, %v10993_v30  ;;  %14294 = vmatmul.mubr.f32.vlgmr.msra.gmra.mxu1 %v10993_v30 }
0x1bf7   : > { %14306 = vmatpush3.msra.mxu1 %v15617_v45  ;;  %14311 = vmatprep.mubr.msk.f32.mxu1 %vm14583_vm0, %v14582_v3 }
0x1bf8   : > { %v10995_v32 = vand.u32 4294901760, %v10994_v31  ;;  %14307 = vmatprep.subr.mxu1 %v14582_v3 }
0x1bf9   : > { %14308 = vmatpush3.msra.mxu1 %v10955_v53 }
0x1bfa   : > { %v10996_v52 = vsub.f32 %v10994_v31, %v10995_v32  ;;  %14309 = vmatprep.subr.mxu1 %v14582_v3 }
0x1bfb   : > { %14310 = vmatpush3.msra.mxu1 %v10958_v56 }
0x1bfc   : > { %v10997_v33 = vand.u32 4294901760, %v10996_v52  ;;  %14312 = vmatmul.mubr.f32.vlgmr.msra.gmra.mxu1 %v10995_v32  ;;  %14323 = vmatprep.subr.mxu1 %v14582_v3  ;;  %v13027_v32 = vld [vmem:[%s15952_s13 + $0x38] sm:$0xff] }
0x1bfd   : > { %14324 = vmatpush3.msra.mxu1 %v15617_v45  ;;  %14329 = vmatprep.mubr.msk.f32.mxu1 %vm14583_vm0, %v14582_v3  ;;  %v15766_v52 = vand.u32 4294901760, %v13027_v32 }
0x1bfe   : > { %14325 = vmatprep.subr.mxu1 %v14582_v3  ;;  %14285 = vmatmul.mubr.f32.vlgmr.msra.gmra.mxu0 %v10997_v33  ;;  %v13026_v33 = vld [vmem:[%s15952_s13 + $0x30] sm:$0xff] }
0x1bff   : > { %14297 = vmatpush3.msra.mxu0 %v15620_v46  ;;  %14326 = vmatpush3.msra.mxu1 %v10955_v53 }
0x1c00   : > { %14298 = vmatprep.subr.mxu0 %v14582_v3  ;;  %14327 = vmatprep.subr.mxu1 %v14582_v3 }
0x1c01   : > { %14299 = vmatpush3.msra.mxu0 %v15635_v55  ;;  %14328 = vmatpush3.msra.mxu1 %v10958_v56  ;;  %v13021_v56 = vld [vmem:[%s15950_s11 + $0x28] sm:$0xf] }
0x1c02   : > { %14300 = vmatprep.subr.mxu0 %v14582_v3  ;;  %14330 = vmatmul.mubr.f32.vlgmr.msra.gmra.mxu1 %v10993_v30  ;;  %v11445_v59 = vsel %vm1031_vm2, %v13021_v56, 0 }
0x1c03   : > { %14301 = vmatpush3.msra.mxu0 %v15639_v61  ;;  %14302 = vmatprep.mubr.msk.f32.mxu0 %vm14583_vm0, %v14582_v3 }
0x1c04   : > { %14303 = vmatmul.mubr.f32.vlgmr.msra.gmra.mxu0 %v10994_v31  ;;  %14314 = vmatprep.subr.mxu0 %v14582_v3 }
0x1c05   : > { %14315 = vmatpush3.msra.mxu0 %v11032_v48  ;;  %14320 = vmatprep.mubr.msk.f32.mxu0 %vm14583_vm0, %v14582_v3 }
0x1c06   : > { %14316 = vmatprep.subr.mxu0 %v14582_v3  ;;  %14341 = vmatprep.subr.mxu1 %v14582_v3 }
0x1c07   : > { %14317 = vmatpush3.msra.mxu0 %v11039_v60  ;;  %14347 = vmatprep.mubr.msk.f32.mxu1 %vm14583_vm0, %v14582_v3  ;;  %v11474_v60 = vand.u32 4294901760, %v11445_v59 }
0x1c08   : > { %14318 = vmatprep.subr.mxu0 %v14582_v3 }
0x1c09   : > { %14319 = vmatpush3.msra.mxu0 %v11046_v2  ;;  %v15705_v61 = vsub.f32 %v11445_v59, %v11474_v60 }
0x1c0a   : > { %14321 = vmatmul.mubr.f32.vlgmr.msra.gmra.mxu0 %v10993_v30  ;;  %14332 = vmatprep.subr.mxu0 %v14582_v3 }
0x1c0b   : > { %14338 = vmatprep.mubr.msk.f32.mxu0 %vm14583_vm0, %v14582_v3  ;;  %14333 = vmatpush3.msra.mxu0 %v11474_v60  ;;  %v11554_v2 = vand.u32 4294901760, %v15705_v61 }
0x1c0c   : > { %14334 = vmatprep.subr.mxu0 %v14582_v3 }
0x1c0d   : > { %v11555_v6 = vsub.f32 %v15705_v61, %v11554_v2 }
0x1c0f   : > { %v11556_v9 = vand.u32 4294901760, %v11555_v6 }
0x1c11   : > { %14342 = vmatpush3.msra.mxu1 %v11556_v9 }
0x1c12   : > { %14343 = vmatprep.subr.mxu1 %v14582_v3 }
0x1cb6   : > { %v11085_v20 = vpop.f32.mrf.mxu1 }
0x1cb8   : > { %v14295_v58 = vpop.f32.mrf.mxu1 }
0x1cb9   : > { %v15774_v58 = vand.u32 4294901760, %v13026_v33 }
0x1cbc   : > { %v11239_v34 = vpop.f32.mrf.mxu1 }
0x1cbe   : > { %v14313_v35 = vpop.f32.mrf.mxu1  ;;  %v10999_v36 = vpop.f32.mrf.mxu0 }
0x1cbf   : > { %v11000_v37 = vadd.f32 %v13014_v63, %v10999_v36  ;;  %v15783_v35 = vsub.f32 %v13026_v33, %v15774_v58 }
0x1cc0   : > { %v14286_v17 = vpop.f32.mrf.mxu0 }
0x1cc1   : > { %v11086_v38 = vadd.f32 %v11085_v20, %v11000_v37  ;;  %v15772_v20 = vsub.f32 %v13027_v32, %v15766_v52  ;;  %v13024_v37 = vld [vmem:[%s15952_s13 + $0x20] sm:$0xff] }
0x1cc2   : > { %v11393_v39 = vpop.f32.mrf.mxu1 }
0x1cc3   : > { %v12042_v63 = vand.u32 4294901760, %v15772_v20 }
0x1cc4   : > { %v11163_v27 = vpop.f32.mrf.mxu0  ;;  %v14331_v40 = vpop.f32.mrf.mxu1 }
0x1cc5   : > { %v11164_v41 = vadd.f32 %v11163_v27, %v11086_v38  ;;  %v12043_v17 = vsub.f32 %v15772_v20, %v12042_v63  ;;  %v12049_v38 = vand.u32 4294901760, %v15783_v35  ;;  %v15799_v27 = vand.u32 4294901760, %v13024_v37 }
0x1cc6   : > { %v14304_v42 = vpop.f32.mrf.mxu0 }
0x1cc7   : > { %v11240_v43 = vadd.f32 %v11239_v34, %v11164_v41  ;;  %v13025_v34 = vld [vmem:[%s15952_s13 + $0x28] sm:$0xff]  ;;  %v12044_v40 = vand.u32 4294901760, %v12043_v17  ;;  %v12050_v41 = vsub.f32 %v15783_v35, %v12049_v38 }
0x1cc8   : > { %v15785_v36 = vand.u32 4294901760, %v13025_v34 }
0x1cca   : > { %v11319_v44 = vpop.f32.mrf.mxu0 }
0x1ccb   : > { %v11320_v45 = vadd.f32 %v11319_v44, %v11240_v43  ;;  %v15808_v43 = vsub.f32 %v13024_v37, %v15799_v27  ;;  %v12051_v44 = vand.u32 4294901760, %v12050_v41 }
0x1ccc   : > { %v14322_v46 = vpop.f32.mrf.mxu0 }
0x1ccd   : > { %v11394_v48 = vadd.f32 %v11393_v39, %v11320_v45  ;;  %v15797_v39 = vsub.f32 %v13025_v34, %v15785_v36  ;;  %v12063_v46 = vand.u32 4294901760, %v15808_v43 }
0x1ccf   : > { %v11397_v49 = vadd.f32 %v11394_v48, %v15376_v0  ;;  %v13020_v0 = vld [vmem:[%s15950_s11 + $0x20] sm:$0xff]  ;;  %v12056_v42 = vand.u32 4294901760, %v15797_v39 }
0x1cd0   : > { %v11477_v62 = vand.u32 4294901760, %v13020_v0 }
0x1cd1   : > { %v11402_v50 = vsel %vm1027_vm3, %v11397_v49, 0.0  ;;  %v12057_v45 = vsub.f32 %v15797_v39, %v12056_v42 }
0x1cd2   : > { %11403 = vadd.xlane.f32.xlu1 %v11402_v50  ;;  %v15712_v4 = vsub.f32 %v13020_v0, %v11477_v62  ;;  %14335 = vmatpush3.msra.mxu0 %v11477_v62 }
0x1cd3   : > { %14336 = vmatprep.subr.mxu0 %v14582_v3  ;;  %v12058_v48 = vand.u32 4294901760, %v12057_v45  ;;  %v12453_v45 = vld [vmem:[%s15954_s15] sm:$0xff] }
0x1cd4   : > { %v11561_v7 = vand.u32 4294901760, %v15712_v4  ;;  %14337 = vmatpush3.msra.mxu0 %v11480_v5 }
0x1cd5   : > { %14350 = vmatprep.subr.mxu0 %v14582_v3 }
0x1cd6   : > { %v11562_v10 = vsub.f32 %v15712_v4, %v11561_v7 }
0x1cd8   : > { %v11563_v12 = vand.u32 4294901760, %v11562_v10 }
0x1cda   : > { %14344 = vmatpush3.msra.mxu1 %v11563_v12 }
0x1cdb   : > { %14345 = vmatprep.subr.mxu1 %v14582_v3 }
0x1cdc   : > { %14346 = vmatpush3.msra.mxu1 %v11570_v14 }
0x1cdd   : > { %14359 = vmatprep.subr.mxu1 %v14582_v3 }
0x1d5b   : > { %v11404_v51 = vpop.xlane.xlu1 %11403 }
0x1d5c   : > { %v11405_v53 = vmul.f32 0.05, %v11404_v51 }
0x1d5e   : > { %v11406_v57 = vsub.f32 %v11397_v49, %v11405_v53  ;;  %v12064_v49 = vsub.f32 %v15808_v43, %v12063_v46 }
0x1d60   : > { %v11407_v54 = vmul.f32 %v11406_v57, %v11406_v57  ;;  %v12065_v50 = vand.u32 4294901760, %v12064_v49  ;;  %v12496_v49 = vand.u32 4294901760, %v12453_v45 }
0x1d62   : > { %v11408_v55 = vsel %vm1027_vm3, %v11407_v54, 0.0  ;;  %v13023_v54 = vld [vmem:[%s15951_s12 + $0x1] ss:$0 sm:$0xff] }
0x1d63   : > { %11409 = vadd.xlane.f32.xlu0 %v11408_v55 }
0x1dec   : > { %v11410_v15 = vpop.xlane.xlu0 %11409 }
0x1ded   : > { %v11411_v16 = vmul.f32 0.05, %v11410_v15 }
0x1def   : > { %v11412_v18 = vadd.f32 1e-05, %v11411_v16 }
0x1df1   : > { %14566 = vrsqrt.f32 %v11412_v18 }
0x1dfe   : > { %v14567_v19 = vpop.eup %14566 }
0x1dff   : > { %v11414_v21 = vmul.f32 %v14567_v19, %v11406_v57 }
0x1e01   : > { %v11421_v24 = vmul.f32 %v13017_v22, %v11414_v21 }
0x1e03   : > { %v15732_v25 = vadd.f32 %v13018_v23, %v11421_v24 }
0x1e05   : > { %v11442_v47 = vsel %vm1027_vm3, %v15732_v25, 0 }
0x1e06   : > { %v11515_v26 = vand.u32 4294901760, %v11442_v47 }
0x1e08   : > { %v11516_v29 = vsub.f32 %v11442_v47, %v11515_v26  ;;  %14348 = vmatmul.mubr.f32.vlgmr.msra.gmra.mxu1 %v11515_v26  ;;  %v13029_v47 = vld [vmem:[%s15953_s14 + $0x1] ss:$0 sm:$0xff] }
0x1e09   : > { %14360 = vmatpush3.msra.mxu1 %v11474_v60  ;;  %14365 = vmatprep.mubr.msk.f32.mxu1 %vm14583_vm0, %v14582_v3 }
0x1e0a   : > { %14361 = vmatprep.subr.mxu1 %v14582_v3  ;;  %v11517_v28 = vand.u32 4294901760, %v11516_v29 }
0x1e0b   : > { %14362 = vmatpush3.msra.mxu1 %v11477_v62 }
0x1e0c   : > { %14363 = vmatprep.subr.mxu1 %v14582_v3  ;;  %v11518_v30 = vsub.f32 %v11516_v29, %v11517_v28 }
0x1e0d   : > { %14364 = vmatpush3.msra.mxu1 %v11480_v5 }
0x1e0e   : > { %14366 = vmatmul.mubr.f32.vlgmr.msra.gmra.mxu1 %v11517_v28  ;;  %14377 = vmatprep.subr.mxu1 %v14582_v3  ;;  %v11519_v31 = vand.u32 4294901760, %v11518_v30 }
0x1e0f   : > { %14378 = vmatpush3.msra.mxu1 %v11474_v60  ;;  %14383 = vmatprep.mubr.msk.f32.mxu1 %vm14583_vm0, %v14582_v3 }
0x1e10   : > { %14379 = vmatprep.subr.mxu1 %v14582_v3  ;;  %14339 = vmatmul.mubr.f32.vlgmr.msra.gmra.mxu0 %v11519_v31 }
0x1e11   : > { %14351 = vmatpush3.msra.mxu0 %v15705_v61  ;;  %14380 = vmatpush3.msra.mxu1 %v11477_v62 }
0x1e12   : > { %14352 = vmatprep.subr.mxu0 %v14582_v3  ;;  %14381 = vmatprep.subr.mxu1 %v14582_v3 }
0x1e13   : > { %14353 = vmatpush3.msra.mxu0 %v15712_v4  ;;  %14382 = vmatpush3.msra.mxu1 %v11480_v5 }
0x1e14   : > { %14354 = vmatprep.subr.mxu0 %v14582_v3  ;;  %14384 = vmatmul.mubr.f32.vlgmr.msra.gmra.mxu1 %v11515_v26 }
0x1e15   : > { %14355 = vmatpush3.msra.mxu0 %v15717_v8  ;;  %14356 = vmatprep.mubr.msk.f32.mxu0 %vm14583_vm0, %v14582_v3 }
0x1e16   : > { %14357 = vmatmul.mubr.f32.vlgmr.msra.gmra.mxu0 %v11516_v29  ;;  %14368 = vmatprep.subr.mxu0 %v14582_v3 }
0x1e17   : > { %14369 = vmatpush3.msra.mxu0 %v11554_v2  ;;  %14374 = vmatprep.mubr.msk.f32.mxu0 %vm14583_vm0, %v14582_v3 }
0x1e18   : > { %14370 = vmatprep.subr.mxu0 %v14582_v3  ;;  %14397 = vmatprep.subr.mxu1 %v14582_v3 }
0x1e19   : > { %14371 = vmatpush3.msra.mxu0 %v11561_v7  ;;  %14405 = vmatprep.mubr.msk.f32.mxu1 %vm14583_vm0, %v14582_v3 }
0x1e1a   : > { %14372 = vmatprep.subr.mxu0 %v14582_v3  ;;  %14398 = vmatpush3.msra.mxu1 %v12044_v40  ;;  %v12455_v40 = vld [vmem:[%s15954_s15 + $0x10] sm:$0xf] }
0x1e1b   : > { %14373 = vmatpush3.msra.mxu0 %v11568_v11  ;;  %14399 = vmatprep.subr.mxu1 %v14582_v3  ;;  %v12461_v41 = vsel %vm1031_vm2, %v12455_v40, 0 }
0x1e1c   : > { %14375 = vmatmul.mubr.f32.vlgmr.msra.gmra.mxu0 %v11515_v26  ;;  %14386 = vmatprep.subr.mxu0 %v14582_v3 }
0x1e1d   : > { %14394 = vmatprep.mubr.msk.f32.mxu0 %vm14583_vm0, %v14582_v3  ;;  %14387 = vmatpush3.msra.mxu0 %v15766_v52 }
0x1e1e   : > { %14388 = vmatprep.subr.mxu0 %v14582_v3  ;;  %14400 = vmatpush3.msra.mxu1 %v12051_v44 }
0x1e1f   : > { %14389 = vmatpush3.msra.mxu0 %v15774_v58  ;;  %14401 = vmatprep.subr.mxu1 %v14582_v3 }
0x1e20   : > { %14390 = vmatprep.subr.mxu0 %v14582_v3  ;;  %14402 = vmatpush3.msra.mxu1 %v12058_v48 }
0x1e21   : > { %14391 = vmatpush3.msra.mxu0 %v15785_v36  ;;  %14403 = vmatprep.subr.mxu1 %v14582_v3 }
0x1e22   : > { %14392 = vmatprep.subr.mxu0 %v14582_v3  ;;  %14404 = vmatpush3.msra.mxu1 %v12065_v50 }
0x1e23   : > { %14393 = vmatpush3.msra.mxu0 %v15799_v27  ;;  %14419 = vmatprep.subr.mxu1 %v14582_v3 }
0x1e24   : > { %14408 = vmatprep.subr.mxu0 %v14582_v3 }
0x1ec8   : > { %v11607_v51 = vpop.f32.mrf.mxu1 }
0x1eca   : > { %v14349_v53 = vpop.f32.mrf.mxu1 }
0x1ecb   : > { %v12583_v53 = vsub.f32 %v12453_v45, %v12496_v49 }
0x1ece   : > { %v11761_v57 = vpop.f32.mrf.mxu1 }
0x1ed0   : > { %v14367_v55 = vpop.f32.mrf.mxu1  ;;  %v11521_v56 = vpop.f32.mrf.mxu0 }
0x1ed1   : > { %v11522_v59 = vadd.f32 %v13023_v54, %v11521_v56  ;;  %v12584_v55 = vand.u32 4294901760, %v12583_v53 }
0x1ed2   : > { %v14340_v60 = vpop.f32.mrf.mxu0 }
0x1ed3   : > { %v11608_v0 = vadd.f32 %v11607_v51, %v11522_v59  ;;  %v12585_v59 = vsub.f32 %v12583_v53, %v12584_v55 }
0x1ed4   : > { %v11915_v61 = vpop.f32.mrf.mxu1 }
0x1ed5   : > { %v12586_v60 = vand.u32 4294901760, %v12585_v59 }
0x1ed6   : > { %v11685_v62 = vpop.f32.mrf.mxu0  ;;  %v14385_v1 = vpop.f32.mrf.mxu1 }
0x1ed7   : > { %v11686_v2 = vadd.f32 %v11685_v62, %v11608_v0 }
0x1ed8   : > { %v14358_v4 = vpop.f32.mrf.mxu0 }
0x1ed9   : > { %v11762_v5 = vadd.f32 %v11761_v57, %v11686_v2  ;;  %v13032_v2 = vld [vmem:[%s15948_s9 + $0x1] ss:$0 sm:$0xff] }
0x1edc   : > { %v11841_v6 = vpop.f32.mrf.mxu0 }
0x1edd   : > { %v11842_v7 = vadd.f32 %v11841_v6, %v11762_v5  ;;  %v13033_v5 = vld [vmem:[%s15949_s10 + $0x1] ss:$0 sm:$0xff] }
0x1ede   : > { %v14376_v8 = vpop.f32.mrf.mxu0 }
0x1edf   : > { %v11916_v9 = vadd.f32 %v11915_v61, %v11842_v7 }
0x1ee1   : > { %v11919_v10 = vmax.f32 %v11916_v9, 0.0 }
0x1ee3   : > { %v11934_v11 = vsel %vm6214_vm8, %v11919_v10, 0 }
0x1ee4   : > { %v12005_v12 = vand.u32 4294901760, %v11934_v11 }
0x1ee6   : > { %v12006_v13 = vsub.f32 %v11934_v11, %v12005_v12  ;;  %14406 = vmatmul.mubr.f32.vlgmr.msra.gmra.mxu1 %v12005_v12 }
0x1ee7   : > { %14420 = vmatpush3.msra.mxu1 %v15766_v52  ;;  %14427 = vmatprep.mubr.msk.f32.mxu1 %vm14583_vm0, %v14582_v3 }
0x1ee8   : > { %v12007_v14 = vand.u32 4294901760, %v12006_v13  ;;  %14421 = vmatprep.subr.mxu1 %v14582_v3 }
0x1ee9   : > { %14422 = vmatpush3.msra.mxu1 %v15774_v58 }
0x1eea   : > { %v12008_v15 = vsub.f32 %v12006_v13, %v12007_v14  ;;  %14423 = vmatprep.subr.mxu1 %v14582_v3 }
0x1eeb   : > { %14424 = vmatpush3.msra.mxu1 %v15785_v36 }
0x1eec   : > { %v12009_v16 = vand.u32 4294901760, %v12008_v15  ;;  %14425 = vmatprep.subr.mxu1 %v14582_v3 }
0x1eed   : > { %14426 = vmatpush3.msra.mxu1 %v15799_v27 }
0x1eee   : > { %14428 = vmatmul.mubr.f32.vlgmr.msra.gmra.mxu1 %v12007_v14  ;;  %14441 = vmatprep.subr.mxu1 %v14582_v3 }
0x1eef   : > { %14395 = vmatmul.mubr.f32.vlgmr.msra.gmra.mxu0 %v12009_v16  ;;  %14442 = vmatpush3.msra.mxu1 %v15766_v52 }
0x1ef0   : > { %14409 = vmatpush3.msra.mxu0 %v15772_v20  ;;  %14443 = vmatprep.subr.mxu1 %v14582_v3 }
0x1ef1   : > { %14410 = vmatprep.subr.mxu0 %v14582_v3  ;;  %14444 = vmatpush3.msra.mxu1 %v15774_v58 }
0x1ef2   : > { %14411 = vmatpush3.msra.mxu0 %v15783_v35  ;;  %14445 = vmatprep.subr.mxu1 %v14582_v3 }
0x1ef3   : > { %14412 = vmatprep.subr.mxu0 %v14582_v3  ;;  %14446 = vmatpush3.msra.mxu1 %v15785_v36 }
0x1ef4   : > { %14413 = vmatpush3.msra.mxu0 %v15797_v39  ;;  %14447 = vmatprep.subr.mxu1 %v14582_v3 }
0x1ef5   : > { %14414 = vmatprep.subr.mxu0 %v14582_v3  ;;  %14416 = vmatprep.mubr.msk.f32.mxu0 %vm14583_vm0, %v14582_v3 }
0x1ef6   : > { %14415 = vmatpush3.msra.mxu0 %v15808_v43  ;;  %14448 = vmatpush3.msra.mxu1 %v15799_v27 }
0x1ef7   : > { %14449 = vmatprep.mubr.msk.f32.mxu1 %vm14583_vm0, %v14582_v3  ;;  %14417 = vmatmul.mubr.f32.vlgmr.msra.gmra.mxu0 %v12006_v13 }
0x1ef8   : > { %14430 = vmatprep.subr.mxu0 %v14582_v3  ;;  %14450 = vmatmul.mubr.f32.vlgmr.msra.gmra.mxu1 %v12005_v12 }
0x1ef9   : > { %14431 = vmatpush3.msra.mxu0 %v12042_v63  ;;  %14438 = vmatprep.mubr.msk.f32.mxu0 %vm14583_vm0, %v14582_v3 }
0x1efa   : > { %14432 = vmatprep.subr.mxu0 %v14582_v3  ;;  %14461 = vmatprep.subr.mxu1 %v14582_v3 }
0x1efb   : > { %14433 = vmatpush3.msra.mxu0 %v12049_v38  ;;  %14467 = vmatprep.mubr.msk.f32.mxu1 %vm14583_vm0, %v14582_v3 }
0x1efc   : > { %14434 = vmatprep.subr.mxu0 %v14582_v3 }
0x1efd   : > { %14435 = vmatpush3.msra.mxu0 %v12056_v42  ;;  %v12490_v42 = vand.u32 4294901760, %v12461_v41 }
0x1efe   : > { %14436 = vmatprep.subr.mxu0 %v14582_v3 }
0x1eff   : > { %14437 = vmatpush3.msra.mxu0 %v12063_v46  ;;  %v15888_v43 = vsub.f32 %v12461_v41, %v12490_v42 }
0x1f00   : > { %14439 = vmatmul.mubr.f32.vlgmr.msra.gmra.mxu0 %v12005_v12  ;;  %14452 = vmatprep.subr.mxu0 %v14582_v3 }
0x1f01   : > { %14458 = vmatprep.mubr.msk.f32.mxu0 %vm14583_vm0, %v14582_v3  ;;  %14453 = vmatpush3.msra.mxu0 %v12490_v42  ;;  %v12570_v46 = vand.u32 4294901760, %v15888_v43 }
0x1f02   : > { %14454 = vmatprep.subr.mxu0 %v14582_v3 }
0x1f03   : > { %v12571_v50 = vsub.f32 %v15888_v43, %v12570_v46 }
0x1f05   : > { %v12572_v57 = vand.u32 4294901760, %v12571_v50 }
0x1f07   : > { %14462 = vmatpush3.msra.mxu1 %v12572_v57 }
0x1f08   : > { %14463 = vmatprep.subr.mxu1 %v14582_v3 }
0x1fa6   : > { %v12102_v18 = vpop.f32.mrf.mxu1 }
0x1fa8   : > { %v14407_v19 = vpop.f32.mrf.mxu1 }
0x1fae   : > { %v12259_v22 = vpop.f32.mrf.mxu1 }
0x1faf   : > { %v12011_v21 = vpop.f32.mrf.mxu0 }
0x1fb0   : > { %v14429_v23 = vpop.f32.mrf.mxu1  ;;  %v12012_v26 = vadd.f32 %v13029_v47, %v12011_v21 }
0x1fb1   : > { %v14396_v24 = vpop.f32.mrf.mxu0 }
0x1fb2   : > { %v12103_v30 = vadd.f32 %v12102_v18, %v12012_v26  ;;  %v12456_v18 = vld [vmem:[#allocation2] sm:$0x1] }
0x1fb7   : > { %v12182_v29 = vpop.f32.mrf.mxu0 }
0x1fb8   : > { %v12417_v28 = vpop.f32.mrf.mxu1  ;;  %v12183_v52 = vadd.f32 %v12182_v29, %v12103_v30 }
0x1fb9   : > { %v14418_v31 = vpop.f32.mrf.mxu0 }
0x1fba   : > { %v14451_v32 = vpop.f32.mrf.mxu1  ;;  %v12260_v33 = vadd.f32 %v12259_v22, %v12183_v52 }
0x1fc0   : > { %v12342_v20 = vpop.f32.mrf.mxu0 }
0x1fc1   : > { %v12343_v58 = vadd.f32 %v12342_v20, %v12260_v33 }
0x1fc2   : > { %v14440_v34 = vpop.f32.mrf.mxu0 }
0x1fc3   : > { %v12418_v63 = vadd.f32 %v12417_v28, %v12343_v58 }
0x1fc5   : > { %v12421_v35 = vadd.f32 %v12418_v63, %v15732_v25  ;;  %v12454_v25 = vld [vmem:[%s15954_s15 + $0x8] sm:$0xff] }
0x1fc6   : > { %v12493_v44 = vand.u32 4294901760, %v12454_v25 }
0x1fc7   : > { %v12426_v36 = vsel %vm1027_vm3, %v12421_v35, 0.0 }
0x1fc8   : > { %12427 = vadd.xlane.f32.xlu0 %v12426_v36  ;;  %v15895_v48 = vsub.f32 %v12454_v25, %v12493_v44  ;;  %14455 = vmatpush3.msra.mxu0 %v12493_v44 }
0x1fc9   : > { %14456 = vmatprep.subr.mxu0 %v14582_v3 }
0x1fca   : > { %v12577_v51 = vand.u32 4294901760, %v15895_v48  ;;  %14457 = vmatpush3.msra.mxu0 %v12496_v49 }
0x1fcb   : > { %14470 = vmatprep.subr.mxu0 %v14582_v3 }
0x1fcc   : > { %v12578_v54 = vsub.f32 %v15895_v48, %v12577_v51 }
0x1fce   : > { %v12579_v56 = vand.u32 4294901760, %v12578_v54 }
0x1fd0   : > { %14464 = vmatpush3.msra.mxu1 %v12579_v56 }
0x1fd1   : > { %14465 = vmatprep.subr.mxu1 %v14582_v3 }
0x1fd2   : > { %14466 = vmatpush3.msra.mxu1 %v12586_v60 }
0x1fd3   : > { %14479 = vmatprep.subr.mxu1 %v14582_v3 }
0x2051   : > { %v12428_v37 = vpop.xlane.xlu0 %12427 }
0x2052   : > { %v12429_v17 = vmul.f32 0.05, %v12428_v37 }
0x2054   : > { %v12430_v38 = vsub.f32 %v12421_v35, %v12429_v17 }
0x2056   : > { %v12431_v39 = vmul.f32 %v12430_v38, %v12430_v38 }
0x2058   : > { %v12432_v27 = vsel %vm1027_vm3, %v12431_v39, 0.0 }
0x2059   : > { %12433 = vadd.xlane.f32.xlu1 %v12432_v27 }
0x20e2   : > { %v12434_v0 = vpop.xlane.xlu1 %12433 }
0x20e3   : > { %v12435_v61 = vmul.f32 0.05, %v12434_v0 }
0x20e5   : > { %v12436_v62 = vadd.f32 1e-05, %v12435_v61 }
0x20e7   : > { %14568 = vrsqrt.f32 %v12436_v62 }
0x20f4   : > { %v14569_v1 = vpop.eup %14568 }
0x20f5   : > { %v12438_v4 = vmul.f32 %v14569_v1, %v12430_v38 }
0x20f7   : > { %v12445_v6 = vmul.f32 %v13032_v2, %v12438_v4 }
0x20f9   : > { %v12452_v7 = vadd.f32 %v13033_v5, %v12445_v6 }
0x20fb   : > { %v12458_v8 = vsel %vm1027_vm3, %v12452_v7, 0 }
0x20fc   : > { %v12531_v9 = vand.u32 4294901760, %v12458_v8 }
0x20fe   : > { %v12532_v10 = vsub.f32 %v12458_v8, %v12531_v9  ;;  %14468 = vmatmul.mubr.f32.vlgmr.msra.gmra.mxu1 %v12531_v9 }
0x20ff   : > { %14480 = vmatpush3.msra.mxu1 %v12490_v42  ;;  %14485 = vmatprep.mubr.msk.f32.mxu1 %vm14583_vm0, %v14582_v3 }
0x2100   : > { %14481 = vmatprep.subr.mxu1 %v14582_v3  ;;  %v12533_v11 = vand.u32 4294901760, %v12532_v10 }
0x2101   : > { %14482 = vmatpush3.msra.mxu1 %v12493_v44 }
0x2102   : > { %14483 = vmatprep.subr.mxu1 %v14582_v3  ;;  %v12534_v12 = vsub.f32 %v12532_v10, %v12533_v11 }
0x2103   : > { %14484 = vmatpush3.msra.mxu1 %v12496_v49 }
0x2104   : > { %14486 = vmatmul.mubr.f32.vlgmr.msra.gmra.mxu1 %v12533_v11  ;;  %14497 = vmatprep.subr.mxu1 %v14582_v3  ;;  %v12535_v13 = vand.u32 4294901760, %v12534_v12 }
0x2105   : > { %14498 = vmatpush3.msra.mxu1 %v12490_v42  ;;  %14503 = vmatprep.mubr.msk.f32.mxu1 %vm14583_vm0, %v14582_v3 }
0x2106   : > { %14499 = vmatprep.subr.mxu1 %v14582_v3  ;;  %14459 = vmatmul.mubr.f32.vlgmr.msra.gmra.mxu0 %v12535_v13 }
0x2107   : > { %14471 = vmatpush3.msra.mxu0 %v15888_v43  ;;  %14500 = vmatpush3.msra.mxu1 %v12493_v44 }
0x2108   : > { %14472 = vmatprep.subr.mxu0 %v14582_v3  ;;  %14501 = vmatprep.subr.mxu1 %v14582_v3 }
0x2109   : > { %14473 = vmatpush3.msra.mxu0 %v15895_v48  ;;  %14502 = vmatpush3.msra.mxu1 %v12496_v49 }
0x210a   : > { %14474 = vmatprep.subr.mxu0 %v14582_v3  ;;  %14504 = vmatmul.mubr.f32.vlgmr.msra.gmra.mxu1 %v12531_v9 }
0x210b   : > { %14475 = vmatpush3.msra.mxu0 %v12583_v53  ;;  %14476 = vmatprep.mubr.msk.f32.mxu0 %vm14583_vm0, %v14582_v3 }
0x210c   : > { %14477 = vmatmul.mubr.f32.vlgmr.msra.gmra.mxu0 %v12532_v10  ;;  %14488 = vmatprep.subr.mxu0 %v14582_v3 }
0x210d   : > { %14489 = vmatpush3.msra.mxu0 %v12570_v46  ;;  %14494 = vmatprep.mubr.msk.f32.mxu0 %vm14583_vm0, %v14582_v3 }
0x210e   : > { %14490 = vmatprep.subr.mxu0 %v14582_v3 }
0x210f   : > { %14491 = vmatpush3.msra.mxu0 %v12577_v51 }
0x2110   : > { %14492 = vmatprep.subr.mxu0 %v14582_v3 }
0x2111   : > { %14493 = vmatpush3.msra.mxu0 %v12584_v55 }
0x2112   : > { %14495 = vmatmul.mubr.f32.vlgmr.msra.gmra.mxu0 %v12531_v9 }
0x21be   : > { %v12623_v14 = vpop.f32.mrf.mxu1 }
0x21c0   : > { %v14469_v15 = vpop.f32.mrf.mxu1 }
0x21c4   : > { %v12777_v16 = vpop.f32.mrf.mxu1 }
0x21c6   : > { %v14487_v19 = vpop.f32.mrf.mxu1  ;;  %v12537_v22 = vpop.f32.mrf.mxu0 }
0x21c7   : > { %v12538_v21 = vadd.f32 %v12537_v22, %v12456_v18 }
0x21c8   : > { %v14460_v23 = vpop.f32.mrf.mxu0 }
0x21c9   : > { %v12624_v24 = vadd.f32 %v12623_v14, %v12538_v21 }
0x21ca   : > { %v12931_v47 = vpop.f32.mrf.mxu1 }
0x21cc   : > { %v12701_v26 = vpop.f32.mrf.mxu0  ;;  %v14505_v29 = vpop.f32.mrf.mxu1 }
0x21cd   : > { %v12702_v28 = vadd.f32 %v12701_v26, %v12624_v24 }
0x21ce   : > { %v14478_v30 = vpop.f32.mrf.mxu0 }
0x21cf   : > { %v12778_v31 = vadd.f32 %v12777_v16, %v12702_v28 }
0x21d2   : > { %v12857_v32 = vpop.f32.mrf.mxu0 }
0x21d3   : > { %v12858_v3 = vadd.f32 %v12857_v32, %v12778_v31 }
0x21d4   : > { %v14496_v52 = vpop.f32.mrf.mxu0 }
0x21d5   : > { %v12932_v33 = vadd.f32 %v12931_v47, %v12858_v3 }
0x21d7   : > { %v12935_v20 = vsub.f32 0.0, %v12932_v33 }
0x21d9   : > { %v12936_v58 = vmul.f32 1.442695, %v12935_v20 }
0x21db   : > { %14570 = vpow2.f32 %v12936_v58 }
0x21e8   : > { %v14571_v34 = vpop.eup %14570 }
0x21e9   : > { %v12938_v63 = vadd.f32 1.0, %v14571_v34 }
0x21eb   : > { %14572 = vrcp.f32 %v12938_v63 }
0x21f8   : > { %v14573_v35 = vpop.eup %14572 }
0x21f9   : > { %12942 = vst.msk [vmem:[%s543_s16] sm:$0x1] %vm12941_vm9, %v14573_v35 }
0x21fa PF: > { %s29_s26 = sadd.s32 1, %s14580_s26  }
0x21fb   : > { %p26_p4 = scmp.ge.s32.totalorder %s29_s26, 4  }
0x21fd   :  { %28 = sbr.rel (!%p26_p4) target bundleno = 3 (0x3), region = 130 }

</bundles_post_ra>
